<compile_context>
chip_gen: v6e
topology: v6e:2x2x1
jax: 0.10.0
libtpu: 0.0.40
codegen_flags: <defaults>
</compile_context>

<pallas_src>
import functools

import jax
import jax.numpy as jnp
from jax.experimental import pallas as pl
from jax.experimental.pallas import tpu as pltpu

_EPS = 1e-5
_LANE = 128


def _round_up(x, m):
    return (x + m - 1) // m * m


def _conv_bn_stats_kernel(*refs, apply_act):
    """Per-batch-image tile: [optional affine+ReLU] -> 3x3 conv -> y + stats.

    apply_act=False: refs = (x, w, b, y_out, stats_out)
    apply_act=True : refs = (x, scale, shift, w, b, y_out, stats_out)
      where (scale, shift) is the folded BatchNorm affine of the PREVIOUS conv.
    Weights are passed as (9, C, Cout) (tap-major, HWIO row-major order).
    """
    if apply_act:
        x_ref, scale_ref, shift_ref, w_ref, b_ref, y_ref, st_ref = refs
    else:
        x_ref, w_ref, b_ref, y_ref, st_ref = refs

    _, H, W, _ = x_ref.shape
    Co = y_ref.shape[-1]

    a = x_ref[0]                                           # (H, W, C) f32
    if apply_act:
        # folded BN of the previous conv + ReLU (single VPU pass)
        a = jnp.maximum(a * scale_ref[...] + shift_ref[...], 0.0)
    C = a.shape[-1]

    # Zero-padded (H+2, W+2, C) halo built in-register: one value, no scratch
    # re-init hazard under "parallel" grid semantics.
    zc = jnp.zeros((H, 1, C), jnp.float32)
    zr = jnp.zeros((1, W + 2, C), jnp.float32)
    ap = jnp.concatenate(
        [zr, jnp.concatenate([zc, a, zc], axis=1), zr], axis=0)

    # The 9 shifted taps, ordered (dh, dw) row-major to match HWIO weights.
    taps = [ap[dh:dh + H, dw:dw + W, :] for dh in range(3) for dw in range(3)]

    if C % _LANE == 0:
        # im2col with lane-aligned pieces -> single MXU dot, K = 9*C.
        lhs = jnp.concatenate(taps, axis=-1).reshape(H * W, 9 * C)
        y = jnp.dot(lhs, w_ref[...].reshape(9 * C, Co),
                    preferred_element_type=jnp.float32)
    else:
        # Small / unaligned C: 9 tiny dots + f32 accumulate (robust lowering).
        w = w_ref[...]                                     # (9, C, Co)
        y = jnp.dot(taps[0].reshape(H * W, C), w[0],
                    preferred_element_type=jnp.float32)
        for t in range(1, 9):
            y = y + jnp.dot(taps[t].reshape(H * W, C), w[t],
                            preferred_element_type=jnp.float32)

    y = y + b_ref[...]                                     # (H*W, Co)
    y_ref[0] = y.reshape(H, W, Co)

    # Per-tile BatchNorm partial statistics, same traversal (f32).
    st_ref[0] = jnp.concatenate(
        [jnp.sum(y, axis=0, keepdims=True),
         jnp.sum(y * y, axis=0, keepdims=True)], axis=0)   # (2, Co)


def _affine_relu_kernel(y_ref, scale_ref, shift_ref, o_ref):
    """Finalize: apply folded BatchNorm affine + ReLU (lane-dense store)."""
    o_ref[0] = jnp.maximum(y_ref[0] * scale_ref[...] + shift_ref[...], 0.0)


def _bn_fold(stats, gamma_p, beta_p, count):
    """Fold batch-statistics BN into per-channel (scale, shift). All f32."""
    ssum = jnp.sum(stats[:, 0, :], axis=0)                 # (Cp,)
    ssq = jnp.sum(stats[:, 1, :], axis=0)                  # (Cp,)
    mean = ssum / count
    var = jnp.maximum(ssq / count - mean * mean, 0.0)
    scale = gamma_p[0] * jax.lax.rsqrt(var + _EPS)
    shift = beta_p[0] - mean * scale
    return scale[None, :], shift[None, :]                  # (1, Cp)


def _pad_last(a, n):
    return jnp.pad(a, [(0, 0)] * (a.ndim - 1) + [(0, n - a.shape[-1])])


@jax.jit
def double_conv(x_nchw, params):
    """DoubleConv forward. x_nchw: (N, Cin, H, W) f32 -> (N, Cout, H, W) f32."""
    N, Cin, H, W = x_nchw.shape
    Cout = params["w1"].shape[-1]
    Cop = _round_up(Cout, _LANE)                           # lane-dense channels

    x = jnp.transpose(x_nchw, (0, 2, 3, 1)).astype(jnp.float32)   # NHWC

    # --- one-time host-side parameter packing (tiny) ----------------------
    w1s = _pad_last(params["w1"], Cop).reshape(9, Cin, Cop)        # (9,Cin,Cop)
    w2p = jnp.pad(params["w2"],
                  ((0, 0), (0, 0), (0, Cop - Cout), (0, Cop - Cout)))
    w2s = w2p.reshape(9, Cop, Cop)                                 # (9,Cop,Cop)
    b1 = _pad_last(params["b1"], Cop)
    b2 = _pad_last(params["b2"], Cop)
    g1 = _pad_last(params["g1"], Cop)      # gamma padded with 0 -> padded
    g2 = _pad_last(params["g2"], Cop)      # channels stay exactly 0
    be1 = _pad_last(params["be1"], Cop)
    be2 = _pad_last(params["be2"], Cop)

    grid = (N,)
    cparams = pltpu.CompilerParams(
        dimension_semantics=("parallel",),
        vmem_limit_bytes=32 * 1024 * 1024)

    img_in = lambda c: pl.BlockSpec((1, H, W, c), lambda n: (n, 0, 0, 0))
    vec_in = pl.BlockSpec((1, Cop), lambda n: (0, 0))
    w_in = lambda c: pl.BlockSpec((9, c, Cop), lambda n: (0, 0, 0))
    y_out = pl.BlockSpec((1, H, W, Cop), lambda n: (n, 0, 0, 0))
    st_out = pl.BlockSpec((1, 2, Cop), lambda n: (n, 0, 0))
    y_shape = jax.ShapeDtypeStruct((N, H, W, Cop), jnp.float32)
    st_shape = jax.ShapeDtypeStruct((N, 2, Cop), jnp.float32)
    count = float(N * H * W)

    # --- pass 1: conv1 + partial BN stats ----------------------------------
    y1, st1 = pl.pallas_call(
        functools.partial(_conv_bn_stats_kernel, apply_act=False),
        grid=grid,
        in_specs=[img_in(Cin), w_in(Cin), vec_in],
        out_specs=(y_out, st_out),
        out_shape=(y_shape, st_shape),
        compiler_params=cparams,
    )(x, w1s, b1)

    scale1, shift1 = _bn_fold(st1, g1, be1, count)

    # --- pass 2: bn1+relu -> conv2 + partial BN stats -----------------------
    y2, st2 = pl.pallas_call(
        functools.partial(_conv_bn_stats_kernel, apply_act=True),
        grid=grid,
        in_specs=[img_in(Cop), vec_in, vec_in, w_in(Cop), vec_in],
        out_specs=(y_out, st_out),
        out_shape=(y_shape, st_shape),
        compiler_params=cparams,
    )(y1, scale1, shift1, w2s, b2)

    scale2, shift2 = _bn_fold(st2, g2, be2, count)

    # --- pass 3: bn2+relu finalize ------------------------------------------
    out_p = pl.pallas_call(
        _affine_relu_kernel,
        grid=grid,
        in_specs=[img_in(Cop), vec_in, vec_in],
        out_specs=y_out,
        out_shape=y_shape,
        compiler_params=cparams,
    )(y2, scale2, shift2)

    out = out_p[..., :Cout]                                # drop channel padding
    return jnp.transpose(out, (0, 3, 1, 2))                # back to NCHW


def init_params(key, in_ch, out_ch):
    """Deterministic synthetic parameters matching DoubleConv(in_ch, out_ch)."""
    ks = jax.random.split(key, 8)

    def conv_w(k, cin, cout):
        # kaiming-uniform-ish scale; HWIO layout
        return (jax.random.normal(k, (3, 3, cin, cout), jnp.float32)
                / jnp.sqrt(9.0 * cin))

    return {
        "w1": conv_w(ks[0], in_ch, out_ch),
        "b1": 0.05 * jax.random.normal(ks[1], (1, out_ch), jnp.float32),
        "g1": 1.0 + 0.1 * jax.random.normal(ks[2], (1, out_ch), jnp.float32),
        "be1": 0.1 * jax.random.normal(ks[3], (1, out_ch), jnp.float32),
        "w2": conv_w(ks[4], out_ch, out_ch),
        "b2": 0.05 * jax.random.normal(ks[5], (1, out_ch), jnp.float32),
        "g2": 1.0 + 0.1 * jax.random.normal(ks[6], (1, out_ch), jnp.float32),
        "be2": 0.1 * jax.random.normal(ks[7], (1, out_ch), jnp.float32),
    }


def _reference(x_nchw, p):
    """Pure-JAX reference of the same forward pass (for correctness check)."""
    x = jnp.transpose(x_nchw, (0, 2, 3, 1)).astype(jnp.float32)

    def block(x, w, b, g, be):
        y = jax.lax.conv_general_dilated(
            x, w, window_strides=(1, 1), padding="SAME",
            dimension_numbers=("NHWC", "HWIO", "NHWC")) + b
        m = jnp.mean(y, axis=(0, 1, 2), keepdims=True)
        v = jnp.mean((y - m) ** 2, axis=(0, 1, 2), keepdims=True)
        yn = (y - m) * jax.lax.rsqrt(v + _EPS)
        return jnp.maximum(yn * g + be, 0.0)

    x = block(x, p["w1"], p["b1"], p["g1"], p["be1"])
    x = block(x, p["w2"], p["b2"], p["g2"], p["be2"])
    return jnp.transpose(x, (0, 3, 1, 2))


if __name__ == "__main__":
    key = jax.random.PRNGKey(0)
    k_x, k_p = jax.random.split(key)

    in_ch, out_ch = 4, 8
    x = jax.random.normal(k_x, (2, in_ch, 16, 16), jnp.float32)  # NCHW
    params = init_params(k_p, in_ch, out_ch)

    out = double_conv(x, params)
    out = jax.block_until_ready(out)

    ref = jax.block_until_ready(_reference(x, params))
    assert out.shape == (2, out_ch, 16, 16)
    assert jnp.allclose(out, ref, rtol=1e-4, atol=1e-4), (
        float(jnp.max(jnp.abs(out - ref))))

    print("KERNEL_OK")
</pallas_src>

<mosaic_0001>
module attributes {stable_mosaic.version = 11 : i64} {
  func.func @_conv_bn_stats_kernel(%arg0: i32, %arg1: memref<1x16x16x4xf32, #tpu.memory_space<vmem>>, %arg2: memref<9x4x128xf32, #tpu.memory_space<vmem>>, %arg3: memref<1x128xf32, #tpu.memory_space<vmem>>, %arg4: memref<1x16x16x128xf32, #tpu.memory_space<vmem>>, %arg5: memref<1x2x128xf32, #tpu.memory_space<vmem>>) attributes {dimension_semantics = [#tpu.dimension_semantics<parallel>], iteration_bounds = array<i64: 2>, scalar_prefetch = 0 : i64, scratch_operands = 0 : i64, tpu.core_type = #tpu.core_type<tc>, window_params = [{transform_indices = @transform_0, window_bounds = array<i64: 1, 16, 16, 4>}, {pipeline_mode = #tpu.pipeline_mode<synchronous>, transform_indices = @transform_1, window_bounds = array<i64: 9, 4, 128>}, {pipeline_mode = #tpu.pipeline_mode<synchronous>, transform_indices = @transform_2, window_bounds = array<i64: 1, 128>}, {transform_indices = @transform_3, window_bounds = array<i64: 1, 16, 16, 128>}, {transform_indices = @transform_4, window_bounds = array<i64: 1, 2, 128>}]} {
    %c0 = arith.constant 0 : index
    %c0_0 = arith.constant 0 : index
    %c0_1 = arith.constant 0 : index
    %c0_2 = arith.constant 0 : index
    %0 = vector.load %arg1[%c0, %c0_0, %c0_1, %c0_2] : memref<1x16x16x4xf32, #tpu.memory_space<vmem>>, vector<1x16x16x4xf32>
    %1 = vector.shape_cast %0 : vector<1x16x16x4xf32> to vector<16x16x4xf32>
    %cst = arith.constant 0.000000e+00 : f32
    %2 = vector.broadcast %cst : f32 to vector<16x1x4xf32>
    %cst_3 = arith.constant 0.000000e+00 : f32
    %3 = vector.broadcast %cst_3 : f32 to vector<1x18x4xf32>
    %4 = tpu.concatenate %2, %1, %2 in 1 : vector<16x1x4xf32>, vector<16x16x4xf32>, vector<16x1x4xf32> -> vector<16x18x4xf32>
    %5 = tpu.concatenate %3, %4, %3 in 0 : vector<1x18x4xf32>, vector<16x18x4xf32>, vector<1x18x4xf32> -> vector<18x18x4xf32>
    %6 = vector.extract_strided_slice %5 {offsets = [0, 0, 0], sizes = [16, 16, 4], strides = [1, 1, 1]} : vector<18x18x4xf32> to vector<16x16x4xf32>
    %7 = vector.extract_strided_slice %5 {offsets = [0, 1, 0], sizes = [16, 16, 4], strides = [1, 1, 1]} : vector<18x18x4xf32> to vector<16x16x4xf32>
    %8 = vector.extract_strided_slice %5 {offsets = [0, 2, 0], sizes = [16, 16, 4], strides = [1, 1, 1]} : vector<18x18x4xf32> to vector<16x16x4xf32>
    %9 = vector.extract_strided_slice %5 {offsets = [1, 0, 0], sizes = [16, 16, 4], strides = [1, 1, 1]} : vector<18x18x4xf32> to vector<16x16x4xf32>
    %10 = vector.extract_strided_slice %5 {offsets = [1, 1, 0], sizes = [16, 16, 4], strides = [1, 1, 1]} : vector<18x18x4xf32> to vector<16x16x4xf32>
    %11 = vector.extract_strided_slice %5 {offsets = [1, 2, 0], sizes = [16, 16, 4], strides = [1, 1, 1]} : vector<18x18x4xf32> to vector<16x16x4xf32>
    %12 = vector.extract_strided_slice %5 {offsets = [2, 0, 0], sizes = [16, 16, 4], strides = [1, 1, 1]} : vector<18x18x4xf32> to vector<16x16x4xf32>
    %13 = vector.extract_strided_slice %5 {offsets = [2, 1, 0], sizes = [16, 16, 4], strides = [1, 1, 1]} : vector<18x18x4xf32> to vector<16x16x4xf32>
    %14 = vector.extract_strided_slice %5 {offsets = [2, 2, 0], sizes = [16, 16, 4], strides = [1, 1, 1]} : vector<18x18x4xf32> to vector<16x16x4xf32>
    %c0_4 = arith.constant 0 : index
    %c0_5 = arith.constant 0 : index
    %c0_6 = arith.constant 0 : index
    %15 = vector.load %arg2[%c0_4, %c0_5, %c0_6] : memref<9x4x128xf32, #tpu.memory_space<vmem>>, vector<9x4x128xf32>
    %16 = vector.shape_cast %6 : vector<16x16x4xf32> to vector<256x4xf32>
    %17 = vector.extract_strided_slice %15 {offsets = [0, 0, 0], sizes = [1, 4, 128], strides = [1, 1, 1]} : vector<9x4x128xf32> to vector<1x4x128xf32>
    %18 = vector.shape_cast %17 : vector<1x4x128xf32> to vector<4x128xf32>
    %cst_7 = arith.constant dense<0.000000e+00> : vector<256x128xf32>
    %19 = tpu.matmul %16, %18, %cst_7 {dimension_numbers = #tpu.dot_dimension_numbers<[1], [0], [0], [1], [0, 0, 1, 1], [], []>} : vector<256x4xf32>, vector<4x128xf32>, vector<256x128xf32> -> vector<256x128xf32>
    %20 = vector.shape_cast %7 : vector<16x16x4xf32> to vector<256x4xf32>
    %21 = vector.extract_strided_slice %15 {offsets = [1, 0, 0], sizes = [1, 4, 128], strides = [1, 1, 1]} : vector<9x4x128xf32> to vector<1x4x128xf32>
    %22 = vector.shape_cast %21 : vector<1x4x128xf32> to vector<4x128xf32>
    %cst_8 = arith.constant dense<0.000000e+00> : vector<256x128xf32>
    %23 = tpu.matmul %20, %22, %cst_8 {dimension_numbers = #tpu.dot_dimension_numbers<[1], [0], [0], [1], [0, 0, 1, 1], [], []>} : vector<256x4xf32>, vector<4x128xf32>, vector<256x128xf32> -> vector<256x128xf32>
    %24 = arith.addf %19, %23 : vector<256x128xf32>
    %25 = vector.shape_cast %8 : vector<16x16x4xf32> to vector<256x4xf32>
    %26 = vector.extract_strided_slice %15 {offsets = [2, 0, 0], sizes = [1, 4, 128], strides = [1, 1, 1]} : vector<9x4x128xf32> to vector<1x4x128xf32>
    %27 = vector.shape_cast %26 : vector<1x4x128xf32> to vector<4x128xf32>
    %cst_9 = arith.constant dense<0.000000e+00> : vector<256x128xf32>
    %28 = tpu.matmul %25, %27, %cst_9 {dimension_numbers = #tpu.dot_dimension_numbers<[1], [0], [0], [1], [0, 0, 1, 1], [], []>} : vector<256x4xf32>, vector<4x128xf32>, vector<256x128xf32> -> vector<256x128xf32>
    %29 = arith.addf %24, %28 : vector<256x128xf32>
    %30 = vector.shape_cast %9 : vector<16x16x4xf32> to vector<256x4xf32>
    %31 = vector.extract_strided_slice %15 {offsets = [3, 0, 0], sizes = [1, 4, 128], strides = [1, 1, 1]} : vector<9x4x128xf32> to vector<1x4x128xf32>
    %32 = vector.shape_cast %31 : vector<1x4x128xf32> to vector<4x128xf32>
    %cst_10 = arith.constant dense<0.000000e+00> : vector<256x128xf32>
    %33 = tpu.matmul %30, %32, %cst_10 {dimension_numbers = #tpu.dot_dimension_numbers<[1], [0], [0], [1], [0, 0, 1, 1], [], []>} : vector<256x4xf32>, vector<4x128xf32>, vector<256x128xf32> -> vector<256x128xf32>
    %34 = arith.addf %29, %33 : vector<256x128xf32>
    %35 = vector.shape_cast %10 : vector<16x16x4xf32> to vector<256x4xf32>
    %36 = vector.extract_strided_slice %15 {offsets = [4, 0, 0], sizes = [1, 4, 128], strides = [1, 1, 1]} : vector<9x4x128xf32> to vector<1x4x128xf32>
    %37 = vector.shape_cast %36 : vector<1x4x128xf32> to vector<4x128xf32>
    %cst_11 = arith.constant dense<0.000000e+00> : vector<256x128xf32>
    %38 = tpu.matmul %35, %37, %cst_11 {dimension_numbers = #tpu.dot_dimension_numbers<[1], [0], [0], [1], [0, 0, 1, 1], [], []>} : vector<256x4xf32>, vector<4x128xf32>, vector<256x128xf32> -> vector<256x128xf32>
    %39 = arith.addf %34, %38 : vector<256x128xf32>
    %40 = vector.shape_cast %11 : vector<16x16x4xf32> to vector<256x4xf32>
    %41 = vector.extract_strided_slice %15 {offsets = [5, 0, 0], sizes = [1, 4, 128], strides = [1, 1, 1]} : vector<9x4x128xf32> to vector<1x4x128xf32>
    %42 = vector.shape_cast %41 : vector<1x4x128xf32> to vector<4x128xf32>
    %cst_12 = arith.constant dense<0.000000e+00> : vector<256x128xf32>
    %43 = tpu.matmul %40, %42, %cst_12 {dimension_numbers = #tpu.dot_dimension_numbers<[1], [0], [0], [1], [0, 0, 1, 1], [], []>} : vector<256x4xf32>, vector<4x128xf32>, vector<256x128xf32> -> vector<256x128xf32>
    %44 = arith.addf %39, %43 : vector<256x128xf32>
    %45 = vector.shape_cast %12 : vector<16x16x4xf32> to vector<256x4xf32>
    %46 = vector.extract_strided_slice %15 {offsets = [6, 0, 0], sizes = [1, 4, 128], strides = [1, 1, 1]} : vector<9x4x128xf32> to vector<1x4x128xf32>
    %47 = vector.shape_cast %46 : vector<1x4x128xf32> to vector<4x128xf32>
    %cst_13 = arith.constant dense<0.000000e+00> : vector<256x128xf32>
    %48 = tpu.matmul %45, %47, %cst_13 {dimension_numbers = #tpu.dot_dimension_numbers<[1], [0], [0], [1], [0, 0, 1, 1], [], []>} : vector<256x4xf32>, vector<4x128xf32>, vector<256x128xf32> -> vector<256x128xf32>
    %49 = arith.addf %44, %48 : vector<256x128xf32>
    %50 = vector.shape_cast %13 : vector<16x16x4xf32> to vector<256x4xf32>
    %51 = vector.extract_strided_slice %15 {offsets = [7, 0, 0], sizes = [1, 4, 128], strides = [1, 1, 1]} : vector<9x4x128xf32> to vector<1x4x128xf32>
    %52 = vector.shape_cast %51 : vector<1x4x128xf32> to vector<4x128xf32>
    %cst_14 = arith.constant dense<0.000000e+00> : vector<256x128xf32>
    %53 = tpu.matmul %50, %52, %cst_14 {dimension_numbers = #tpu.dot_dimension_numbers<[1], [0], [0], [1], [0, 0, 1, 1], [], []>} : vector<256x4xf32>, vector<4x128xf32>, vector<256x128xf32> -> vector<256x128xf32>
    %54 = arith.addf %49, %53 : vector<256x128xf32>
    %55 = vector.shape_cast %14 : vector<16x16x4xf32> to vector<256x4xf32>
    %56 = vector.extract_strided_slice %15 {offsets = [8, 0, 0], sizes = [1, 4, 128], strides = [1, 1, 1]} : vector<9x4x128xf32> to vector<1x4x128xf32>
    %57 = vector.shape_cast %56 : vector<1x4x128xf32> to vector<4x128xf32>
    %cst_15 = arith.constant dense<0.000000e+00> : vector<256x128xf32>
    %58 = tpu.matmul %55, %57, %cst_15 {dimension_numbers = #tpu.dot_dimension_numbers<[1], [0], [0], [1], [0, 0, 1, 1], [], []>} : vector<256x4xf32>, vector<4x128xf32>, vector<256x128xf32> -> vector<256x128xf32>
    %59 = arith.addf %54, %58 : vector<256x128xf32>
    %c0_16 = arith.constant 0 : index
    %c0_17 = arith.constant 0 : index
    %60 = vector.load %arg3[%c0_16, %c0_17] : memref<1x128xf32, #tpu.memory_space<vmem>>, vector<1x128xf32>
    %61 = vector.broadcast %60 : vector<1x128xf32> to vector<256x128xf32>
    %62 = arith.addf %59, %61 : vector<256x128xf32>
    %63 = vector.shape_cast %62 : vector<256x128xf32> to vector<16x16x128xf32>
    %c0_18 = arith.constant 0 : index
    %c0_19 = arith.constant 0 : index
    %c0_20 = arith.constant 0 : index
    %c0_21 = arith.constant 0 : index
    %64 = vector.load %arg4[%c0_18, %c0_19, %c0_20, %c0_21] : memref<1x16x16x128xf32, #tpu.memory_space<vmem>>, vector<1x16x16x128xf32>
    %65 = vector.shape_cast %64 : vector<1x16x16x128xf32> to vector<16x16x128xf32>
    %66 = vector.shape_cast %63 : vector<16x16x128xf32> to vector<1x16x16x128xf32>
    tpu.vector_store %arg4[%c0_18, %c0_19, %c0_20, %c0_21], %66 {strides = array<i32>} : memref<1x16x16x128xf32, #tpu.memory_space<vmem>>, vector<1x16x16x128xf32>,
    %cst_22 = arith.constant dense<0.000000e+00> : vector<128xf32>
    %67 = vector.multi_reduction <add>, %62, %cst_22 [0] : vector<256x128xf32> to vector<128xf32>
    %68 = vector.shape_cast %67 : vector<128xf32> to vector<1x128xf32>
    %69 = arith.mulf %62, %62 : vector<256x128xf32>
    %cst_23 = arith.constant dense<0.000000e+00> : vector<128xf32>
    %70 = vector.multi_reduction <add>, %69, %cst_23 [0] : vector<256x128xf32> to vector<128xf32>
    %71 = vector.shape_cast %70 : vector<128xf32> to vector<1x128xf32>
    %72 = tpu.concatenate %68, %71 in 0 : vector<1x128xf32>, vector<1x128xf32> -> vector<2x128xf32>
    %c0_24 = arith.constant 0 : index
    %c0_25 = arith.constant 0 : index
    %c0_26 = arith.constant 0 : index
    %73 = vector.load %arg5[%c0_24, %c0_25, %c0_26] : memref<1x2x128xf32, #tpu.memory_space<vmem>>, vector<1x2x128xf32>
    %74 = vector.shape_cast %73 : vector<1x2x128xf32> to vector<2x128xf32>
    %75 = vector.shape_cast %72 : vector<2x128xf32> to vector<1x2x128xf32>
    tpu.vector_store %arg5[%c0_24, %c0_25, %c0_26], %75 {strides = array<i32>} : memref<1x2x128xf32, #tpu.memory_space<vmem>>, vector<1x2x128xf32>,
    return
  }
  func.func @transform_0(%arg0: i32) -> (i32, i32, i32, i32) {
    %c0_i32 = arith.constant 0 : i32
    %c0_i32_0 = arith.constant 0 : i32
    %c0_i32_1 = arith.constant 0 : i32
    %c0_i32_2 = arith.constant 0 : i32
    return %arg0, %c0_i32, %c0_i32_0, %c0_i32_1 : i32, i32, i32, i32
  }
  func.func @transform_1(%arg0: i32) -> (i32, i32, i32) {
    %c0_i32 = arith.constant 0 : i32
    %c0_i32_0 = arith.constant 0 : i32
    %c0_i32_1 = arith.constant 0 : i32
    %c0_i32_2 = arith.constant 0 : i32
    return %c0_i32, %c0_i32_0, %c0_i32_1 : i32, i32, i32
  }
  func.func @transform_2(%arg0: i32) -> (i32, i32) {
    %c0_i32 = arith.constant 0 : i32
    %c0_i32_0 = arith.constant 0 : i32
    %c0_i32_1 = arith.constant 0 : i32
    return %c0_i32, %c0_i32_0 : i32, i32
  }
  func.func @transform_3(%arg0: i32) -> (i32, i32, i32, i32) {
    %c0_i32 = arith.constant 0 : i32
    %c0_i32_0 = arith.constant 0 : i32
    %c0_i32_1 = arith.constant 0 : i32
    %c0_i32_2 = arith.constant 0 : i32
    return %arg0, %c0_i32, %c0_i32_0, %c0_i32_1 : i32, i32, i32, i32
  }
  func.func @transform_4(%arg0: i32) -> (i32, i32, i32) {
    %c0_i32 = arith.constant 0 : i32
    %c0_i32_0 = arith.constant 0 : i32
    %c0_i32_1 = arith.constant 0 : i32
    return %arg0, %c0_i32, %c0_i32_0 : i32, i32, i32
  }
}

module attributes {stable_mosaic.version = 11 : i64} {
  func.func @_conv_bn_stats_kernel(%arg0: i32, %arg1: memref<1x16x16x128xf32, #tpu.memory_space<vmem>>, %arg2: memref<1x128xf32, #tpu.memory_space<vmem>>, %arg3: memref<1x128xf32, #tpu.memory_space<vmem>>, %arg4: memref<9x128x128xf32, #tpu.memory_space<vmem>>, %arg5: memref<1x128xf32, #tpu.memory_space<vmem>>, %arg6: memref<1x16x16x128xf32, #tpu.memory_space<vmem>>, %arg7: memref<1x2x128xf32, #tpu.memory_space<vmem>>) attributes {dimension_semantics = [#tpu.dimension_semantics<parallel>], iteration_bounds = array<i64: 2>, scalar_prefetch = 0 : i64, scratch_operands = 0 : i64, tpu.core_type = #tpu.core_type<tc>, window_params = [{transform_indices = @transform_0, window_bounds = array<i64: 1, 16, 16, 128>}, {pipeline_mode = #tpu.pipeline_mode<synchronous>, transform_indices = @transform_1, window_bounds = array<i64: 1, 128>}, {pipeline_mode = #tpu.pipeline_mode<synchronous>, transform_indices = @transform_2, window_bounds = array<i64: 1, 128>}, {pipeline_mode = #tpu.pipeline_mode<synchronous>, transform_indices = @transform_3, window_bounds = array<i64: 9, 128, 128>}, {pipeline_mode = #tpu.pipeline_mode<synchronous>, transform_indices = @transform_4, window_bounds = array<i64: 1, 128>}, {transform_indices = @transform_5, window_bounds = array<i64: 1, 16, 16, 128>}, {transform_indices = @transform_6, window_bounds = array<i64: 1, 2, 128>}]} {
    %c0 = arith.constant 0 : index
    %c0_0 = arith.constant 0 : index
    %c0_1 = arith.constant 0 : index
    %c0_2 = arith.constant 0 : index
    %0 = vector.load %arg1[%c0, %c0_0, %c0_1, %c0_2] : memref<1x16x16x128xf32, #tpu.memory_space<vmem>>, vector<1x16x16x128xf32>
    %1 = vector.shape_cast %0 : vector<1x16x16x128xf32> to vector<16x16x128xf32>
    %c0_3 = arith.constant 0 : index
    %c0_4 = arith.constant 0 : index
    %2 = vector.load %arg2[%c0_3, %c0_4] : memref<1x128xf32, #tpu.memory_space<vmem>>, vector<1x128xf32>
    %3 = vector.shape_cast %2 : vector<1x128xf32> to vector<1x1x128xf32>
    %4 = vector.broadcast %3 : vector<1x1x128xf32> to vector<16x16x128xf32>
    %5 = arith.mulf %1, %4 : vector<16x16x128xf32>
    %c0_5 = arith.constant 0 : index
    %c0_6 = arith.constant 0 : index
    %6 = vector.load %arg3[%c0_5, %c0_6] : memref<1x128xf32, #tpu.memory_space<vmem>>, vector<1x128xf32>
    %7 = vector.shape_cast %6 : vector<1x128xf32> to vector<1x1x128xf32>
    %8 = vector.broadcast %7 : vector<1x1x128xf32> to vector<16x16x128xf32>
    %9 = arith.addf %5, %8 : vector<16x16x128xf32>
    %cst = arith.constant 0.000000e+00 : f32
    %10 = vector.broadcast %cst : f32 to vector<16x16x128xf32>
    %11 = arith.maximumf %9, %10 : vector<16x16x128xf32>
    %cst_7 = arith.constant 0.000000e+00 : f32
    %12 = vector.broadcast %cst_7 : f32 to vector<16x1x128xf32>
    %cst_8 = arith.constant 0.000000e+00 : f32
    %13 = vector.broadcast %cst_8 : f32 to vector<1x18x128xf32>
    %14 = tpu.concatenate %12, %11, %12 in 1 : vector<16x1x128xf32>, vector<16x16x128xf32>, vector<16x1x128xf32> -> vector<16x18x128xf32>
    %15 = tpu.concatenate %13, %14, %13 in 0 : vector<1x18x128xf32>, vector<16x18x128xf32>, vector<1x18x128xf32> -> vector<18x18x128xf32>
    %16 = vector.extract_strided_slice %15 {offsets = [0, 0, 0], sizes = [16, 16, 128], strides = [1, 1, 1]} : vector<18x18x128xf32> to vector<16x16x128xf32>
    %17 = vector.extract_strided_slice %15 {offsets = [0, 1, 0], sizes = [16, 16, 128], strides = [1, 1, 1]} : vector<18x18x128xf32> to vector<16x16x128xf32>
    %18 = vector.extract_strided_slice %15 {offsets = [0, 2, 0], sizes = [16, 16, 128], strides = [1, 1, 1]} : vector<18x18x128xf32> to vector<16x16x128xf32>
    %19 = vector.extract_strided_slice %15 {offsets = [1, 0, 0], sizes = [16, 16, 128], strides = [1, 1, 1]} : vector<18x18x128xf32> to vector<16x16x128xf32>
    %20 = vector.extract_strided_slice %15 {offsets = [1, 1, 0], sizes = [16, 16, 128], strides = [1, 1, 1]} : vector<18x18x128xf32> to vector<16x16x128xf32>
    %21 = vector.extract_strided_slice %15 {offsets = [1, 2, 0], sizes = [16, 16, 128], strides = [1, 1, 1]} : vector<18x18x128xf32> to vector<16x16x128xf32>
    %22 = vector.extract_strided_slice %15 {offsets = [2, 0, 0], sizes = [16, 16, 128], strides = [1, 1, 1]} : vector<18x18x128xf32> to vector<16x16x128xf32>
    %23 = vector.extract_strided_slice %15 {offsets = [2, 1, 0], sizes = [16, 16, 128], strides = [1, 1, 1]} : vector<18x18x128xf32> to vector<16x16x128xf32>
    %24 = vector.extract_strided_slice %15 {offsets = [2, 2, 0], sizes = [16, 16, 128], strides = [1, 1, 1]} : vector<18x18x128xf32> to vector<16x16x128xf32>
    %25 = tpu.concatenate %16, %17, %18, %19, %20, %21, %22, %23, %24 in 2 : vector<16x16x128xf32>, vector<16x16x128xf32>, vector<16x16x128xf32>, vector<16x16x128xf32>, vector<16x16x128xf32>, vector<16x16x128xf32>, vector<16x16x128xf32>, vector<16x16x128xf32>, vector<16x16x128xf32> -> vector<16x16x1152xf32>
    %26 = vector.shape_cast %25 : vector<16x16x1152xf32> to vector<256x1152xf32>
    %c0_9 = arith.constant 0 : index
    %c0_10 = arith.constant 0 : index
    %c0_11 = arith.constant 0 : index
    %27 = vector.load %arg4[%c0_9, %c0_10, %c0_11] : memref<9x128x128xf32, #tpu.memory_space<vmem>>, vector<9x128x128xf32>
    %28 = vector.shape_cast %27 : vector<9x128x128xf32> to vector<1152x128xf32>
    %cst_12 = arith.constant dense<0.000000e+00> : vector<256x128xf32>
    %29 = tpu.matmul %26, %28, %cst_12 {dimension_numbers = #tpu.dot_dimension_numbers<[1], [0], [0], [1], [0, 0, 1, 1], [], []>} : vector<256x1152xf32>, vector<1152x128xf32>, vector<256x128xf32> -> vector<256x128xf32>
    %c0_13 = arith.constant 0 : index
    %c0_14 = arith.constant 0 : index
    %30 = vector.load %arg5[%c0_13, %c0_14] : memref<1x128xf32, #tpu.memory_space<vmem>>, vector<1x128xf32>
    %31 = vector.broadcast %30 : vector<1x128xf32> to vector<256x128xf32>
    %32 = arith.addf %29, %31 : vector<256x128xf32>
    %33 = vector.shape_cast %32 : vector<256x128xf32> to vector<16x16x128xf32>
    %c0_15 = arith.constant 0 : index
    %c0_16 = arith.constant 0 : index
    %c0_17 = arith.constant 0 : index
    %c0_18 = arith.constant 0 : index
    %34 = vector.load %arg6[%c0_15, %c0_16, %c0_17, %c0_18] : memref<1x16x16x128xf32, #tpu.memory_space<vmem>>, vector<1x16x16x128xf32>
    %35 = vector.shape_cast %34 : vector<1x16x16x128xf32> to vector<16x16x128xf32>
    %36 = vector.shape_cast %33 : vector<16x16x128xf32> to vector<1x16x16x128xf32>
    tpu.vector_store %arg6[%c0_15, %c0_16, %c0_17, %c0_18], %36 {strides = array<i32>} : memref<1x16x16x128xf32, #tpu.memory_space<vmem>>, vector<1x16x16x128xf32>,
    %cst_19 = arith.constant dense<0.000000e+00> : vector<128xf32>
    %37 = vector.multi_reduction <add>, %32, %cst_19 [0] : vector<256x128xf32> to vector<128xf32>
    %38 = vector.shape_cast %37 : vector<128xf32> to vector<1x128xf32>
    %39 = arith.mulf %32, %32 : vector<256x128xf32>
    %cst_20 = arith.constant dense<0.000000e+00> : vector<128xf32>
    %40 = vector.multi_reduction <add>, %39, %cst_20 [0] : vector<256x128xf32> to vector<128xf32>
    %41 = vector.shape_cast %40 : vector<128xf32> to vector<1x128xf32>
    %42 = tpu.concatenate %38, %41 in 0 : vector<1x128xf32>, vector<1x128xf32> -> vector<2x128xf32>
    %c0_21 = arith.constant 0 : index
    %c0_22 = arith.constant 0 : index
    %c0_23 = arith.constant 0 : index
    %43 = vector.load %arg7[%c0_21, %c0_22, %c0_23] : memref<1x2x128xf32, #tpu.memory_space<vmem>>, vector<1x2x128xf32>
    %44 = vector.shape_cast %43 : vector<1x2x128xf32> to vector<2x128xf32>
    %45 = vector.shape_cast %42 : vector<2x128xf32> to vector<1x2x128xf32>
    tpu.vector_store %arg7[%c0_21, %c0_22, %c0_23], %45 {strides = array<i32>} : memref<1x2x128xf32, #tpu.memory_space<vmem>>, vector<1x2x128xf32>,
    return
  }
  func.func @transform_0(%arg0: i32) -> (i32, i32, i32, i32) {
    %c0_i32 = arith.constant 0 : i32
    %c0_i32_0 = arith.constant 0 : i32
    %c0_i32_1 = arith.constant 0 : i32
    %c0_i32_2 = arith.constant 0 : i32
    return %arg0, %c0_i32, %c0_i32_0, %c0_i32_1 : i32, i32, i32, i32
  }
  func.func @transform_1(%arg0: i32) -> (i32, i32) {
    %c0_i32 = arith.constant 0 : i32
    %c0_i32_0 = arith.constant 0 : i32
    %c0_i32_1 = arith.constant 0 : i32
    return %c0_i32, %c0_i32_0 : i32, i32
  }
  func.func @transform_2(%arg0: i32) -> (i32, i32) {
    %c0_i32 = arith.constant 0 : i32
    %c0_i32_0 = arith.constant 0 : i32
    %c0_i32_1 = arith.constant 0 : i32
    return %c0_i32, %c0_i32_0 : i32, i32
  }
  func.func @transform_3(%arg0: i32) -> (i32, i32, i32) {
    %c0_i32 = arith.constant 0 : i32
    %c0_i32_0 = arith.constant 0 : i32
    %c0_i32_1 = arith.constant 0 : i32
    %c0_i32_2 = arith.constant 0 : i32
    return %c0_i32, %c0_i32_0, %c0_i32_1 : i32, i32, i32
  }
  func.func @transform_4(%arg0: i32) -> (i32, i32) {
    %c0_i32 = arith.constant 0 : i32
    %c0_i32_0 = arith.constant 0 : i32
    %c0_i32_1 = arith.constant 0 : i32
    return %c0_i32, %c0_i32_0 : i32, i32
  }
  func.func @transform_5(%arg0: i32) -> (i32, i32, i32, i32) {
    %c0_i32 = arith.constant 0 : i32
    %c0_i32_0 = arith.constant 0 : i32
    %c0_i32_1 = arith.constant 0 : i32
    %c0_i32_2 = arith.constant 0 : i32
    return %arg0, %c0_i32, %c0_i32_0, %c0_i32_1 : i32, i32, i32, i32
  }
  func.func @transform_6(%arg0: i32) -> (i32, i32, i32) {
    %c0_i32 = arith.constant 0 : i32
    %c0_i32_0 = arith.constant 0 : i32
    %c0_i32_1 = arith.constant 0 : i32
    return %arg0, %c0_i32, %c0_i32_0 : i32, i32, i32
  }
}

module attributes {stable_mosaic.version = 11 : i64} {
  func.func @_affine_relu_kernel(%arg0: i32, %arg1: memref<1x16x16x128xf32, #tpu.memory_space<vmem>>, %arg2: memref<1x128xf32, #tpu.memory_space<vmem>>, %arg3: memref<1x128xf32, #tpu.memory_space<vmem>>, %arg4: memref<1x16x16x128xf32, #tpu.memory_space<vmem>>) attributes {dimension_semantics = [#tpu.dimension_semantics<parallel>], iteration_bounds = array<i64: 2>, scalar_prefetch = 0 : i64, scratch_operands = 0 : i64, tpu.core_type = #tpu.core_type<tc>, window_params = [{transform_indices = @transform_0, window_bounds = array<i64: 1, 16, 16, 128>}, {pipeline_mode = #tpu.pipeline_mode<synchronous>, transform_indices = @transform_1, window_bounds = array<i64: 1, 128>}, {pipeline_mode = #tpu.pipeline_mode<synchronous>, transform_indices = @transform_2, window_bounds = array<i64: 1, 128>}, {transform_indices = @transform_3, window_bounds = array<i64: 1, 16, 16, 128>}]} {
    %c0 = arith.constant 0 : index
    %c0_0 = arith.constant 0 : index
    %c0_1 = arith.constant 0 : index
    %c0_2 = arith.constant 0 : index
    %0 = vector.load %arg1[%c0, %c0_0, %c0_1, %c0_2] : memref<1x16x16x128xf32, #tpu.memory_space<vmem>>, vector<1x16x16x128xf32>
    %1 = vector.shape_cast %0 : vector<1x16x16x128xf32> to vector<16x16x128xf32>
    %c0_3 = arith.constant 0 : index
    %c0_4 = arith.constant 0 : index
    %2 = vector.load %arg2[%c0_3, %c0_4] : memref<1x128xf32, #tpu.memory_space<vmem>>, vector<1x128xf32>
    %3 = vector.shape_cast %2 : vector<1x128xf32> to vector<1x1x128xf32>
    %4 = vector.broadcast %3 : vector<1x1x128xf32> to vector<16x16x128xf32>
    %5 = arith.mulf %1, %4 : vector<16x16x128xf32>
    %c0_5 = arith.constant 0 : index
    %c0_6 = arith.constant 0 : index
    %6 = vector.load %arg3[%c0_5, %c0_6] : memref<1x128xf32, #tpu.memory_space<vmem>>, vector<1x128xf32>
    %7 = vector.shape_cast %6 : vector<1x128xf32> to vector<1x1x128xf32>
    %8 = vector.broadcast %7 : vector<1x1x128xf32> to vector<16x16x128xf32>
    %9 = arith.addf %5, %8 : vector<16x16x128xf32>
    %cst = arith.constant 0.000000e+00 : f32
    %10 = vector.broadcast %cst : f32 to vector<16x16x128xf32>
    %11 = arith.maximumf %9, %10 : vector<16x16x128xf32>
    %c0_7 = arith.constant 0 : index
    %c0_8 = arith.constant 0 : index
    %c0_9 = arith.constant 0 : index
    %c0_10 = arith.constant 0 : index
    %12 = vector.load %arg4[%c0_7, %c0_8, %c0_9, %c0_10] : memref<1x16x16x128xf32, #tpu.memory_space<vmem>>, vector<1x16x16x128xf32>
    %13 = vector.shape_cast %12 : vector<1x16x16x128xf32> to vector<16x16x128xf32>
    %14 = vector.shape_cast %11 : vector<16x16x128xf32> to vector<1x16x16x128xf32>
    tpu.vector_store %arg4[%c0_7, %c0_8, %c0_9, %c0_10], %14 {strides = array<i32>} : memref<1x16x16x128xf32, #tpu.memory_space<vmem>>, vector<1x16x16x128xf32>,
    return
  }
  func.func @transform_0(%arg0: i32) -> (i32, i32, i32, i32) {
    %c0_i32 = arith.constant 0 : i32
    %c0_i32_0 = arith.constant 0 : i32
    %c0_i32_1 = arith.constant 0 : i32
    %c0_i32_2 = arith.constant 0 : i32
    return %arg0, %c0_i32, %c0_i32_0, %c0_i32_1 : i32, i32, i32, i32
  }
  func.func @transform_1(%arg0: i32) -> (i32, i32) {
    %c0_i32 = arith.constant 0 : i32
    %c0_i32_0 = arith.constant 0 : i32
    %c0_i32_1 = arith.constant 0 : i32
    return %c0_i32, %c0_i32_0 : i32, i32
  }
  func.func @transform_2(%arg0: i32) -> (i32, i32) {
    %c0_i32 = arith.constant 0 : i32
    %c0_i32_0 = arith.constant 0 : i32
    %c0_i32_1 = arith.constant 0 : i32
    return %c0_i32, %c0_i32_0 : i32, i32
  }
  func.func @transform_3(%arg0: i32) -> (i32, i32, i32, i32) {
    %c0_i32 = arith.constant 0 : i32
    %c0_i32_0 = arith.constant 0 : i32
    %c0_i32_1 = arith.constant 0 : i32
    %c0_i32_2 = arith.constant 0 : i32
    return %arg0, %c0_i32, %c0_i32_0, %c0_i32_1 : i32, i32, i32, i32
  }
}

</mosaic_0001>

<bundles_post_ra>
// kernel: double_conv.5
= control target key start
LH: loop header
LB: loop body
LE: loop exit
PB: predicated region body
PF: predicated region fallthrough
CT: control target
= control target key end

     0   :  { %s451_s12 = smov 0   ;;  %s610_s0 = inlined_call_operand.vmem [shape: f32[2,16,16,128], index: 0, kind: input, shape index: {}]   ;;  %s611_s1 = inlined_call_operand.vmem [shape: f32[1,128], index: 1, kind: input, shape index: {}]   ;;  %s612_s2 = inlined_call_operand.vmem [shape: f32[1,128], index: 2, kind: input, shape index: {}]   ;;  %s613_s3 = inlined_call_operand.vmem [shape: f32[2,16,16,128], index: 3, kind: output, shape index: {}]  }
   0x1 LB: > { %s400_s13 = sadd.s32 4294967295, %s429_s12   ;;  %p404_p0 = scmp.ge.s32.totalorder %s429_s12, 1  ;;  %s429_s12 = sphi %s451_s12, %s13_s12  }
   0x2   : > { %p137_p1 = scmp.lt.s32.totalorder %s429_s12, 3 }
   0x4   : > { %p138_p2 = pnand %p404_p0, %p137_p1 }
   0x5   : > { %p161_p3 = scmp.lt.s32.totalorder (!%p138_p2), %s400_s13, 1 }
   0x6   : > { %141 = sbr.rel (%p138_p2) target bundleno = 44 (0x2c), region = 32 }
   0xb   : > { %s615_s13 = smov (!%p161_p3, %s400_s13), 1  ;;  %v462_v0 = vld [vmem:[%s611_s1] ss:$0 sm:$0xff] }
   0xc   : > { %s413_s14 = sshll.u32 %s615_s13, 8  ;;  %v472_v1 = vld [vmem:[%s612_s2] ss:$0 sm:$0xff] }
   0xd   : > { %s467_s19 = scalar_lea.vmem %s610_s0, %s413_s14  ;;  %s495_s24 = scalar_lea.vmem %s613_s3, %s413_s14 }
   0xe   : > { %v171_v2 = vld [vmem:[%s467_s19] sm:$0xff]  ;;  %v172_v3 = vld [vmem:[%s467_s19 + $0x8] sm:$0xff]  ;;  %v173_v4 = vld [vmem:[%s467_s19 + $0x10] sm:$0xff] }
   0xf   : > { %v210_v5 = vmul.f32 %v462_v0, %v171_v2  ;;  %v211_v6 = vmul.f32 %v462_v0, %v172_v3  ;;  %v212_v7 = vmul.f32 %v462_v0, %v173_v4  ;;  %v174_v8 = vld [vmem:[%s467_s19 + $0x18] sm:$0xff]  ;;  %v175_v9 = vld [vmem:[%s467_s19 + $0x20] sm:$0xff]  ;;  %v176_v10 = vld [vmem:[%s467_s19 + $0x28] sm:$0xff] }
  0x10   : > { %v213_v11 = vmul.f32 %v462_v0, %v174_v8  ;;  %v214_v12 = vmul.f32 %v462_v0, %v175_v9  ;;  %v215_v13 = vmul.f32 %v462_v0, %v176_v10  ;;  %v177_v14 = vld [vmem:[%s467_s19 + $0x30] sm:$0xff]  ;;  %v178_v15 = vld [vmem:[%s467_s19 + $0x38] sm:$0xff]  ;;  %v179_v24 = vld [vmem:[%s467_s19 + $0x40] sm:$0xff] }
  0x11   : > { %v249_v16 = vadd.f32 %v472_v1, %v210_v5  ;;  %v250_v17 = vadd.f32 %v472_v1, %v211_v6  ;;  %v251_v18 = vadd.f32 %v472_v1, %v212_v7  ;;  %v216_v19 = vmul.f32 %v462_v0, %v177_v14  ;;  %v180_v25 = vld [vmem:[%s467_s19 + $0x48] sm:$0xff]  ;;  %v181_v26 = vld [vmem:[%s467_s19 + $0x50] sm:$0xff]  ;;  %v182_v31 = vld [vmem:[%s467_s19 + $0x58] sm:$0xff] }
  0x12   : > { %v252_v20 = vadd.f32 %v472_v1, %v213_v11  ;;  %v253_v21 = vadd.f32 %v472_v1, %v214_v12  ;;  %v254_v22 = vadd.f32 %v472_v1, %v215_v13  ;;  %v217_v23 = vmul.f32 %v462_v0, %v178_v15  ;;  %v183_v32 = vld [vmem:[%s467_s19 + $0x60] sm:$0xff]  ;;  %v184_v33 = vld [vmem:[%s467_s19 + $0x68] sm:$0xff]  ;;  %v185_v38 = vld [vmem:[%s467_s19 + $0x70] sm:$0xff] }
  0x13   : > { %v281_v27 = vmax.f32 %v249_v16, 0.0  ;;  %v282_v28 = vmax.f32 %v250_v17, 0.0  ;;  %v283_v29 = vmax.f32 %v251_v18, 0.0  ;;  %v255_v30 = vadd.f32 %v472_v1, %v216_v19  ;;  %v186_v43 = vld [vmem:[%s467_s19 + $0x78] sm:$0xff]  ;;  %v187_v56 = vld [vmem:[%s467_s19 + $0x80] sm:$0xff]  ;;  %v188_v57 = vld [vmem:[%s467_s19 + $0x88] sm:$0xff] }
  0x14   : > { %v284_v34 = vmax.f32 %v252_v20, 0.0  ;;  %v285_v35 = vmax.f32 %v253_v21, 0.0  ;;  %v286_v36 = vmax.f32 %v254_v22, 0.0  ;;  %v256_v37 = vadd.f32 %v472_v1, %v217_v23  ;;  %v189_v58 = vld [vmem:[%s467_s19 + $0x90] sm:$0xff]  ;;  %v190_v63 = vld [vmem:[%s467_s19 + $0x98] sm:$0xff]  ;;  %v191_v2 = vld [vmem:[%s467_s19 + $0xa0] sm:$0xff] }
  0x15   : > { %313 = vst [vmem:[%s495_s24] sm:$0xff] %v281_v27  ;;  %314 = vst [vmem:[%s495_s24 + $0x8] sm:$0xff] %v282_v28  ;;  %v287_v39 = vmax.f32 %v255_v30, 0.0  ;;  %v218_v40 = vmul.f32 %v462_v0, %v179_v24  ;;  %v219_v41 = vmul.f32 %v462_v0, %v180_v25  ;;  %v220_v42 = vmul.f32 %v462_v0, %v181_v26  ;;  %v192_v3 = vld [vmem:[%s467_s19 + $0xa8] sm:$0xff]  ;;  %v193_v8 = vld [vmem:[%s467_s19 + $0xb0] sm:$0xff] }
  0x16   : > { %315 = vst [vmem:[%s495_s24 + $0x10] sm:$0xff] %v283_v29  ;;  %316 = vst [vmem:[%s495_s24 + $0x18] sm:$0xff] %v284_v34  ;;  %v288_v44 = vmax.f32 %v256_v37, 0.0  ;;  %v221_v45 = vmul.f32 %v462_v0, %v182_v31  ;;  %v222_v46 = vmul.f32 %v462_v0, %v183_v32  ;;  %v223_v47 = vmul.f32 %v462_v0, %v184_v33  ;;  %v194_v13 = vld [vmem:[%s467_s19 + $0xb8] sm:$0xff]  ;;  %v195_v26 = vld [vmem:[%s467_s19 + $0xc0] sm:$0xff] }
  0x17   : > { %317 = vst [vmem:[%s495_s24 + $0x20] sm:$0xff] %v285_v35  ;;  %318 = vst [vmem:[%s495_s24 + $0x28] sm:$0xff] %v286_v36  ;;  %v257_v48 = vadd.f32 %v472_v1, %v218_v40  ;;  %v258_v49 = vadd.f32 %v472_v1, %v219_v41  ;;  %v259_v50 = vadd.f32 %v472_v1, %v220_v42  ;;  %v196_v27 = vld [vmem:[%s467_s19 + $0xc8] sm:$0xff]  ;;  %v197_v28 = vld [vmem:[%s467_s19 + $0xd0] sm:$0xff] }
  0x18   : > { %319 = vst [vmem:[%s495_s24 + $0x30] sm:$0xff] %v287_v39  ;;  %v224_v51 = vmul.f32 %v462_v0, %v185_v38  ;;  %320 = vst [vmem:[%s495_s24 + $0x38] sm:$0xff] %v288_v44  ;;  %v260_v52 = vadd.f32 %v472_v1, %v221_v45  ;;  %v261_v53 = vadd.f32 %v472_v1, %v222_v46  ;;  %v198_v33 = vld [vmem:[%s467_s19 + $0xd8] sm:$0xff]  ;;  %v199_v34 = vld [vmem:[%s467_s19 + $0xe0] sm:$0xff] }
  0x19   : > { %v262_v54 = vadd.f32 %v472_v1, %v223_v47  ;;  %v225_v55 = vmul.f32 %v462_v0, %v186_v43  ;;  %v289_v59 = vmax.f32 %v257_v48, 0.0  ;;  %v290_v60 = vmax.f32 %v258_v49, 0.0  ;;  %v200_v35 = vld [vmem:[%s467_s19 + $0xe8] sm:$0xff]  ;;  %v201_v40 = vld [vmem:[%s467_s19 + $0xf0] sm:$0xff]  ;;  %v202_v45 = vld [vmem:[%s467_s19 + $0xf8] sm:$0xff] }
  0x1a   : > { %v291_v61 = vmax.f32 %v259_v50, 0.0  ;;  %v263_v62 = vadd.f32 %v472_v1, %v224_v51  ;;  %v292_v4 = vmax.f32 %v260_v52, 0.0  ;;  %v293_v5 = vmax.f32 %v261_v53, 0.0 }
  0x1b   : > { %v294_v6 = vmax.f32 %v262_v54, 0.0  ;;  %v264_v7 = vadd.f32 %v472_v1, %v225_v55  ;;  %321 = vst [vmem:[%s495_s24 + $0x40] sm:$0xff] %v289_v59  ;;  %322 = vst [vmem:[%s495_s24 + $0x48] sm:$0xff] %v290_v60  ;;  %v226_v10 = vmul.f32 %v462_v0, %v187_v56  ;;  %v227_v11 = vmul.f32 %v462_v0, %v188_v57 }
  0x1c   : > { %323 = vst [vmem:[%s495_s24 + $0x50] sm:$0xff] %v291_v61  ;;  %v295_v9 = vmax.f32 %v263_v62, 0.0  ;;  %v228_v12 = vmul.f32 %v462_v0, %v189_v58  ;;  %324 = vst [vmem:[%s495_s24 + $0x58] sm:$0xff] %v292_v4  ;;  %v229_v15 = vmul.f32 %v462_v0, %v190_v63  ;;  %v230_v16 = vmul.f32 %v462_v0, %v191_v2 }
  0x1d   : > { %325 = vst [vmem:[%s495_s24 + $0x60] sm:$0xff] %v293_v5  ;;  %326 = vst [vmem:[%s495_s24 + $0x68] sm:$0xff] %v294_v6  ;;  %v296_v14 = vmax.f32 %v264_v7, 0.0  ;;  %v231_v17 = vmul.f32 %v462_v0, %v192_v3  ;;  %v265_v18 = vadd.f32 %v472_v1, %v226_v10  ;;  %v266_v19 = vadd.f32 %v472_v1, %v227_v11 }
  0x1e   : > { %327 = vst [vmem:[%s495_s24 + $0x70] sm:$0xff] %v295_v9  ;;  %v267_v20 = vadd.f32 %v472_v1, %v228_v12  ;;  %v232_v21 = vmul.f32 %v462_v0, %v193_v8  ;;  %v268_v22 = vadd.f32 %v472_v1, %v229_v15  ;;  %v269_v23 = vadd.f32 %v472_v1, %v230_v16 }
  0x1f   : > { %328 = vst [vmem:[%s495_s24 + $0x78] sm:$0xff] %v296_v14  ;;  %v270_v24 = vadd.f32 %v472_v1, %v231_v17  ;;  %v233_v25 = vmul.f32 %v462_v0, %v194_v13  ;;  %v297_v29 = vmax.f32 %v265_v18, 0.0  ;;  %v298_v30 = vmax.f32 %v266_v19, 0.0 }
  0x20   : > { %v299_v31 = vmax.f32 %v267_v20, 0.0  ;;  %v271_v32 = vadd.f32 %v472_v1, %v232_v21  ;;  %v300_v36 = vmax.f32 %v268_v22, 0.0  ;;  %v301_v37 = vmax.f32 %v269_v23, 0.0 }
  0x21   : > { %v302_v38 = vmax.f32 %v270_v24, 0.0  ;;  %v272_v39 = vadd.f32 %v472_v1, %v233_v25  ;;  %329 = vst [vmem:[%s495_s24 + $0x80] sm:$0xff] %v297_v29  ;;  %330 = vst [vmem:[%s495_s24 + $0x88] sm:$0xff] %v298_v30  ;;  %v234_v42 = vmul.f32 %v462_v0, %v195_v26  ;;  %v235_v43 = vmul.f32 %v462_v0, %v196_v27 }
  0x22   : > { %331 = vst [vmem:[%s495_s24 + $0x90] sm:$0xff] %v299_v31  ;;  %v303_v41 = vmax.f32 %v271_v32, 0.0  ;;  %v236_v44 = vmul.f32 %v462_v0, %v197_v28  ;;  %332 = vst [vmem:[%s495_s24 + $0x98] sm:$0xff] %v300_v36  ;;  %v237_v47 = vmul.f32 %v462_v0, %v198_v33  ;;  %v238_v48 = vmul.f32 %v462_v0, %v199_v34 }
  0x23   : > { %333 = vst [vmem:[%s495_s24 + $0xa0] sm:$0xff] %v301_v37  ;;  %334 = vst [vmem:[%s495_s24 + $0xa8] sm:$0xff] %v302_v38  ;;  %v304_v46 = vmax.f32 %v272_v39, 0.0  ;;  %v239_v49 = vmul.f32 %v462_v0, %v200_v35  ;;  %v273_v50 = vadd.f32 %v472_v1, %v234_v42  ;;  %v274_v51 = vadd.f32 %v472_v1, %v235_v43 }
  0x24   : > { %335 = vst [vmem:[%s495_s24 + $0xb0] sm:$0xff] %v303_v41  ;;  %v275_v52 = vadd.f32 %v472_v1, %v236_v44  ;;  %v240_v53 = vmul.f32 %v462_v0, %v201_v40  ;;  %v276_v54 = vadd.f32 %v472_v1, %v237_v47  ;;  %v277_v55 = vadd.f32 %v472_v1, %v238_v48 }
  0x25   : > { %336 = vst [vmem:[%s495_s24 + $0xb8] sm:$0xff] %v304_v46  ;;  %v278_v56 = vadd.f32 %v472_v1, %v239_v49  ;;  %v241_v57 = vmul.f32 %v462_v0, %v202_v45  ;;  %v305_v58 = vmax.f32 %v273_v50, 0.0  ;;  %v306_v59 = vmax.f32 %v274_v51, 0.0 }
  0x26   : > { %v307_v60 = vmax.f32 %v275_v52, 0.0  ;;  %v279_v61 = vadd.f32 %v472_v1, %v240_v53  ;;  %v308_v62 = vmax.f32 %v276_v54, 0.0  ;;  %v309_v63 = vmax.f32 %v277_v55, 0.0 }
  0x27   : > { %v310_v2 = vmax.f32 %v278_v56, 0.0  ;;  %v280_v3 = vadd.f32 %v472_v1, %v241_v57  ;;  %337 = vst [vmem:[%s495_s24 + $0xc0] sm:$0xff] %v305_v58  ;;  %338 = vst [vmem:[%s495_s24 + $0xc8] sm:$0xff] %v306_v59 }
  0x28   : > { %339 = vst [vmem:[%s495_s24 + $0xd0] sm:$0xff] %v307_v60  ;;  %v311_v4 = vmax.f32 %v279_v61, 0.0  ;;  %340 = vst [vmem:[%s495_s24 + $0xd8] sm:$0xff] %v308_v62 }
  0x29   : > { %341 = vst [vmem:[%s495_s24 + $0xe0] sm:$0xff] %v309_v63  ;;  %342 = vst [vmem:[%s495_s24 + $0xe8] sm:$0xff] %v310_v2  ;;  %v312_v0 = vmax.f32 %v280_v3, 0.0 }
  0x2a   : > { %343 = vst [vmem:[%s495_s24 + $0xf0] sm:$0xff] %v311_v4 }
  0x2b   : > { %344 = vst [vmem:[%s495_s24 + $0xf8] sm:$0xff] %v312_v0 }
  0x2c PF: > { %s13_s12 = sadd.s32 1, %s429_s12  }
  0x2d   : > { %p10_p4 = scmp.ge.s32.totalorder %s13_s12, 4  }
  0x2f   :  { %12 = sbr.rel (!%p10_p4) target bundleno = 1 (0x1), region = 62 }

// kernel: double_conv.4
= control target key start
LH: loop header
LB: loop body
LE: loop exit
PB: predicated region body
PF: predicated region fallthrough
CT: control target
= control target key end

     0   :  { %s2657_s21 = smov 0   ;;  %s4506_s0 = inlined_call_operand.vmem [shape: f32[2,16,16,128], index: 0, kind: input, shape index: {}]   ;;  %s4507_s1 = inlined_call_operand.vmem [shape: f32[1,128], index: 1, kind: input, shape index: {}]   ;;  %s4508_s2 = inlined_call_operand.vmem [shape: f32[1,128], index: 2, kind: input, shape index: {}]   ;;  %s4509_s3 = inlined_call_operand.vmem [shape: f32[9,128,128], index: 3, kind: input, shape index: {}]   ;;  %s4510_s4 = inlined_call_operand.vmem [shape: f32[1,128], index: 4, kind: input, shape index: {}]   ;;  %s4511_s5 = inlined_call_operand.vmem [shape: f32[2,16,16,128], index: 5, kind: output, shape index: {0}]   ;;  %s4512_s6 = inlined_call_operand.vmem [shape: f32[2,2,128], index: 6, kind: output, shape index: {1}]  }
   0x1 LB: > { %s2333_s22 = sadd.s32 4294967295, %s2619_s21   ;;  %p2337_p0 = scmp.ge.s32.totalorder %s2619_s21, 1  ;;  %s2619_s21 = sphi %s2657_s21, %s17_s21  }
   0x2   : > { %p215_p1 = scmp.lt.s32.totalorder %s2619_s21, 3 }
   0x4   : > { %p216_p2 = pnand %p2337_p0, %p215_p1 }
   0x6   : > { %219 = sbr.rel (%p216_p2) target bundleno = 610 (0x262), region = 40 }
   0xb   : > { %v846_v0 = vld [vmem:[%s4509_s3 + $0x78] sm:$0xff]  ;;  %v4519_v2 = vmov 0.0   ;;  %v845_v3 = vld [vmem:[%s4509_s3 + $0x70] sm:$0xff]  ;;  %v844_v5 = vld [vmem:[%s4509_s3 + $0x68] sm:$0xff]  ;;  %p249_p3 = scmp.lt.s32.totalorder %s2333_s22, 1  ;;  %vm437_vm0 = vcmask 1040384  }
   0xc   : > { %v878_v1 = vld [vmem:[%s4509_s3 + $0x178] sm:$0xff]  ;;  %982 = vmatprep.subr.mxu0 %v4519_v2  ;;  %1207 = vmatprep.subr.mxu1 %v4519_v2  ;;  %v877_v4 = vld [vmem:[%s4509_s3 + $0x170] sm:$0xff]  ;;  %v876_v6 = vld [vmem:[%s4509_s3 + $0x168] sm:$0xff]  ;;  %vm597_vm2 = vcmask 1046528   ;;  %vm706_vm3 = vcmask 1045504  }
   0xd   : > { %983 = vmatpush1.msra.mxu0 %v846_v0  ;;  %1208 = vmatpush1.msra.mxu1 %v878_v1  ;;  %v843_v7 = vld [vmem:[%s4509_s3 + $0x60] sm:$0xff]  ;;  %v842_v9 = vld [vmem:[%s4509_s3 + $0x58] sm:$0xff]  ;;  %v841_v11 = vld [vmem:[%s4509_s3 + $0x50] sm:$0xff]  ;;  %s4682_s22 = smov (!%p249_p3, %s2333_s22), 1 }
   0xe   : > { %984 = vmatprep.subr.mxu0 %v4519_v2  ;;  %1209 = vmatprep.subr.mxu1 %v4519_v2  ;;  %v875_v8 = vld [vmem:[%s4509_s3 + $0x160] sm:$0xff]  ;;  %v874_v10 = vld [vmem:[%s4509_s3 + $0x158] sm:$0xff]  ;;  %v873_v12 = vld [vmem:[%s4509_s3 + $0x150] sm:$0xff]  ;;  %s2440_s13 = sshll.u32 %s4682_s22, 8 }
   0xf   : > { %985 = vmatpush1.msra.mxu0 %v845_v3  ;;  %1210 = vmatpush1.msra.mxu1 %v877_v4  ;;  %v840_v13 = vld [vmem:[%s4509_s3 + $0x48] sm:$0xff]  ;;  %v839_v15 = vld [vmem:[%s4509_s3 + $0x40] sm:$0xff]  ;;  %v838_v17 = vld [vmem:[%s4509_s3 + $0x38] sm:$0xff]  ;;  %s2851_s26 = scalar_lea.vmem %s4506_s0, %s2440_s13  ;;  %s4320_s12 = scalar_lea.vmem %s4511_s5, %s2440_s13 }
  0x10   : > { %986 = vmatprep.subr.mxu0 %v4519_v2  ;;  %1211 = vmatprep.subr.mxu1 %v4519_v2  ;;  %v872_v14 = vld [vmem:[%s4509_s3 + $0x148] sm:$0xff]  ;;  %v871_v16 = vld [vmem:[%s4509_s3 + $0x140] sm:$0xff]  ;;  %v870_v18 = vld [vmem:[%s4509_s3 + $0x138] sm:$0xff]  ;;  %s2342_s13 = sshll.u32 %s4682_s22, 1 }
  0x11   : > { %987 = vmatpush1.msra.mxu0 %v844_v5  ;;  %1212 = vmatpush1.msra.mxu1 %v876_v6  ;;  %v837_v19 = vld [vmem:[%s4509_s3 + $0x30] sm:$0xff]  ;;  %v836_v21 = vld [vmem:[%s4509_s3 + $0x28] sm:$0xff]  ;;  %v835_v23 = vld [vmem:[%s4509_s3 + $0x20] sm:$0xff] }
  0x12   : > { %988 = vmatprep.subr.mxu0 %v4519_v2  ;;  %1213 = vmatprep.subr.mxu1 %v4519_v2  ;;  %v869_v20 = vld [vmem:[%s4509_s3 + $0x130] sm:$0xff]  ;;  %v868_v22 = vld [vmem:[%s4509_s3 + $0x128] sm:$0xff]  ;;  %v867_v24 = vld [vmem:[%s4509_s3 + $0x120] sm:$0xff] }
  0x13   : > { %989 = vmatpush1.msra.mxu0 %v843_v7  ;;  %1214 = vmatpush1.msra.mxu1 %v875_v8  ;;  %v834_v25 = vld [vmem:[%s4509_s3 + $0x18] sm:$0xff]  ;;  %v833_v27 = vld [vmem:[%s4509_s3 + $0x10] sm:$0xff]  ;;  %v832_v29 = vld [vmem:[%s4509_s3 + $0x8] sm:$0xff] }
  0x14   : > { %990 = vmatprep.subr.mxu0 %v4519_v2  ;;  %1215 = vmatprep.subr.mxu1 %v4519_v2  ;;  %v866_v26 = vld [vmem:[%s4509_s3 + $0x118] sm:$0xff]  ;;  %v865_v28 = vld [vmem:[%s4509_s3 + $0x110] sm:$0xff]  ;;  %v864_v30 = vld [vmem:[%s4509_s3 + $0x108] sm:$0xff] }
  0x15   : > { %991 = vmatpush1.msra.mxu0 %v842_v9  ;;  %1216 = vmatpush1.msra.mxu1 %v874_v10  ;;  %v831_v31 = vld [vmem:[%s4509_s3] sm:$0xff]  ;;  %v862_v33 = vld [vmem:[%s4509_s3 + $0xf8] sm:$0xff]  ;;  %v861_v35 = vld [vmem:[%s4509_s3 + $0xf0] sm:$0xff] }
  0x16   : > { %992 = vmatprep.subr.mxu0 %v4519_v2  ;;  %1217 = vmatprep.subr.mxu1 %v4519_v2  ;;  %v863_v32 = vld [vmem:[%s4509_s3 + $0x100] sm:$0xff]  ;;  %v894_v34 = vld [vmem:[%s4509_s3 + $0x1f8] sm:$0xff]  ;;  %v893_v36 = vld [vmem:[%s4509_s3 + $0x1f0] sm:$0xff] }
  0x17   : > { %993 = vmatpush1.msra.mxu0 %v841_v11  ;;  %1218 = vmatpush1.msra.mxu1 %v873_v12  ;;  %v860_v37 = vld [vmem:[%s4509_s3 + $0xe8] sm:$0xff]  ;;  %v859_v39 = vld [vmem:[%s4509_s3 + $0xe0] sm:$0xff]  ;;  %v858_v41 = vld [vmem:[%s4509_s3 + $0xd8] sm:$0xff] }
  0x18   : > { %994 = vmatprep.subr.mxu0 %v4519_v2  ;;  %1219 = vmatprep.subr.mxu1 %v4519_v2  ;;  %v892_v38 = vld [vmem:[%s4509_s3 + $0x1e8] sm:$0xff]  ;;  %v891_v40 = vld [vmem:[%s4509_s3 + $0x1e0] sm:$0xff]  ;;  %v890_v42 = vld [vmem:[%s4509_s3 + $0x1d8] sm:$0xff] }
  0x19   : > { %995 = vmatpush1.msra.mxu0 %v840_v13  ;;  %1220 = vmatpush1.msra.mxu1 %v872_v14  ;;  %v857_v43 = vld [vmem:[%s4509_s3 + $0xd0] sm:$0xff]  ;;  %v264_v45 = vld [vmem:[%s2851_s26 + $0x8] sm:$0xff]  ;;  %v263_v48 = vld [vmem:[%s2851_s26] sm:$0xff] }
  0x1a   : > { %996 = vmatprep.subr.mxu0 %v4519_v2  ;;  %1221 = vmatprep.subr.mxu1 %v4519_v2  ;;  %v889_v44 = vld [vmem:[%s4509_s3 + $0x1d0] sm:$0xff]  ;;  %v856_v46 = vld [vmem:[%s4509_s3 + $0xc8] sm:$0xff]  ;;  %v2866_v49 = vld [vmem:[%s4507_s1] ss:$0 sm:$0xff] }
  0x1b   : > { %997 = vmatpush1.msra.mxu0 %v839_v15  ;;  %1222 = vmatpush1.msra.mxu1 %v871_v16  ;;  %v888_v47 = vld [vmem:[%s4509_s3 + $0x1c8] sm:$0xff]  ;;  %v855_v50 = vld [vmem:[%s4509_s3 + $0xc0] sm:$0xff]  ;;  %v303_v52 = vmul.f32 %v2866_v49, %v264_v45  ;;  %v854_v53 = vld [vmem:[%s4509_s3 + $0xb8] sm:$0xff]  ;;  %v302_v55 = vmul.f32 %v2866_v49, %v263_v48 }
  0x1c   : > { %998 = vmatprep.subr.mxu0 %v4519_v2  ;;  %1223 = vmatprep.subr.mxu1 %v4519_v2  ;;  %v887_v51 = vld [vmem:[%s4509_s3 + $0x1c0] sm:$0xff]  ;;  %v886_v54 = vld [vmem:[%s4509_s3 + $0x1b8] sm:$0xff]  ;;  %v853_v57 = vld [vmem:[%s4509_s3 + $0xb0] sm:$0xff] }
  0x1d   : > { %999 = vmatpush1.msra.mxu0 %v838_v17  ;;  %1224 = vmatpush1.msra.mxu1 %v870_v18  ;;  %v2889_v56 = vld [vmem:[%s4508_s2] ss:$0 sm:$0xff]  ;;  %v885_v58 = vld [vmem:[%s4509_s3 + $0x1b0] sm:$0xff]  ;;  %v266_v60 = vld [vmem:[%s2851_s26 + $0x18] sm:$0xff] }
  0x1e   : > { %1000 = vmatprep.subr.mxu0 %v4519_v2  ;;  %1225 = vmatprep.subr.mxu1 %v4519_v2  ;;  %v342_v59 = vadd.f32 %v2889_v56, %v303_v52  ;;  %v852_v61 = vld [vmem:[%s4509_s3 + $0xa8] sm:$0xff]  ;;  %v341_v63 = vadd.f32 %v2889_v56, %v302_v55  ;;  %v265_v0 = vld [vmem:[%s2851_s26 + $0x10] sm:$0xff]  ;;  %v851_v1 = vld [vmem:[%s4509_s3 + $0xa0] sm:$0xff]  ;;  %v305_v5 = vmul.f32 %v2866_v49, %v266_v60 }
  0x1f   : > { %1001 = vmatpush1.msra.mxu0 %v837_v19  ;;  %1226 = vmatpush1.msra.mxu1 %v869_v20  ;;  %v884_v62 = vld [vmem:[%s4509_s3 + $0x1a8] sm:$0xff]  ;;  %v883_v3 = vld [vmem:[%s4509_s3 + $0x1a0] sm:$0xff]  ;;  %v850_v6 = vld [vmem:[%s4509_s3 + $0x98] sm:$0xff]  ;;  %v304_v9 = vmul.f32 %v2866_v49, %v265_v0  ;;  %v2951_v19 = vrot.slane %v4519_v2, 1 }
  0x20   : > { %1002 = vmatprep.subr.mxu0 %v4519_v2  ;;  %1227 = vmatprep.subr.mxu1 %v4519_v2  ;;  %v374_v4 = vmax.f32 %v342_v59, 0.0  ;;  %v882_v7 = vld [vmem:[%s4509_s3 + $0x198] sm:$0xff]  ;;  %v373_v8 = vmax.f32 %v341_v63, 0.0  ;;  %v849_v10 = vld [vmem:[%s4509_s3 + $0x90] sm:$0xff]  ;;  %v344_v13 = vadd.f32 %v2889_v56, %v305_v5  ;;  %v268_v14 = vld [vmem:[%s2851_s26 + $0x28] sm:$0xff] }
  0x21   : > { %1003 = vmatpush1.msra.mxu0 %v836_v21  ;;  %1228 = vmatpush1.msra.mxu1 %v868_v22  ;;  %v881_v11 = vld [vmem:[%s4509_s3 + $0x190] sm:$0xff]  ;;  %v848_v15 = vld [vmem:[%s4509_s3 + $0x88] sm:$0xff]  ;;  %v343_v18 = vadd.f32 %v2889_v56, %v304_v9  ;;  %4584 = vst [vmem:[#allocation2_spill] sm:$0xff] %v2951_v19  ;;  %v267_v20 = vld [vmem:[%s2851_s26 + $0x20] sm:$0xff] }
  0x22   : > { %1004 = vmatprep.subr.mxu0 %v4519_v2  ;;  %1229 = vmatprep.subr.mxu1 %v4519_v2  ;;  %v439_v12 = vrot.slane %v374_v4, 7  ;;  %v880_v16 = vld [vmem:[%s4509_s3 + $0x188] sm:$0xff]  ;;  %v2947_v17 = vrot.slane %v373_v8, 7  ;;  %v847_v21 = vld [vmem:[%s4509_s3 + $0x80] sm:$0xff]  ;;  %vm2970_vm1 = vmneg %vm437_vm0 }
  0x23   : > { %1005 = vmatpush1.msra.mxu0 %v835_v23  ;;  %1230 = vmatpush1.msra.mxu1 %v867_v24  ;;  %v376_v24 = vmax.f32 %v344_v13, 0.0  ;;  %v907_v0 = vld [vmem:[%s4509_s3 + $0x260] sm:$0xff]  ;;  %v941_v4 = vld [vmem:[%s4509_s3 + $0x370] sm:$0xff] }
  0x24   : > { %1006 = vmatprep.subr.mxu0 %v4519_v2  ;;  %1231 = vmatprep.subr.mxu1 %v4519_v2  ;;  %v2961_v22 = vsel %vm437_vm0, %v2947_v17, %v439_v12  ;;  %v534_v23 = vsel %vm437_vm0, 0.0, %v2947_v17 }
  0x25   : > { %1007 = vmatpush1.msra.mxu0 %v834_v25  ;;  %1232 = vmatpush1.msra.mxu1 %v866_v26  ;;  %v307_v25 = vmul.f32 %v2866_v49, %v268_v14  ;;  %v879_v26 = vld [vmem:[%s4509_s3 + $0x180] sm:$0xff] }
  0x26   : > { %1008 = vmatprep.subr.mxu0 %v4519_v2  ;;  %1233 = vmatprep.subr.mxu1 %v4519_v2 }
  0x27   : > { %1009 = vmatpush1.msra.mxu0 %v833_v27  ;;  %1234 = vmatpush1.msra.mxu1 %v865_v28  ;;  %v2975_v28 = vrot.slane %v4519_v2, 2 }
  0x28   : > { %1010 = vmatprep.subr.mxu0 %v4519_v2  ;;  %1235 = vmatprep.subr.mxu1 %v4519_v2 }
  0x29   : > { %1011 = vmatpush1.msra.mxu0 %v832_v29  ;;  %1236 = vmatpush1.msra.mxu1 %v864_v30  ;;  %4587 = vst [vmem:[#allocation3_spill] sm:$0xff] %v2975_v28  ;;  %v375_v29 = vmax.f32 %v343_v18, 0.0  ;;  %v306_v30 = vmul.f32 %v2866_v49, %v267_v20 }
  0x2a   : > { %1012 = vmatprep.subr.mxu0 %v4519_v2  ;;  %1237 = vmatprep.subr.mxu1 %v4519_v2 }
  0x2b   : > { %1013 = vmatpush1.msra.mxu0 %v831_v31  ;;  %1238 = vmatpush1.msra.mxu1 %v863_v32  ;;  %v600_v31 = vrot.slane %v534_v23, 1  ;;  %v601_v32 = vrot.slane %v2961_v22, 1 }
  0x2c   : > { %1014 = vmatprep.subr.mxu0 %v4519_v2  ;;  %1239 = vmatprep.subr.mxu1 %v4519_v2 }
  0x2d   : > { %1015 = vmatpush2.msra.mxu0 %v862_v33  ;;  %1240 = vmatpush2.msra.mxu1 %v894_v34  ;;  %v910_v33 = vld [vmem:[%s4509_s3 + $0x278] sm:$0xff]  ;;  %v550_v34 = vsel %vm437_vm0, %v439_v12, 0.0 }
  0x2e   : > { %1016 = vmatprep.subr.mxu0 %v4519_v2  ;;  %1241 = vmatprep.subr.mxu1 %v4519_v2  ;;  %v603_v45 = vrot.slane %v550_v34, 1  ;;  %v712_v55 = vrot.slane %v550_v34, 2  ;;  %v939_v34 = vld [vmem:[%s4509_s3 + $0x360] sm:$0xff] }
  0x2f   : > { %1017 = vmatpush2.msra.mxu0 %v861_v35  ;;  %1242 = vmatpush2.msra.mxu1 %v893_v36  ;;  %v442_v35 = vrot.slane %v376_v24, 7  ;;  %v346_v36 = vadd.f32 %v2889_v56, %v307_v25 }
  0x30   : > { %1018 = vmatprep.subr.mxu0 %v4519_v2  ;;  %1243 = vmatprep.subr.mxu1 %v4519_v2 }
  0x31   : > { %1019 = vmatpush2.msra.mxu0 %v860_v37  ;;  %1244 = vmatpush2.msra.mxu1 %v892_v38  ;;  %v270_v37 = vld [vmem:[%s2851_s26 + $0x38] sm:$0xff]  ;;  %v2995_v38 = vrot.slane %v375_v29, 7  ;;  %v378_v48 = vmax.f32 %v346_v36, 0.0 }
  0x32   : > { %1020 = vmatprep.subr.mxu0 %v4519_v2  ;;  %1245 = vmatprep.subr.mxu1 %v4519_v2 }
  0x33   : > { %1021 = vmatpush2.msra.mxu0 %v859_v39  ;;  %1246 = vmatpush2.msra.mxu1 %v891_v40  ;;  %v709_v39 = vrot.slane %v534_v23, 2  ;;  %v710_v40 = vrot.slane %v2961_v22, 2 }
  0x34   : > { %1022 = vmatprep.subr.mxu0 %v4519_v2  ;;  %1247 = vmatprep.subr.mxu1 %v4519_v2 }
  0x35   : > { %1023 = vmatpush2.msra.mxu0 %v858_v41  ;;  %1248 = vmatpush2.msra.mxu1 %v890_v42  ;;  %v345_v41 = vadd.f32 %v2889_v56, %v306_v30  ;;  %v269_v42 = vld [vmem:[%s2851_s26 + $0x30] sm:$0xff]  ;;  %v3054_v5 = vsel %vm706_vm3, %v710_v40, %v712_v55 }
  0x36   : > { %1024 = vmatprep.subr.mxu0 %v4519_v2  ;;  %1249 = vmatprep.subr.mxu1 %v4519_v2  ;;  %v308_v52 = vmul.f32 %v2866_v49, %v269_v42  ;;  %v273_v42 = vld [vmem:[%s2851_s26 + $0x50] sm:$0xff] }
  0x37   : > { %1025 = vmatpush2.msra.mxu0 %v857_v43  ;;  %1250 = vmatpush2.msra.mxu1 %v889_v44  ;;  %v909_v43 = vld [vmem:[%s4509_s3 + $0x270] sm:$0xff]  ;;  %v3005_v44 = vsel %vm597_vm2, %v600_v31, %v601_v32 }
  0x38   : > { %1026 = vmatprep.subr.mxu0 %v4519_v2  ;;  %1251 = vmatprep.subr.mxu1 %v4519_v2  ;;  %v905_v31 = vld [vmem:[%s4509_s3 + $0x250] sm:$0xff] }
  0x39   : > { %1027 = vmatpush2.msra.mxu0 %v856_v46  ;;  %1252 = vmatpush2.msra.mxu1 %v888_v47  ;;  %v3010_v46 = vsel %vm437_vm0, %v2995_v38, %v442_v35  ;;  %v535_v47 = vsel %vm437_vm0, 0.0, %v2995_v38 }
  0x3a   : > { %1028 = vmatprep.subr.mxu0 %v4519_v2  ;;  %1253 = vmatprep.subr.mxu1 %v4519_v2  ;;  %v605_v59 = vrot.slane %v535_v47, 1  ;;  %v606_v60 = vrot.slane %v3010_v46, 1  ;;  %v715_v8 = vrot.slane %v3010_v46, 2 }
  0x3b   : > { %1029 = vmatpush2.msra.mxu0 %v855_v50  ;;  %1254 = vmatpush2.msra.mxu1 %v887_v51  ;;  %v309_v50 = vmul.f32 %v2866_v49, %v270_v37  ;;  %v908_v51 = vld [vmem:[%s4509_s3 + $0x268] sm:$0xff] }
  0x3c   : > { %1030 = vmatprep.subr.mxu0 %v4519_v2  ;;  %1255 = vmatprep.subr.mxu1 %v4519_v2  ;;  %v3061_v9 = vsel %vm597_vm2, %v605_v59, %v606_v60 }
  0x3d   : > { %1031 = vmatpush2.msra.mxu0 %v854_v53  ;;  %1256 = vmatpush2.msra.mxu1 %v886_v54  ;;  %v942_v53 = vld [vmem:[%s4509_s3 + $0x378] sm:$0xff]  ;;  %v3027_v54 = vsel %vm706_vm3, %v709_v39, %v710_v40  ;;  %v348_v63 = vadd.f32 %v2889_v56, %v309_v50  ;;  %v904_v50 = vld [vmem:[%s4509_s3 + $0x248] sm:$0xff] }
  0x3e   : > { %1032 = vmatprep.subr.mxu0 %v4519_v2  ;;  %1257 = vmatprep.subr.mxu1 %v4519_v2 }
  0x3f   : > { %1033 = vmatpush2.msra.mxu0 %v853_v57  ;;  %1258 = vmatpush2.msra.mxu1 %v885_v58  ;;  %v377_v57 = vmax.f32 %v345_v41, 0.0  ;;  %v3034_v58 = vsel %vm597_vm2, %v601_v32, %v603_v45  ;;  %v380_v14 = vmax.f32 %v348_v63, 0.0 }
  0x40   : > { %1034 = vmatprep.subr.mxu0 %v4519_v2  ;;  %1259 = vmatprep.subr.mxu1 %v4519_v2 }
  0x41   : > { %1035 = vmatpush2.msra.mxu0 %v852_v61  ;;  %1260 = vmatpush2.msra.mxu1 %v884_v62  ;;  %v551_v61 = vsel %vm437_vm0, %v442_v35, 0.0  ;;  %v445_v62 = vrot.slane %v378_v48, 7  ;;  %v448_v29 = vrot.slane %v380_v14, 7 }
  0x42   : > { %1036 = vmatprep.subr.mxu0 %v4519_v2  ;;  %1261 = vmatprep.subr.mxu1 %v4519_v2  ;;  %v717_v20 = vrot.slane %v551_v61, 2 }
  0x43   : > { %1037 = vmatpush2.msra.mxu0 %v851_v1  ;;  %1262 = vmatpush2.msra.mxu1 %v883_v3  ;;  %v347_v1 = vadd.f32 %v2889_v56, %v308_v52  ;;  %v272_v3 = vld [vmem:[%s2851_s26 + $0x48] sm:$0xff]  ;;  %v938_v52 = vld [vmem:[%s4509_s3 + $0x358] sm:$0xff] }
  0x44   : > { %1038 = vmatprep.subr.mxu0 %v4519_v2  ;;  %1263 = vmatprep.subr.mxu1 %v4519_v2  ;;  %v3110_v35 = vsel %vm706_vm3, %v715_v8, %v717_v20 }
  0x45   : > { %1039 = vmatpush2.msra.mxu0 %v850_v6  ;;  %1264 = vmatpush2.msra.mxu1 %v882_v7  ;;  %v3056_v6 = vrot.slane %v377_v57, 7  ;;  %v714_v7 = vrot.slane %v535_v47, 2  ;;  %v312_v57 = vmul.f32 %v2866_v49, %v273_v42 }
  0x46   : > { %1040 = vmatprep.subr.mxu0 %v4519_v2  ;;  %1265 = vmatprep.subr.mxu1 %v4519_v2 }
  0x47   : > { %1041 = vmatpush2.msra.mxu0 %v849_v10  ;;  %1266 = vmatpush2.msra.mxu1 %v881_v11  ;;  %v608_v10 = vrot.slane %v551_v61, 1  ;;  %v271_v11 = vld [vmem:[%s2851_s26 + $0x40] sm:$0xff]  ;;  %v3067_v12 = vsel %vm437_vm0, %v3056_v6, %v445_v62  ;;  %v536_v13 = vsel %vm437_vm0, 0.0, %v3056_v6  ;;  %v3085_v18 = vsel %vm706_vm3, %v714_v7, %v715_v8  ;;  %v937_v7 = vld [vmem:[%s4509_s3 + $0x350] sm:$0xff] }
  0x48   : > { %1042 = vmatprep.subr.mxu0 %v4519_v2  ;;  %1267 = vmatprep.subr.mxu1 %v4519_v2  ;;  %v610_v24 = vrot.slane %v536_v13, 1  ;;  %v611_v25 = vrot.slane %v3067_v12, 1  ;;  %v719_v32 = vrot.slane %v536_v13, 2  ;;  %v720_v37 = vrot.slane %v3067_v12, 2 }
  0x49   : > { %1043 = vmatpush2.msra.mxu0 %v848_v15  ;;  %1268 = vmatpush2.msra.mxu1 %v880_v16  ;;  %v311_v15 = vmul.f32 %v2866_v49, %v272_v3  ;;  %v906_v16 = vld [vmem:[%s4509_s3 + $0x258] sm:$0xff]  ;;  %v3090_v23 = vsel %vm597_vm2, %v606_v60, %v608_v10  ;;  %v903_v3 = vld [vmem:[%s4509_s3 + $0x240] sm:$0xff]  ;;  %v351_v13 = vadd.f32 %v2889_v56, %v312_v57 }
  0x4a   : > { %1044 = vmatprep.subr.mxu0 %v4519_v2  ;;  %1269 = vmatprep.subr.mxu1 %v4519_v2  ;;  %v3118_v40 = vsel %vm597_vm2, %v610_v24, %v611_v25  ;;  %v902_v24 = vld [vmem:[%s4509_s3 + $0x238] sm:$0xff] }
  0x4b   : > { %1045 = vmatpush2.msra.mxu0 %v847_v21  ;;  %1046 = vmatprep.mubr.f32.mxu0 %v2951_v19  ;;  %v379_v21 = vmax.f32 %v347_v1, 0.0  ;;  %v350_v30 = vadd.f32 %v2889_v56, %v311_v15 }
  0x4c   : > { %1270 = vmatpush2.msra.mxu1 %v879_v26  ;;  %2377 = vmatprep.mubr.msk.f32.mxu1 %vm2970_vm1, %v2947_v17  ;;  %v552_v26 = vsel %vm437_vm0, %v445_v62, 0.0  ;;  %v553_v62 = vsel %vm437_vm0, %v448_v29, 0.0 }
  0x4d   : > { %1047 = vmatmul.mubr.f32.vlgmr.msra.gmra.mxu0 %v4519_v2  ;;  %1272 = vmatmul.mubr.f32.vlgmr.msra.gmra.mxu1 %v2975_v28  ;;  %v3112_v36 = vrot.slane %v379_v21, 7  ;;  %v613_v41 = vrot.slane %v552_v26, 1  ;;  %v382_v47 = vmax.f32 %v350_v30, 0.0  ;;  %v618_v15 = vrot.slane %v553_v62, 1 }
  0x4e   : > { %1432 = vmatprep.subr.mxu0 %v4519_v2  ;;  %1051 = vmatprep.mubr.f32.mxu0 %v2951_v19  ;;  %v383_v30 = vmax.f32 %v351_v13, 0.0 }
  0x4f   : > { %1433 = vmatpush1.msra.mxu0 %v910_v33  ;;  %1276 = vmatprep.mubr.f32.mxu1 %v2961_v22  ;;  %v274_v33 = vld [vmem:[%s2851_s26 + $0x58] sm:$0xff]  ;;  %v537_v45 = vsel %vm437_vm0, 0.0, %v3112_v36  ;;  %v3147_v59 = vsel %vm597_vm2, %v611_v25, %v613_v41  ;;  %v451_v63 = vrot.slane %v382_v47, 7  ;;  %v727_v25 = vrot.slane %v553_v62, 2 }
  0x50   : > { %1434 = vmatprep.subr.mxu0 %v4519_v2  ;;  %1657 = vmatprep.subr.mxu1 %v4519_v2  ;;  %v313_v48 = vmul.f32 %v2866_v49, %v274_v33  ;;  %v615_v60 = vrot.slane %v537_v45, 1  ;;  %v724_v10 = vrot.slane %v537_v45, 2  ;;  %v901_v45 = vld [vmem:[%s4509_s3 + $0x230] sm:$0xff]  ;;  %v278_v47 = vld [vmem:[%s2851_s26 + $0x78] sm:$0xff] }
  0x51   : > { %1052 = vmatmul.mubr.f32.gmra.mxu0 %v4519_v2  ;;  %1277 = vmatmul.mubr.f32.gmra.mxu1 %v2975_v28 }
  0x52   : > { %1435 = vmatpush1.msra.mxu0 %v909_v43  ;;  %1056 = vmatprep.mubr.f32.mxu0 %v3005_v44  ;;  %v3124_v43 = vsel %vm437_vm0, %v3112_v36, %v448_v29 }
  0x53   : > { %2379 = vmatprep.mubr.msk.f32.mxu1 %vm2970_vm1, %v2995_v38  ;;  %1436 = vmatprep.subr.mxu0 %v4519_v2  ;;  %v616_v61 = vrot.slane %v3124_v43, 1 }
  0x54   : > { %1437 = vmatpush1.msra.mxu0 %v908_v51  ;;  %1658 = vmatpush1.msra.mxu1 %v942_v53  ;;  %v722_v51 = vrot.slane %v552_v26, 2  ;;  %v3142_v53 = vsel %vm706_vm3, %v719_v32, %v720_v37  ;;  %v936_v26 = vld [vmem:[%s4509_s3 + $0x348] sm:$0xff] }
  0x55   : > { %2347 = vmatmul.mubr.msk.f32.gmra.mxu0 %vm2970_vm1, %v2947_v17  ;;  %1282 = vmatmul.mubr.f32.gmra.mxu1 %v3027_v54  ;;  %v940_v17 = vld [vmem:[%s4509_s3 + $0x368] sm:$0xff]  ;;  %v3175_v14 = vsel %vm597_vm2, %v615_v60, %v616_v61  ;;  %v3204_v32 = vsel %vm597_vm2, %v616_v61, %v618_v15  ;;  %v277_v61 = vld [vmem:[%s2851_s26 + $0x70] sm:$0xff] }
  0x56   : > { %1061 = vmatprep.mubr.f32.mxu0 %v3034_v58  ;;  %1286 = vmatprep.mubr.f32.mxu1 %v3010_v46  ;;  %v3158_v1 = vsel %vm706_vm3, %v720_v37, %v722_v51  ;;  %v554_v37 = vsel %vm437_vm0, %v451_v63, 0.0  ;;  %v316_v15 = vmul.f32 %v2866_v49, %v277_v61  ;;  %v898_v61 = vld [vmem:[%s4509_s3 + $0x218] sm:$0xff] }
  0x57   : > { %1438 = vmatprep.subr.mxu0 %v4519_v2  ;;  %1659 = vmatprep.subr.mxu1 %v4519_v2  ;;  %v623_v60 = vrot.slane %v554_v37, 1 }
  0x58   : > { %1439 = vmatpush1.msra.mxu0 %v907_v0  ;;  %1660 = vmatpush1.msra.mxu1 %v941_v4  ;;  %v352_v0 = vadd.f32 %v2889_v56, %v313_v48  ;;  %v276_v4 = vld [vmem:[%s2851_s26 + $0x68] sm:$0xff]  ;;  %v935_v48 = vld [vmem:[%s4509_s3 + $0x340] sm:$0xff] }
  0x59   : > { %1062 = vmatmul.mubr.f32.gmra.mxu0 %v2961_v22  ;;  %1287 = vmatmul.mubr.f32.gmra.mxu1 %v3054_v5  ;;  %v310_v22 = vmul.f32 %v2866_v49, %v271_v11  ;;  %v725_v11 = vrot.slane %v3124_v43, 2 }
  0x5a   : > { %1066 = vmatprep.mubr.f32.mxu0 %v3061_v9  ;;  %2381 = vmatprep.mubr.msk.f32.mxu1 %vm2970_vm1, %v3056_v6  ;;  %v384_v21 = vmax.f32 %v352_v0, 0.0 }
  0x5b   : > { %1440 = vmatprep.subr.mxu0 %v4519_v2  ;;  %1661 = vmatprep.subr.mxu1 %v4519_v2  ;;  %v349_v39 = vadd.f32 %v2889_v56, %v310_v22  ;;  %v315_v22 = vmul.f32 %v2866_v49, %v276_v4  ;;  %v3199_v29 = vsel %vm706_vm3, %v724_v10, %v725_v11  ;;  %v900_v4 = vld [vmem:[%s4509_s3 + $0x228] sm:$0xff]  ;;  %v934_v10 = vld [vmem:[%s4509_s3 + $0x338] sm:$0xff] }
  0x5c   : > { %1441 = vmatpush1.msra.mxu0 %v906_v16  ;;  %1662 = vmatpush1.msra.mxu1 %v940_v17  ;;  %v275_v16 = vld [vmem:[%s2851_s26 + $0x60] sm:$0xff]  ;;  %v3215_v42 = vsel %vm706_vm3, %v725_v11, %v727_v25 }
  0x5d   : > { %2349 = vmatmul.mubr.msk.f32.gmra.mxu0 %vm2970_vm1, %v2995_v38  ;;  %1292 = vmatmul.mubr.f32.gmra.mxu1 %v3085_v18  ;;  %v381_v55 = vmax.f32 %v349_v39, 0.0  ;;  %v454_v39 = vrot.slane %v384_v21, 7  ;;  %v354_v41 = vadd.f32 %v2889_v56, %v315_v22 }
  0x5e   : > { %1071 = vmatprep.mubr.f32.mxu0 %v3090_v23  ;;  %1296 = vmatprep.mubr.f32.mxu1 %v3067_v12 }
  0x5f   : > { %1442 = vmatprep.subr.mxu0 %v4519_v2  ;;  %1663 = vmatprep.subr.mxu1 %v4519_v2  ;;  %v3169_v8 = vrot.slane %v381_v55, 7  ;;  %v386_v0 = vmax.f32 %v354_v41, 0.0  ;;  %v555_v22 = vsel %vm437_vm0, %v454_v39, 0.0  ;;  %v355_v41 = vadd.f32 %v2889_v56, %v316_v15 }
  0x60   : > { %1443 = vmatpush1.msra.mxu0 %v905_v31  ;;  %1664 = vmatpush1.msra.mxu1 %v939_v34  ;;  %v314_v31 = vmul.f32 %v2866_v49, %v275_v16 }
  0x61   : > { %1072 = vmatmul.mubr.f32.gmra.mxu0 %v3010_v46  ;;  %1297 = vmatmul.mubr.f32.gmra.mxu1 %v3110_v35  ;;  %v3181_v17 = vsel %vm437_vm0, %v3169_v8, %v451_v63  ;;  %v538_v20 = vsel %vm437_vm0, 0.0, %v3169_v8 }
  0x62   : > { %1076 = vmatprep.mubr.f32.mxu0 %v3118_v40  ;;  %2383 = vmatprep.mubr.msk.f32.mxu1 %vm2970_vm1, %v3112_v36  ;;  %v620_v33 = vrot.slane %v538_v20, 1  ;;  %v621_v34 = vrot.slane %v3181_v17, 1  ;;  %v729_v51 = vrot.slane %v538_v20, 2  ;;  %v353_v55 = vadd.f32 %v2889_v56, %v314_v31  ;;  %v280_v31 = vld [vmem:[%s2851_s26 + $0x88] sm:$0xff] }
  0x63   : > { %1444 = vmatprep.subr.mxu0 %v4519_v2  ;;  %1665 = vmatprep.subr.mxu1 %v4519_v2 }
  0x64   : > { %1445 = vmatpush1.msra.mxu0 %v904_v50  ;;  %1666 = vmatpush1.msra.mxu1 %v938_v52  ;;  %v3226_v50 = vrot.slane %v383_v30, 7  ;;  %v730_v52 = vrot.slane %v3181_v17, 2  ;;  %v3232_v57 = vsel %vm597_vm2, %v620_v33, %v621_v34  ;;  %v385_v13 = vmax.f32 %v353_v55, 0.0  ;;  %v899_v30 = vld [vmem:[%s4509_s3 + $0x220] sm:$0xff]  ;;  %v933_v33 = vld [vmem:[%s4509_s3 + $0x330] sm:$0xff] }
  0x65   : > { %2351 = vmatmul.mubr.msk.f32.gmra.mxu0 %vm2970_vm1, %v3056_v6  ;;  %1302 = vmatmul.mubr.f32.gmra.mxu1 %v3142_v53  ;;  %v3261_v16 = vsel %vm597_vm2, %v621_v34, %v623_v60  ;;  %v319_v60 = vmul.f32 %v2866_v49, %v280_v31  ;;  %v282_v31 = vld [vmem:[%s2851_s26 + $0x98] sm:$0xff] }
  0x66   : > { %1081 = vmatprep.mubr.f32.mxu0 %v3147_v59  ;;  %1306 = vmatprep.mubr.f32.mxu1 %v3124_v43  ;;  %v3238_v62 = vsel %vm437_vm0, %v3226_v50, %v454_v39  ;;  %v539_v63 = vsel %vm437_vm0, 0.0, %v3226_v50  ;;  %v3256_v11 = vsel %vm706_vm3, %v729_v51, %v730_v52  ;;  %v3283_v34 = vrot.slane %v385_v13, 7 }
  0x67   : > { %1446 = vmatprep.subr.mxu0 %v4519_v2  ;;  %1667 = vmatprep.subr.mxu1 %v4519_v2  ;;  %v625_v20 = vrot.slane %v539_v63, 1  ;;  %v626_v21 = vrot.slane %v3238_v62, 1  ;;  %v735_v39 = vrot.slane %v3238_v62, 2 }
  0x68   : > { %1447 = vmatpush1.msra.mxu0 %v903_v3  ;;  %1668 = vmatpush1.msra.mxu1 %v937_v7  ;;  %v317_v3 = vmul.f32 %v2866_v49, %v278_v47  ;;  %v732_v7 = vrot.slane %v554_v37, 2  ;;  %v734_v37 = vrot.slane %v539_v63, 2  ;;  %v628_v47 = vrot.slane %v555_v22, 1 }
  0x69   : > { %1082 = vmatmul.mubr.f32.gmra.mxu0 %v3067_v12  ;;  %1307 = vmatmul.mubr.f32.gmra.mxu1 %v3158_v1  ;;  %v737_v63 = vrot.slane %v555_v22, 2 }
  0x6a   : > { %1086 = vmatprep.mubr.f32.mxu0 %v3175_v14  ;;  %2385 = vmatprep.mubr.msk.f32.mxu1 %vm2970_vm1, %v3169_v8  ;;  %v356_v25 = vadd.f32 %v2889_v56, %v317_v3  ;;  %v3313_v3 = vsel %vm706_vm3, %v734_v37, %v735_v39 }
  0x6b   : > { %1448 = vmatprep.subr.mxu0 %v4519_v2  ;;  %1669 = vmatprep.subr.mxu1 %v4519_v2 }
  0x6c   : > { %1449 = vmatpush1.msra.mxu0 %v902_v24  ;;  %1670 = vmatpush1.msra.mxu1 %v936_v26  ;;  %v457_v24 = vrot.slane %v386_v0, 7  ;;  %v3272_v26 = vsel %vm706_vm3, %v730_v52, %v732_v7  ;;  %v540_v52 = vsel %vm437_vm0, 0.0, %v3283_v34  ;;  %v388_v55 = vmax.f32 %v356_v25, 0.0  ;;  %v932_v0 = vld [vmem:[%s4509_s3 + $0x328] sm:$0xff] }
  0x6d   : > { %2353 = vmatmul.mubr.msk.f32.gmra.mxu0 %vm2970_vm1, %v3112_v36  ;;  %1312 = vmatmul.mubr.f32.gmra.mxu1 %v3199_v29  ;;  %v630_v13 = vrot.slane %v540_v52, 1  ;;  %v358_v25 = vadd.f32 %v2889_v56, %v319_v60  ;;  %v739_v37 = vrot.slane %v540_v52, 2 }
  0x6e   : > { %1091 = vmatprep.mubr.f32.mxu0 %v3204_v32  ;;  %1316 = vmatprep.mubr.f32.mxu1 %v3181_v17  ;;  %v3295_v51 = vsel %vm437_vm0, %v3283_v34, %v457_v24  ;;  %v460_v22 = vrot.slane %v388_v55, 7  ;;  %v281_v55 = vld [vmem:[%s2851_s26 + $0x90] sm:$0xff] }
  0x6f   : > { %1450 = vmatprep.subr.mxu0 %v4519_v2  ;;  %1671 = vmatprep.subr.mxu1 %v4519_v2  ;;  %4588 = vst [vmem:[#allocation4_spill] sm:$0xff] %v3295_v51  ;;  %v631_v15 = vrot.slane %v3295_v51, 1 }
  0x70   : > { %1451 = vmatpush1.msra.mxu0 %v901_v45  ;;  %1672 = vmatpush1.msra.mxu1 %v935_v48  ;;  %v3289_v45 = vsel %vm597_vm2, %v625_v20, %v626_v21  ;;  %v279_v48 = vld [vmem:[%s2851_s26 + $0x80] sm:$0xff]  ;;  %v556_v20 = vsel %vm437_vm0, %v457_v24, 0.0  ;;  %v557_v28 = vsel %vm437_vm0, %v460_v22, 0.0 }
  0x71   : > { %1092 = vmatmul.mubr.f32.gmra.mxu0 %v3124_v43  ;;  %1317 = vmatmul.mubr.f32.gmra.mxu1 %v3215_v42  ;;  %v318_v7 = vmul.f32 %v2866_v49, %v279_v48  ;;  %v931_v24 = vld [vmem:[%s4509_s3 + $0x320] sm:$0xff]  ;;  %v633_v48 = vrot.slane %v556_v20, 1 }
  0x72   : > { %1096 = vmatprep.mubr.f32.mxu0 %v3232_v57  ;;  %2387 = vmatprep.mubr.msk.f32.mxu1 %vm2970_vm1, %v3226_v50 }
  0x73   : > { %1452 = vmatprep.subr.mxu0 %v4519_v2  ;;  %1673 = vmatprep.subr.mxu1 %v4519_v2 }
  0x74   : > { %1453 = vmatpush1.msra.mxu0 %v900_v4  ;;  %1674 = vmatpush1.msra.mxu1 %v934_v10  ;;  %v387_v4 = vmax.f32 %v355_v41, 0.0  ;;  %v3318_v10 = vsel %vm597_vm2, %v626_v21, %v628_v47  ;;  %v3329_v21 = vsel %vm706_vm3, %v735_v39, %v737_v63  ;;  %v740_v41 = vrot.slane %v3295_v51, 2 }
  0x75   : > { %2355 = vmatmul.mubr.msk.f32.gmra.mxu0 %vm2970_vm1, %v3169_v8  ;;  %1322 = vmatmul.mubr.f32.gmra.mxu1 %v3256_v11  ;;  %4589 = vst [vmem:[#allocation5_spill] sm:$0xff] %v3329_v21  ;;  %v357_v39 = vadd.f32 %v2889_v56, %v318_v7  ;;  %v3346_v47 = vsel %vm597_vm2, %v630_v13, %v631_v15  ;;  %v930_v7 = vld [vmem:[%s4509_s3 + $0x318] sm:$0xff] }
  0x76   : > { %1101 = vmatprep.mubr.f32.mxu0 %v3261_v16  ;;  %1326 = vmatprep.mubr.f32.mxu1 %v3238_v62  ;;  %v321_v63 = vmul.f32 %v2866_v49, %v282_v31  ;;  %v3370_v13 = vsel %vm706_vm3, %v739_v37, %v740_v41 }
  0x77   : > { %1454 = vmatprep.subr.mxu0 %v4519_v2  ;;  %1675 = vmatprep.subr.mxu1 %v4519_v2  ;;  %4592 = vst [vmem:[#allocation8_spill] sm:$0xff] %v3370_v13 }
  0x78   : > { %1455 = vmatpush1.msra.mxu0 %v899_v30  ;;  %1676 = vmatpush1.msra.mxu1 %v933_v33  ;;  %v897_v30 = vld [vmem:[%s4509_s3 + $0x210] sm:$0xff]  ;;  %v3340_v33 = vrot.slane %v387_v4, 7  ;;  %v742_v4 = vrot.slane %v556_v20, 2  ;;  %v3375_v20 = vsel %vm597_vm2, %v631_v15, %v633_v48  ;;  %v360_v37 = vadd.f32 %v2889_v56, %v321_v63  ;;  %v284_v48 = vld [vmem:[%s2851_s26 + $0xa8] sm:$0xff] }
  0x79   : > { %1102 = vmatmul.mubr.f32.gmra.mxu0 %v3181_v17  ;;  %1327 = vmatmul.mubr.f32.gmra.mxu1 %v3272_v26  ;;  %4593 = vst [vmem:[#allocation9_spill] sm:$0xff] %v3375_v20 }
  0x7a   : > { %1106 = vmatprep.mubr.f32.mxu0 %v3289_v45  ;;  %2389 = vmatprep.mubr.msk.f32.mxu1 %vm2970_vm1, %v3283_v34  ;;  %4590 = vst [vmem:[#allocation6_spill] sm:$0xff] %v3340_v33  ;;  %v3352_v60 = vsel %vm437_vm0, %v3340_v33, %v460_v22  ;;  %v541_v52 = vsel %vm437_vm0, 0.0, %v3340_v33  ;;  %v3386_v15 = vsel %vm706_vm3, %v740_v41, %v742_v4  ;;  %v929_v22 = vld [vmem:[%s4509_s3 + $0x310] sm:$0xff]  ;;  %v638_v4 = vrot.slane %v557_v28, 1 }
  0x7b   : > { %1456 = vmatprep.subr.mxu0 %v4519_v2  ;;  %1677 = vmatprep.subr.mxu1 %v4519_v2  ;;  %4591 = vst [vmem:[#allocation7_spill] sm:$0xff] %v3352_v60  ;;  %v635_v31 = vrot.slane %v541_v52, 1  ;;  %4594 = vst [vmem:[#allocation10_spill] sm:$0xff] %v3386_v15  ;;  %v745_v63 = vrot.slane %v3352_v60, 2 }
  0x7c   : > { %1457 = vmatpush1.msra.mxu0 %v898_v61  ;;  %1678 = vmatpush1.msra.mxu1 %v932_v0  ;;  %v390_v61 = vmax.f32 %v358_v25, 0.0  ;;  %v896_v0 = vld [vmem:[%s4509_s3 + $0x208] sm:$0xff]  ;;  %v389_v25 = vmax.f32 %v357_v39, 0.0  ;;  %v895_v39 = vld [vmem:[%s4509_s3 + $0x200] sm:$0xff] }
  0x7d   : > { %2357 = vmatmul.mubr.msk.f32.gmra.mxu0 %vm2970_vm1, %v3226_v50  ;;  %1332 = vmatmul.mubr.f32.gmra.mxu1 %v3313_v3 }
  0x7e   : > { %1111 = vmatprep.mubr.f32.mxu0 %v3318_v10  ;;  %1336 = vmatprep.mubr.f32.mxu1 %v3295_v51  ;;  %v463_v19 = vrot.slane %v390_v61, 7  ;;  %v744_v61 = vrot.slane %v541_v52, 2 }
  0x7f   : > { %1458 = vmatprep.subr.mxu0 %v4519_v2  ;;  %1679 = vmatprep.subr.mxu1 %v4519_v2 }
  0x80   : > { %1459 = vmatpush1.msra.mxu0 %v897_v30  ;;  %1680 = vmatpush1.msra.mxu1 %v931_v24  ;;  %v320_v30 = vmul.f32 %v2866_v49, %v281_v55  ;;  %v636_v24 = vrot.slane %v3352_v60, 1  ;;  %v3397_v55 = vrot.slane %v389_v25, 7  ;;  %v392_v25 = vmax.f32 %v360_v37, 0.0 }
  0x81   : > { %1112 = vmatmul.mubr.f32.gmra.mxu0 %v3238_v62  ;;  %1337 = vmatmul.mubr.f32.gmra.mxu1 %v3329_v21  ;;  %v3427_v37 = vsel %vm706_vm3, %v744_v61, %v745_v63 }
  0x82   : > { %1116 = vmatprep.mubr.f32.mxu0 %v3346_v47  ;;  %2391 = vmatprep.mubr.msk.f32.mxu1 %vm2970_vm1, %v3340_v33  ;;  %4595 = vst [vmem:[#allocation11_spill] sm:$0xff] %v3397_v55  ;;  %v359_v41 = vadd.f32 %v2889_v56, %v320_v30  ;;  %v542_v52 = vsel %vm437_vm0, 0.0, %v3397_v55  ;;  %v323_v30 = vmul.f32 %v2866_v49, %v284_v48  ;;  %4598 = vst [vmem:[#allocation14_spill] sm:$0xff] %v3427_v37 }
  0x83   : > { %1460 = vmatprep.subr.mxu0 %v4519_v2  ;;  %1681 = vmatprep.subr.mxu1 %v4519_v2  ;;  %v466_v21 = vrot.slane %v392_v25, 7 }
  0x84   : > { %1461 = vmatpush1.msra.mxu0 %v896_v0  ;;  %1682 = vmatpush1.msra.mxu1 %v930_v7  ;;  %v3403_v0 = vsel %vm597_vm2, %v635_v31, %v636_v24  ;;  %v283_v7 = vld [vmem:[%s2851_s26 + $0xa0] sm:$0xff]  ;;  %v926_v31 = vld [vmem:[%s4509_s3 + $0x2f8] sm:$0xff]  ;;  %v391_v48 = vmax.f32 %v359_v41, 0.0  ;;  %v362_v61 = vadd.f32 %v2889_v56, %v323_v30  ;;  %v925_v41 = vld [vmem:[%s4509_s3 + $0x2f0] sm:$0xff] }
  0x85   : > { %2359 = vmatmul.mubr.msk.f32.gmra.mxu0 %vm2970_vm1, %v3283_v34  ;;  %1342 = vmatmul.mubr.f32.gmra.mxu1 %v3370_v13  ;;  %4596 = vst [vmem:[#allocation12_spill] sm:$0xff] %v3403_v0  ;;  %v3409_v13 = vsel %vm437_vm0, %v3397_v55, %v463_v19 }
  0x86   : > { %1121 = vmatprep.mubr.f32.mxu0 %v3375_v20  ;;  %1346 = vmatprep.mubr.f32.mxu1 %v3352_v60  ;;  %4597 = vst [vmem:[#allocation13_spill] sm:$0xff] %v3409_v13  ;;  %v641_v20 = vrot.slane %v3409_v13, 1  ;;  %v750_v25 = vrot.slane %v3409_v13, 2 }
  0x87   : > { %1462 = vmatprep.subr.mxu0 %v4519_v2  ;;  %1683 = vmatprep.subr.mxu1 %v4519_v2  ;;  %v928_v2 = vld [vmem:[%s4509_s3 + $0x308] sm:$0xff] }
  0x88   : > { %1463 = vmatpush1.msra.mxu0 %v895_v39  ;;  %1684 = vmatpush1.msra.mxu1 %v929_v22  ;;  %v747_v39 = vrot.slane %v557_v28, 2  ;;  %v322_v22 = vmul.f32 %v2866_v49, %v283_v7  ;;  %v3432_v28 = vsel %vm597_vm2, %v636_v24, %v638_v4  ;;  %v286_v4 = vld [vmem:[%s2851_s26 + $0xb8] sm:$0xff]  ;;  %v749_v7 = vrot.slane %v542_v52, 2 }
  0x89   : > { %1122 = vmatmul.mubr.f32.gmra.mxu0 %v3295_v51  ;;  %1347 = vmatmul.mubr.f32.gmra.mxu1 %v3386_v15  ;;  %v4599_v15 = vmov 0.0   ;;  %4600 = vst [vmem:[#allocation15_spill] sm:$0xff] %v3432_v28  ;;  %v640_v51 = vrot.slane %v542_v52, 1 }
  0x8a   : > { %1126 = vmatprep.mubr.f32.mxu0 %v3403_v0  ;;  %2393 = vmatprep.mubr.msk.f32.mxu1 %vm2970_vm1, %v3397_v55  ;;  %v558_v0 = vsel %vm437_vm0, %v463_v19, 0.0  ;;  %v3443_v24 = vsel %vm706_vm3, %v745_v63, %v747_v39  ;;  %v927_v19 = vld [vmem:[%s4509_s3 + $0x300] sm:$0xff]  ;;  %v361_v63 = vadd.f32 %v2889_v56, %v322_v22  ;;  %v285_v39 = vld [vmem:[%s2851_s26 + $0xb0] sm:$0xff]  ;;  %v325_v22 = vmul.f32 %v2866_v49, %v286_v4 }
  0x8b   : > { %1464 = vmatprep.subr.mxu0 %v4599_v15  ;;  %1685 = vmatprep.subr.mxu1 %v4599_v15  ;;  %4601 = vst [vmem:[#allocation16_spill] sm:$0xff] %v3443_v24  ;;  %v3460_v30 = vsel %vm597_vm2, %v640_v51, %v641_v20  ;;  %v924_v51 = vld [vmem:[%s4509_s3 + $0x2e8] sm:$0xff] }
  0x8c   : > { %1465 = vmatpush2.msra.mxu0 %v926_v31  ;;  %1686 = vmatpush1.msra.mxu1 %v928_v2  ;;  %v3454_v2 = vrot.slane %v391_v48, 7  ;;  %4603 = vst [vmem:[#allocation18_spill] sm:$0xff] %v3460_v30  ;;  %v643_v31 = vrot.slane %v558_v0, 1  ;;  %v394_v48 = vmax.f32 %v362_v61, 0.0  ;;  %v3484_v61 = vsel %vm706_vm3, %v749_v7, %v750_v25 }
  0x8d   : > { %2361 = vmatmul.mubr.msk.f32.gmra.mxu0 %vm2970_vm1, %v3340_v33  ;;  %1352 = vmatmul.mubr.f32.gmra.mxu1 %v3427_v37  ;;  %4605 = vst [vmem:[#allocation20_spill] sm:$0xff] %v3484_v61  ;;  %v393_v4 = vmax.f32 %v361_v63, 0.0  ;;  %v364_v7 = vadd.f32 %v2889_v56, %v325_v22  ;;  %v923_v63 = vld [vmem:[%s4509_s3 + $0x2e0] sm:$0xff] }
  0x8e   : > { %1131 = vmatprep.mubr.f32.mxu0 %v3432_v28  ;;  %1356 = vmatprep.mubr.f32.mxu1 %v3409_v13  ;;  %4602 = vst [vmem:[#allocation17_spill] sm:$0xff] %v3454_v2  ;;  %v3466_v37 = vsel %vm437_vm0, %v3454_v2, %v466_v21  ;;  %v543_v52 = vsel %vm437_vm0, 0.0, %v3454_v2  ;;  %v958_v28 = vld [vmem:[%s4509_s3 + $0x3f8] sm:$0xff]  ;;  %v469_v33 = vrot.slane %v394_v48, 7 }
  0x8f   : > { %1466 = vmatprep.subr.mxu0 %v4599_v15  ;;  %1687 = vmatprep.subr.mxu1 %v4599_v15  ;;  %4604 = vst [vmem:[#allocation19_spill] sm:$0xff] %v3466_v37  ;;  %v755_v48 = vrot.slane %v3466_v37, 2 }
  0x90   : > { %1467 = vmatpush2.msra.mxu0 %v925_v41  ;;  %1688 = vmatpush1.msra.mxu1 %v927_v19  ;;  %v752_v41 = vrot.slane %v558_v0, 2  ;;  %v324_v19 = vmul.f32 %v2866_v49, %v285_v39  ;;  %v3489_v0 = vsel %vm597_vm2, %v641_v20, %v643_v31  ;;  %v288_v31 = vld [vmem:[%s2851_s26 + $0xc8] sm:$0xff]  ;;  %v754_v39 = vrot.slane %v543_v52, 2 }
  0x91   : > { %1132 = vmatmul.mubr.f32.gmra.mxu0 %v3352_v60  ;;  %1357 = vmatmul.mubr.f32.gmra.mxu1 %v3443_v24  ;;  %4606 = vst [vmem:[#allocation21_spill] sm:$0xff] %v3489_v0  ;;  %v645_v24 = vrot.slane %v543_v52, 1  ;;  %v646_v60 = vrot.slane %v3466_v37, 1 }
  0x92   : > { %1136 = vmatprep.mubr.f32.mxu0 %v3460_v30  ;;  %2395 = vmatprep.mubr.msk.f32.mxu1 %vm2970_vm1, %v3454_v2  ;;  %v559_v30 = vsel %vm437_vm0, %v466_v21, 0.0  ;;  %v3500_v20 = vsel %vm706_vm3, %v750_v25, %v752_v41  ;;  %v957_v21 = vld [vmem:[%s4509_s3 + $0x3f0] sm:$0xff]  ;;  %v363_v25 = vadd.f32 %v2889_v56, %v324_v19  ;;  %v287_v41 = vld [vmem:[%s2851_s26 + $0xc0] sm:$0xff]  ;;  %v327_v19 = vmul.f32 %v2866_v49, %v288_v31 }
  0x93   : > { %1468 = vmatprep.subr.mxu0 %v4599_v15  ;;  %1689 = vmatprep.subr.mxu1 %v4599_v15  ;;  %4607 = vst [vmem:[#allocation22_spill] sm:$0xff] %v3500_v20  ;;  %v3517_v22 = vsel %vm597_vm2, %v645_v24, %v646_v60  ;;  %v922_v24 = vld [vmem:[%s4509_s3 + $0x2d8] sm:$0xff]  ;;  %v3541_v49 = vsel %vm706_vm3, %v754_v39, %v755_v48  ;;  %v3546_v31 = vld [vmem:[%s4507_s1] ss:$0 sm:$0xff]  ;;  %v560_v39 = vsel %vm437_vm0, %v469_v33, 0.0 }
  0x94   : > { %1469 = vmatpush2.msra.mxu0 %v924_v51  ;;  %1690 = vmatpush2.msra.mxu1 %v958_v28  ;;  %v3511_v28 = vrot.slane %v393_v4, 7  ;;  %4609 = vst [vmem:[#allocation24_spill] sm:$0xff] %v3517_v22  ;;  %v648_v51 = vrot.slane %v559_v30, 1  ;;  %v396_v4 = vmax.f32 %v364_v7, 0.0  ;;  %4611 = vst [vmem:[#allocation26_spill] sm:$0xff] %v3541_v49  ;;  %v395_v7 = vmax.f32 %v363_v25, 0.0 }
  0x95   : > { %2363 = vmatmul.mubr.msk.f32.gmra.mxu0 %vm2970_vm1, %v3397_v55  ;;  %1362 = vmatmul.mubr.f32.gmra.mxu1 %v3484_v61 }
  0x96   : > { %1141 = vmatprep.mubr.f32.mxu0 %v3489_v0  ;;  %1366 = vmatprep.mubr.f32.mxu1 %v3466_v37  ;;  %4608 = vst [vmem:[#allocation23_spill] sm:$0xff] %v3511_v28  ;;  %v3523_v61 = vsel %vm437_vm0, %v3511_v28, %v469_v33  ;;  %v544_v52 = vsel %vm437_vm0, 0.0, %v3511_v28  ;;  %v956_v0 = vld [vmem:[%s4509_s3 + $0x3e8] sm:$0xff]  ;;  %v472_v25 = vrot.slane %v396_v4, 7  ;;  %v955_v33 = vld [vmem:[%s4509_s3 + $0x3e0] sm:$0xff] }
  0x97   : > { %1470 = vmatprep.subr.mxu0 %v4599_v15  ;;  %1691 = vmatprep.subr.mxu1 %v4599_v15  ;;  %4610 = vst [vmem:[#allocation25_spill] sm:$0xff] %v3523_v61  ;;  %v760_v4 = vrot.slane %v3523_v61, 2 }
  0x98   : > { %1471 = vmatpush2.msra.mxu0 %v923_v63  ;;  %1692 = vmatpush2.msra.mxu1 %v957_v21  ;;  %v757_v63 = vrot.slane %v559_v30, 2  ;;  %v326_v30 = vmul.f32 %v3546_v31, %v287_v41  ;;  %v3551_v21 = vsel %vm597_vm2, %v646_v60, %v648_v51  ;;  %v921_v51 = vld [vmem:[%s4509_s3 + $0x2d0] sm:$0xff]  ;;  %v290_v41 = vld [vmem:[%s2851_s26 + $0xd8] sm:$0xff] }
  0x99   : > { %1142 = vmatmul.mubr.f32.gmra.mxu0 %v3409_v13  ;;  %1367 = vmatmul.mubr.f32.gmra.mxu1 %v3500_v20  ;;  %4612 = vst [vmem:[#allocation27_spill] sm:$0xff] %v3551_v21  ;;  %v650_v20 = vrot.slane %v544_v52, 1  ;;  %v366_v13 = vadd.f32 %v2889_v56, %v327_v19  ;;  %v3573_v56 = vrot.slane %v395_v7, 7 }
  0x9a   : > { %1146 = vmatprep.mubr.f32.mxu0 %v3517_v22  ;;  %2397 = vmatprep.mubr.msk.f32.mxu1 %vm2970_vm1, %v3511_v28  ;;  %v651_v22 = vrot.slane %v3523_v61, 1  ;;  %v3562_v60 = vsel %vm706_vm3, %v755_v48, %v757_v63  ;;  %v3579_v48 = vld [vmem:[%s4508_s2] ss:$0 sm:$0xff] }
  0x9b   : > { %1472 = vmatprep.subr.mxu0 %v4599_v15  ;;  %1693 = vmatprep.subr.mxu1 %v4599_v15  ;;  %4613 = vst [vmem:[#allocation28_spill] sm:$0xff] %v3562_v60  ;;  %4614 = vst [vmem:[#allocation29_spill] sm:$0xff] %v3573_v56  ;;  %v365_v19 = vadd.f32 %v3579_v48, %v326_v30  ;;  %v545_v7 = vsel %vm437_vm0, 0.0, %v3573_v56  ;;  %v329_v30 = vmul.f32 %v3546_v31, %v290_v41 }
  0x9c   : > { %1473 = vmatpush2.msra.mxu0 %v922_v24  ;;  %1694 = vmatpush2.msra.mxu1 %v956_v0  ;;  %v759_v0 = vrot.slane %v544_v52, 2  ;;  %v289_v24 = vld [vmem:[%s2851_s26 + $0xd0] sm:$0xff]  ;;  %v3585_v63 = vsel %vm597_vm2, %v650_v20, %v651_v22  ;;  %v3590_v52 = vsel %vm437_vm0, %v3573_v56, %v472_v25  ;;  %v920_v20 = vld [vmem:[%s4509_s3 + $0x2c8] sm:$0xff] }
  0x9d   : > { %2365 = vmatmul.mubr.msk.f32.gmra.mxu0 %vm2970_vm1, %v3454_v2  ;;  %1372 = vmatmul.mubr.f32.gmra.mxu1 %v3541_v49  ;;  %4615 = vst [vmem:[#allocation30_spill] sm:$0xff] %v3585_v63  ;;  %v653_v49 = vrot.slane %v560_v39, 1  ;;  %4616 = vst [vmem:[#allocation31_spill] sm:$0xff] %v3590_v52  ;;  %v954_v2 = vld [vmem:[%s4509_s3 + $0x3d8] sm:$0xff]  ;;  %v397_v41 = vmax.f32 %v365_v19, 0.0  ;;  %v764_v19 = vrot.slane %v545_v7, 2 }
  0x9e   : > { %1151 = vmatprep.mubr.f32.mxu0 %v3551_v21  ;;  %1376 = vmatprep.mubr.f32.mxu1 %v3523_v61  ;;  %v398_v21 = vmax.f32 %v366_v13, 0.0  ;;  %v3609_v13 = vsel %vm706_vm3, %v759_v0, %v760_v4  ;;  %v368_v0 = vadd.f32 %v3579_v48, %v329_v30  ;;  %v765_v30 = vrot.slane %v3590_v52, 2 }
  0x9f   : > { %1474 = vmatprep.subr.mxu0 %v4599_v15  ;;  %1695 = vmatprep.subr.mxu1 %v4599_v15  ;;  %4617 = vst [vmem:[#allocation32_spill] sm:$0xff] %v3609_v13 }
  0xa0   : > { %1475 = vmatpush2.msra.mxu0 %v921_v51  ;;  %1696 = vmatpush2.msra.mxu1 %v955_v33  ;;  %v328_v51 = vmul.f32 %v3546_v31, %v289_v24  ;;  %v762_v33 = vrot.slane %v560_v39, 2  ;;  %v3613_v24 = vsel %vm597_vm2, %v651_v22, %v653_v49  ;;  %v475_v55 = vrot.slane %v398_v21, 7  ;;  %v919_v22 = vld [vmem:[%s4509_s3 + $0x2c0] sm:$0xff]  ;;  %v953_v21 = vld [vmem:[%s4509_s3 + $0x3d0] sm:$0xff] }
  0xa1   : > { %1152 = vmatmul.mubr.f32.gmra.mxu0 %v3466_v37  ;;  %1377 = vmatmul.mubr.f32.gmra.mxu1 %v3562_v60  ;;  %4618 = vst [vmem:[#allocation33_spill] sm:$0xff] %v3613_v24  ;;  %v655_v60 = vrot.slane %v545_v7, 1  ;;  %v656_v37 = vrot.slane %v3590_v52, 1  ;;  %v400_v7 = vmax.f32 %v368_v0, 0.0  ;;  %v3665_v0 = vsel %vm706_vm3, %v764_v19, %v765_v30 }
  0xa2   : > { %1156 = vmatprep.mubr.f32.mxu0 %v3585_v63  ;;  %2399 = vmatprep.mubr.msk.f32.mxu1 %vm2970_vm1, %v3573_v56  ;;  %v561_v63 = vsel %vm437_vm0, %v472_v25, 0.0  ;;  %v367_v49 = vadd.f32 %v3579_v48, %v328_v51  ;;  %v3634_v39 = vsel %vm706_vm3, %v760_v4, %v762_v33  ;;  %v3636_v25 = vrot.slane %v397_v41, 7  ;;  %4621 = vst [vmem:[#allocation36_spill] sm:$0xff] %v3665_v0 }
  0xa3   : > { %1476 = vmatprep.subr.mxu0 %v4599_v15  ;;  %1697 = vmatprep.subr.mxu1 %v4599_v15  ;;  %4619 = vst [vmem:[#allocation34_spill] sm:$0xff] %v3634_v39  ;;  %v658_v51 = vrot.slane %v561_v63, 1 }
  0xa4   : > { %1477 = vmatpush2.msra.mxu0 %v920_v20  ;;  %1698 = vmatpush2.msra.mxu1 %v954_v2  ;;  %v292_v2 = vld [vmem:[%s2851_s26 + $0xe8] sm:$0xff]  ;;  %v3641_v20 = vsel %vm597_vm2, %v655_v60, %v656_v37  ;;  %v546_v4 = vsel %vm437_vm0, 0.0, %v3636_v25  ;;  %v918_v60 = vld [vmem:[%s4509_s3 + $0x2b8] sm:$0xff]  ;;  %v399_v41 = vmax.f32 %v367_v49, 0.0 }
  0xa5   : > { %2367 = vmatmul.mubr.msk.f32.gmra.mxu0 %vm2970_vm1, %v3511_v28  ;;  %1382 = vmatmul.mubr.f32.gmra.mxu1 %v3609_v13  ;;  %4620 = vst [vmem:[#allocation35_spill] sm:$0xff] %v3641_v20  ;;  %v291_v13 = vld [vmem:[%s2851_s26 + $0xe0] sm:$0xff]  ;;  %v331_v33 = vmul.f32 %v3546_v31, %v292_v2  ;;  %v3670_v49 = vsel %vm597_vm2, %v656_v37, %v658_v51  ;;  %v478_v28 = vrot.slane %v400_v7, 7  ;;  %v917_v37 = vld [vmem:[%s4509_s3 + $0x2b0] sm:$0xff]  ;;  %v769_v51 = vrot.slane %v546_v4, 2 }
  0xa6   : > { %1161 = vmatprep.mubr.f32.mxu0 %v3613_v24  ;;  %1386 = vmatprep.mubr.f32.mxu1 %v3590_v52  ;;  %v3647_v24 = vsel %vm437_vm0, %v3636_v25, %v475_v55  ;;  %v330_v2 = vmul.f32 %v3546_v31, %v291_v13  ;;  %4622 = vst [vmem:[#allocation37_spill] sm:$0xff] %v3670_v49 }
  0xa7   : > { %1478 = vmatprep.subr.mxu0 %v4599_v15  ;;  %1699 = vmatprep.subr.mxu1 %v4599_v15  ;;  %v370_v19 = vadd.f32 %v3579_v48, %v331_v33  ;;  %v770_v7 = vrot.slane %v3647_v24, 2 }
  0xa8   : > { %1479 = vmatpush2.msra.mxu0 %v919_v22  ;;  %1700 = vmatpush2.msra.mxu1 %v953_v21  ;;  %v952_v22 = vld [vmem:[%s4509_s3 + $0x3c8] sm:$0xff]  ;;  %v767_v21 = vrot.slane %v561_v63, 2  ;;  %v3683_v63 = vrot.slane %v399_v41, 7  ;;  %v369_v33 = vadd.f32 %v3579_v48, %v330_v2  ;;  %v950_v2 = vld [vmem:[%s4509_s3 + $0x3b8] sm:$0xff] }
  0xa9   : > { %1162 = vmatmul.mubr.f32.gmra.mxu0 %v3523_v61  ;;  %1387 = vmatmul.mubr.f32.gmra.mxu1 %v3634_v39  ;;  %v660_v39 = vrot.slane %v546_v4, 1  ;;  %v661_v61 = vrot.slane %v3647_v24, 1 }
  0xaa   : > { %1166 = vmatprep.mubr.f32.mxu0 %v3641_v20  ;;  %2401 = vmatprep.mubr.msk.f32.mxu1 %vm2970_vm1, %v3636_v25  ;;  %v562_v20 = vsel %vm437_vm0, %v475_v55, 0.0  ;;  %v951_v55 = vld [vmem:[%s4509_s3 + $0x3c0] sm:$0xff]  ;;  %v3691_v13 = vsel %vm706_vm3, %v765_v30, %v767_v21  ;;  %v3703_v30 = vsel %vm437_vm0, %v3683_v63, %v478_v28  ;;  %v547_v4 = vsel %vm437_vm0, 0.0, %v3683_v63 }
  0xab   : > { %1480 = vmatprep.subr.mxu0 %v4599_v15  ;;  %1701 = vmatprep.subr.mxu1 %v4599_v15  ;;  %4623 = vst [vmem:[#allocation38_spill] sm:$0xff] %v3691_v13  ;;  %v663_v41 = vrot.slane %v562_v20, 1  ;;  %v402_v21 = vmax.f32 %v370_v19, 0.0  ;;  %v3721_v19 = vsel %vm706_vm3, %v769_v51, %v770_v7 }
  0xac   : > { %1481 = vmatpush2.msra.mxu0 %v918_v60  ;;  %1702 = vmatpush2.msra.mxu1 %v952_v22  ;;  %v3697_v60 = vsel %vm597_vm2, %v660_v39, %v661_v61  ;;  %v293_v22 = vld [vmem:[%s2851_s26 + $0xf0] sm:$0xff]  ;;  %v916_v39 = vld [vmem:[%s4509_s3 + $0x2a8] sm:$0xff] }
  0xad   : > { %2369 = vmatmul.mubr.msk.f32.gmra.mxu0 %vm2970_vm1, %v3573_v56  ;;  %1392 = vmatmul.mubr.f32.gmra.mxu1 %v3665_v0  ;;  %4624 = vst [vmem:[#allocation39_spill] sm:$0xff] %v3697_v60  ;;  %v332_v0 = vmul.f32 %v3546_v31, %v293_v22  ;;  %v666_v56 = vrot.slane %v3703_v30, 1  ;;  %v481_v51 = vrot.slane %v402_v21, 7  ;;  %v775_v22 = vrot.slane %v3703_v30, 2 }
  0xae   : > { %1171 = vmatprep.mubr.f32.mxu0 %v3670_v49  ;;  %1396 = vmatprep.mubr.f32.mxu1 %v3647_v24  ;;  %v665_v49 = vrot.slane %v547_v4, 1 }
  0xaf   : > { %1482 = vmatprep.subr.mxu0 %v4599_v15  ;;  %1703 = vmatprep.subr.mxu1 %v4599_v15  ;;  %v371_v21 = vadd.f32 %v3579_v48, %v332_v0  ;;  %v914_v0 = vld [vmem:[%s4509_s3 + $0x298] sm:$0xff] }
  0xb0   : > { %1483 = vmatpush2.msra.mxu0 %v917_v37  ;;  %1704 = vmatpush2.msra.mxu1 %v951_v55  ;;  %v294_v37 = vld [vmem:[%s2851_s26 + $0xf8] sm:$0xff]  ;;  %v772_v55 = vrot.slane %v562_v20, 2  ;;  %s262_s26 = scalar_lea.vmem %s4512_s6, %s2342_s13 }
  0xb1   : > { %1172 = vmatmul.mubr.f32.gmra.mxu0 %v3590_v52  ;;  %1397 = vmatmul.mubr.f32.gmra.mxu1 %v3691_v13  ;;  %v401_v13 = vmax.f32 %v369_v33, 0.0  ;;  %v3726_v52 = vsel %vm597_vm2, %v661_v61, %v663_v41  ;;  %v333_v20 = vmul.f32 %v3546_v31, %v294_v37  ;;  %v915_v61 = vld [vmem:[%s4509_s3 + $0x2a0] sm:$0xff]  ;;  %v774_v33 = vrot.slane %v547_v4, 2  ;;  %v949_v41 = vld [vmem:[%s4509_s3 + $0x3b0] sm:$0xff] }
  0xb2   : > { %1176 = vmatprep.mubr.f32.mxu0 %v3697_v60  ;;  %2403 = vmatprep.mubr.msk.f32.mxu1 %vm2970_vm1, %v3683_v63  ;;  %v563_v60 = vsel %vm437_vm0, %v478_v28, 0.0  ;;  %v3745_v28 = vsel %vm706_vm3, %v770_v7, %v772_v55  ;;  %v3753_v4 = vsel %vm597_vm2, %v665_v49, %v666_v56  ;;  %v948_v49 = vld [vmem:[%s4509_s3 + $0x3a8] sm:$0xff]  ;;  %v403_v55 = vmax.f32 %v371_v21, 0.0 }
  0xb3   : > { %1484 = vmatprep.subr.mxu0 %v4599_v15  ;;  %1705 = vmatprep.subr.mxu1 %v4599_v15  ;;  %4625 = vst [vmem:[#allocation40_spill] sm:$0xff] %v3745_v28  ;;  %v3747_v31 = vrot.slane %v401_v13, 7  ;;  %4626 = vst [vmem:[#allocation41_spill] sm:$0xff] %v3753_v4  ;;  %v372_v7 = vadd.f32 %v3579_v48, %v333_v20  ;;  %v3776_v48 = vsel %vm706_vm3, %v774_v33, %v775_v22 }
  0xb4   : > { %1485 = vmatpush2.msra.mxu0 %v916_v39  ;;  %1706 = vmatpush2.msra.mxu1 %v950_v2  ;;  %v668_v39 = vrot.slane %v563_v60, 1  ;;  %v777_v37 = vrot.slane %v563_v60, 2  ;;  %v947_v60 = vld [vmem:[%s4509_s3 + $0x3a0] sm:$0xff]  ;;  %v3800_v33 = vrot.slane %v403_v55, 7 }
  0xb5   : > { %2371 = vmatmul.mubr.msk.f32.gmra.mxu0 %vm2970_vm1, %v3636_v25  ;;  %1402 = vmatmul.mubr.f32.gmra.mxu1 %v3721_v19  ;;  %v3758_v2 = vsel %vm437_vm0, %v3747_v31, %v481_v51  ;;  %v548_v13 = vsel %vm437_vm0, 0.0, %v3747_v31 }
  0xb6   : > { %1181 = vmatprep.mubr.f32.mxu0 %v3726_v52  ;;  %1406 = vmatprep.mubr.f32.mxu1 %v3703_v30  ;;  %v3780_v20 = vsel %vm597_vm2, %v666_v56, %v668_v39  ;;  %v913_v56 = vld [vmem:[%s4509_s3 + $0x290] sm:$0xff]  ;;  %v779_v21 = vrot.slane %v548_v13, 2  ;;  %v780_v39 = vrot.slane %v3758_v2, 2 }
  0xb7   : > { %1486 = vmatprep.subr.mxu0 %v4599_v15  ;;  %1707 = vmatprep.subr.mxu1 %v4599_v15 }
  0xb8   : > { %1487 = vmatpush2.msra.mxu0 %v915_v61  ;;  %1708 = vmatpush2.msra.mxu1 %v949_v41  ;;  %v670_v61 = vrot.slane %v548_v13, 1  ;;  %v671_v41 = vrot.slane %v3758_v2, 1  ;;  %v946_v13 = vld [vmem:[%s4509_s3 + $0x398] sm:$0xff] }
  0xb9   : > { %1182 = vmatmul.mubr.f32.gmra.mxu0 %v3647_v24  ;;  %1407 = vmatmul.mubr.f32.gmra.mxu1 %v3745_v28  ;;  %v564_v28 = vsel %vm437_vm0, %v481_v51, 0.0  ;;  %v3798_v51 = vsel %vm706_vm3, %v775_v22, %v777_v37  ;;  %v912_v22 = vld [vmem:[%s4509_s3 + $0x288] sm:$0xff] }
  0xba   : > { %1186 = vmatprep.mubr.f32.mxu0 %v3753_v4  ;;  %2405 = vmatprep.mubr.msk.f32.mxu1 %vm2970_vm1, %v3747_v31  ;;  %v404_v4 = vmax.f32 %v372_v7, 0.0  ;;  %v3806_v7 = vsel %vm597_vm2, %v670_v61, %v671_v41  ;;  %v782_v37 = vrot.slane %v564_v28, 2 }
  0xbb   : > { %1488 = vmatprep.subr.mxu0 %v4599_v15  ;;  %1709 = vmatprep.subr.mxu1 %v4599_v15 }
  0xbc   : > { %1489 = vmatpush2.msra.mxu0 %v914_v0  ;;  %1710 = vmatpush2.msra.mxu1 %v948_v49  ;;  %v673_v0 = vrot.slane %v564_v28, 1  ;;  %v3808_v49 = vrot.slane %v404_v4, 7  ;;  %v3823_v4 = vsel %vm706_vm3, %v779_v21, %v780_v39  ;;  %v3845_v28 = vsel %vm706_vm3, %v780_v39, %v782_v37  ;;  %v943_v21 = vld [vmem:[%s4509_s3 + $0x380] sm:$0xff]  ;;  %v974_v39 = vld [vmem:[%s4509_s3 + $0x478] sm:$0xff] }
  0xbd   : > { %2373 = vmatmul.mubr.msk.f32.gmra.mxu0 %vm2970_vm1, %v3683_v63  ;;  %1412 = vmatmul.mubr.f32.gmra.mxu1 %v3776_v48  ;;  %v4641_v37 = vld [vmem:[#allocation13_spill] sm:$0xff] }
  0xbe   : > { %1191 = vmatprep.mubr.f32.mxu0 %v3780_v20  ;;  %1416 = vmatprep.mubr.f32.mxu1 %v3758_v2  ;;  %v3828_v55 = vsel %vm597_vm2, %v671_v41, %v673_v0  ;;  %v3833_v61 = vsel %vm437_vm0, %v3800_v33, %v3808_v49  ;;  %v911_v41 = vld [vmem:[%s4509_s3 + $0x280] sm:$0xff]  ;;  %v973_v0 = vld [vmem:[%s4509_s3 + $0x470] sm:$0xff] }
  0xbf   : > { %1490 = vmatprep.subr.mxu0 %v4599_v15  ;;  %1711 = vmatprep.subr.mxu1 %v4599_v15 }
  0xc0   : > { %1491 = vmatpush2.msra.mxu0 %v913_v56  ;;  %1712 = vmatpush2.msra.mxu1 %v947_v60  ;;  %v945_v56 = vld [vmem:[%s4509_s3 + $0x390] sm:$0xff]  ;;  %v944_v60 = vld [vmem:[%s4509_s3 + $0x388] sm:$0xff] }
  0xc1   : > { %1192 = vmatmul.mubr.f32.gmra.mxu0 %v3703_v30  ;;  %1417 = vmatmul.mubr.f32.gmra.mxu1 %v3798_v51 }
  0xc2   : > { %1196 = vmatprep.mubr.f32.mxu0 %v3806_v7  ;;  %2407 = vmatprep.mubr.msk.f32.mxu1 %vm2970_vm1, %v3800_v33 }
  0xc3   : > { %1492 = vmatprep.subr.mxu0 %v4599_v15  ;;  %1713 = vmatprep.subr.mxu1 %v4599_v15 }
  0xc4   : > { %1493 = vmatpush2.msra.mxu0 %v912_v22  ;;  %1714 = vmatpush2.msra.mxu1 %v946_v13  ;;  %v4639_v22 = vld [vmem:[#allocation16_spill] sm:$0xff]  ;;  %v4640_v13 = vld [vmem:[#allocation21_spill] sm:$0xff] }
  0xc5   : > { %2375 = vmatmul.mubr.msk.f32.gmra.mxu0 %vm2970_vm1, %v3747_v31  ;;  %1422 = vmatmul.mubr.f32.gmra.mxu1 %v3823_v4 }
  0xc6   : > { %1715 = vmatprep.subr.mxu1 %v4599_v15  ;;  %1201 = vmatprep.mubr.f32.mxu0 %v3828_v55 }
  0xc7   : > { %1426 = vmatprep.mubr.f32.mxu1 %v3833_v61  ;;  %1716 = vmatpush2.msra.mxu1 %v945_v56  ;;  %v4642_v56 = vld [vmem:[#allocation20_spill] sm:$0xff] }
  0xc8   : > { %1494 = vmatprep.subr.mxu0 %v4599_v15  ;;  %1717 = vmatprep.subr.mxu1 %v4599_v15 }
  0xc9   : > { %1202 = vmatmul.mubr.f32.gmra.mxu0 %v3758_v2  ;;  %1427 = vmatmul.mubr.f32.gmra.mxu1 %v3845_v28 }
  0xca   : > { %1495 = vmatpush2.msra.mxu0 %v911_v41  ;;  %1718 = vmatpush2.msra.mxu1 %v944_v60  ;;  %v4643_v41 = vld [vmem:[#allocation24_spill] sm:$0xff]  ;;  %v3995_v60 = vld [vmem:[%s4510_s4] ss:$0 sm:$0xff] }
  0xcb   : > { %1719 = vmatprep.subr.mxu1 %v4599_v15  ;;  %1496 = vmatprep.mubr.f32.mxu0 %v3027_v54  ;;  %v969_v54 = vld [vmem:[%s4509_s3 + $0x450] sm:$0xff] }
  0xcc   : > { %1720 = vmatpush2.msra.mxu1 %v943_v21  ;;  %1721 = vmatprep.mubr.f32.mxu1 %v3061_v9 }
  0xcd   : > { %1497 = vmatmul.mubr.f32.vlgmr.msra.gmra.mxu0 %v3005_v44  ;;  %2409 = vmatmul.mubr.msk.f32.vlgmr.msra.gmra.mxu1 %vm2970_vm1, %v2995_v38  ;;  %v972_v38 = vld [vmem:[%s4509_s3 + $0x468] sm:$0xff]  ;;  %v971_v44 = vld [vmem:[%s4509_s3 + $0x460] sm:$0xff] }
  0xce   : > { %2490 = vmatprep.subr.mxu0 %v974_v39  ;;  %1501 = vmatprep.mubr.f32.mxu0 %v3054_v5  ;;  %v967_v5 = vld [vmem:[%s4509_s3 + $0x440] sm:$0xff] }
  0xcf   : > { %2491 = vmatpush3.msra.mxu0 %v974_v39  ;;  %1726 = vmatprep.mubr.f32.mxu1 %v3090_v23 }
  0xd0   : > { %2492 = vmatprep.subr.mxu0 %v973_v0  ;;  %2570 = vmatprep.subr.mxu1 %v974_v39 }
  0xd1   : > { %1502 = vmatmul.mubr.f32.gmra.mxu0 %v3034_v58  ;;  %1727 = vmatmul.mubr.f32.gmra.mxu1 %v3010_v46  ;;  %v970_v46 = vld [vmem:[%s4509_s3 + $0x458] sm:$0xff]  ;;  %v968_v58 = vld [vmem:[%s4509_s3 + $0x448] sm:$0xff] }
  0xd2   : > { %1506 = vmatprep.mubr.f32.mxu0 %v3085_v18  ;;  %1731 = vmatprep.mubr.f32.mxu1 %v3118_v40 }
  0xd3   : > { %2493 = vmatpush3.msra.mxu0 %v973_v0  ;;  %2586 = vmatpush3.msra.mxu1 %v974_v39 }
  0xd4   : > { %2494 = vmatprep.subr.mxu0 %v972_v38  ;;  %2571 = vmatprep.subr.mxu1 %v973_v0 }
  0xd5   : > { %1507 = vmatmul.mubr.f32.gmra.mxu0 %v3061_v9  ;;  %2411 = vmatmul.mubr.msk.f32.gmra.mxu1 %vm2970_vm1, %v3056_v6  ;;  %v966_v6 = vld [vmem:[%s4509_s3 + $0x438] sm:$0xff]  ;;  %v965_v9 = vld [vmem:[%s4509_s3 + $0x430] sm:$0xff] }
  0xd6   : > { %1511 = vmatprep.mubr.f32.mxu0 %v3110_v35  ;;  %1736 = vmatprep.mubr.f32.mxu1 %v3147_v59 }
  0xd7   : > { %2495 = vmatpush3.msra.mxu0 %v972_v38  ;;  %2587 = vmatpush3.msra.mxu1 %v973_v0  ;;  %v4644_v0 = vld [vmem:[#allocation17_spill] sm:$0xff] }
  0xd8   : > { %2496 = vmatprep.subr.mxu0 %v971_v44  ;;  %2572 = vmatprep.subr.mxu1 %v972_v38 }
  0xd9   : > { %1512 = vmatmul.mubr.f32.gmra.mxu0 %v3090_v23  ;;  %1737 = vmatmul.mubr.f32.gmra.mxu1 %v3067_v12  ;;  %v964_v12 = vld [vmem:[%s4509_s3 + $0x428] sm:$0xff]  ;;  %v963_v23 = vld [vmem:[%s4509_s3 + $0x420] sm:$0xff] }
  0xda   : > { %1516 = vmatprep.mubr.f32.mxu0 %v3142_v53  ;;  %1741 = vmatprep.mubr.f32.mxu1 %v3175_v14 }
  0xdb   : > { %2497 = vmatpush3.msra.mxu0 %v971_v44  ;;  %2588 = vmatpush3.msra.mxu1 %v972_v38 }
  0xdc   : > { %2498 = vmatprep.subr.mxu0 %v970_v46  ;;  %2573 = vmatprep.subr.mxu1 %v971_v44 }
  0xdd   : > { %1517 = vmatmul.mubr.f32.gmra.mxu0 %v3118_v40  ;;  %2413 = vmatmul.mubr.msk.f32.gmra.mxu1 %vm2970_vm1, %v3112_v36  ;;  %v4627_v36 = vld [vmem:[#allocation5_spill] sm:$0xff] }
  0xde   : > { %1521 = vmatprep.mubr.f32.mxu0 %v3158_v1  ;;  %1746 = vmatprep.mubr.f32.mxu1 %v3204_v32  ;;  %v4628_v40 = vld [vmem:[#allocation9_spill] sm:$0xff] }
  0xdf   : > { %2499 = vmatpush3.msra.mxu0 %v970_v46  ;;  %2589 = vmatpush3.msra.mxu1 %v971_v44  ;;  %v4645_v44 = vld [vmem:[#allocation22_spill] sm:$0xff] }
  0xe0   : > { %2500 = vmatprep.subr.mxu0 %v969_v54  ;;  %2574 = vmatprep.subr.mxu1 %v970_v46 }
  0xe1   : > { %1522 = vmatmul.mubr.f32.gmra.mxu0 %v3147_v59  ;;  %1747 = vmatmul.mubr.f32.gmra.mxu1 %v3124_v43  ;;  %v4629_v43 = vld [vmem:[#allocation4_spill] sm:$0xff]  ;;  %v962_v59 = vld [vmem:[%s4509_s3 + $0x418] sm:$0xff] }
  0xe2   : > { %1526 = vmatprep.mubr.f32.mxu0 %v3199_v29  ;;  %1751 = vmatprep.mubr.f32.mxu1 %v3232_v57 }
  0xe3   : > { %2501 = vmatpush3.msra.mxu0 %v969_v54  ;;  %2590 = vmatpush3.msra.mxu1 %v970_v46  ;;  %v4646_v46 = vld [vmem:[#allocation27_spill] sm:$0xff] }
  0xe4   : > { %2502 = vmatprep.subr.mxu0 %v968_v58  ;;  %2575 = vmatprep.subr.mxu1 %v969_v54 }
  0xe5   : > { %1527 = vmatmul.mubr.f32.gmra.mxu0 %v3175_v14  ;;  %2415 = vmatmul.mubr.msk.f32.gmra.mxu1 %vm2970_vm1, %v3169_v8  ;;  %v4630_v8 = vld [vmem:[#allocation8_spill] sm:$0xff] }
  0xe6   : > { %1531 = vmatprep.mubr.f32.mxu0 %v3215_v42  ;;  %1756 = vmatprep.mubr.f32.mxu1 %v3261_v16  ;;  %v4631_v14 = vld [vmem:[#allocation12_spill] sm:$0xff] }
  0xe7   : > { %2503 = vmatpush3.msra.mxu0 %v968_v58  ;;  %2591 = vmatpush3.msra.mxu1 %v969_v54 }
  0xe8   : > { %2504 = vmatprep.subr.mxu0 %v967_v5  ;;  %2576 = vmatprep.subr.mxu1 %v968_v58 }
  0xe9   : > { %1532 = vmatmul.mubr.f32.gmra.mxu0 %v3204_v32  ;;  %1757 = vmatmul.mubr.f32.gmra.mxu1 %v3181_v17  ;;  %v4632_v17 = vld [vmem:[#allocation6_spill] sm:$0xff]  ;;  %v961_v32 = vld [vmem:[%s4509_s3 + $0x410] sm:$0xff] }
  0xea   : > { %1536 = vmatprep.mubr.f32.mxu0 %v3256_v11  ;;  %1761 = vmatprep.mubr.f32.mxu1 %v3289_v45 }
  0xeb   : > { %2505 = vmatpush3.msra.mxu0 %v967_v5  ;;  %2592 = vmatpush3.msra.mxu1 %v968_v58 }
  0xec   : > { %2506 = vmatprep.subr.mxu0 %v966_v6  ;;  %2577 = vmatprep.subr.mxu1 %v967_v5 }
  0xed   : > { %1537 = vmatmul.mubr.f32.gmra.mxu0 %v3232_v57  ;;  %2417 = vmatmul.mubr.msk.f32.gmra.mxu1 %vm2970_vm1, %v3226_v50  ;;  %v4633_v50 = vld [vmem:[#allocation10_spill] sm:$0xff]  ;;  %v4634_v57 = vld [vmem:[#allocation15_spill] sm:$0xff] }
  0xee   : > { %1541 = vmatprep.mubr.f32.mxu0 %v3272_v26  ;;  %1766 = vmatprep.mubr.f32.mxu1 %v3318_v10 }
  0xef   : > { %2507 = vmatpush3.msra.mxu0 %v966_v6  ;;  %2593 = vmatpush3.msra.mxu1 %v967_v5 }
  0xf0   : > { %2508 = vmatprep.subr.mxu0 %v965_v9  ;;  %2578 = vmatprep.subr.mxu1 %v966_v6 }
  0xf1   : > { %1542 = vmatmul.mubr.f32.gmra.mxu0 %v3261_v16  ;;  %1767 = vmatmul.mubr.f32.gmra.mxu1 %v3238_v62  ;;  %v4635_v62 = vld [vmem:[#allocation7_spill] sm:$0xff] }
  0xf2   : > { %1546 = vmatprep.mubr.f32.mxu0 %v3313_v3  ;;  %1771 = vmatprep.mubr.f32.mxu1 %v3346_v47  ;;  %v960_v16 = vld [vmem:[%s4509_s3 + $0x408] sm:$0xff] }
  0xf3   : > { %2509 = vmatpush3.msra.mxu0 %v965_v9  ;;  %2594 = vmatpush3.msra.mxu1 %v966_v6 }
  0xf4   : > { %2510 = vmatprep.subr.mxu0 %v964_v12  ;;  %2579 = vmatprep.subr.mxu1 %v965_v9 }
  0xf5   : > { %1547 = vmatmul.mubr.f32.gmra.mxu0 %v3289_v45  ;;  %2419 = vmatmul.mubr.msk.f32.gmra.mxu1 %vm2970_vm1, %v3283_v34  ;;  %v4636_v34 = vld [vmem:[#allocation14_spill] sm:$0xff] }
  0xf6   : > { %1551 = vmatprep.mubr.f32.mxu0 %v4627_v36  ;;  %1776 = vmatprep.mubr.f32.mxu1 %v4628_v40  ;;  %v4637_v45 = vld [vmem:[#allocation18_spill] sm:$0xff] }
  0xf7   : > { %2511 = vmatpush3.msra.mxu0 %v964_v12  ;;  %2595 = vmatpush3.msra.mxu1 %v965_v9 }
  0xf8   : > { %2512 = vmatprep.subr.mxu0 %v963_v23  ;;  %2580 = vmatprep.subr.mxu1 %v964_v12 }
  0xf9   : > { %1552 = vmatmul.mubr.f32.gmra.mxu0 %v3318_v10  ;;  %1777 = vmatmul.mubr.f32.gmra.mxu1 %v4629_v43  ;;  %v4638_v10 = vld [vmem:[#allocation11_spill] sm:$0xff]  ;;  %v4649_v43 = vld [vmem:[#allocation30_spill] sm:$0xff] }
  0xfa   : > { %1556 = vmatprep.mubr.f32.mxu0 %v4630_v8  ;;  %1781 = vmatprep.mubr.f32.mxu1 %v4631_v14 }
  0xfb   : > { %2513 = vmatpush3.msra.mxu0 %v963_v23  ;;  %2596 = vmatpush3.msra.mxu1 %v964_v12  ;;  %v4647_v12 = vld [vmem:[#allocation19_spill] sm:$0xff] }
  0xfc   : > { %2514 = vmatprep.subr.mxu0 %v962_v59  ;;  %2581 = vmatprep.subr.mxu1 %v963_v23 }
  0xfd   : > { %1557 = vmatmul.mubr.f32.gmra.mxu0 %v3346_v47  ;;  %2421 = vmatmul.mubr.msk.f32.gmra.mxu1 %vm2970_vm1, %v4632_v17  ;;  %v959_v47 = vld [vmem:[%s4509_s3 + $0x400] sm:$0xff] }
  0xfe   : > { %1561 = vmatprep.mubr.f32.mxu0 %v4633_v50  ;;  %1786 = vmatprep.mubr.f32.mxu1 %v4634_v57 }
  0xff   : > { %2515 = vmatpush3.msra.mxu0 %v962_v59  ;;  %2597 = vmatpush3.msra.mxu1 %v963_v23 }
 0x100   : > { %2516 = vmatprep.subr.mxu0 %v961_v32  ;;  %2582 = vmatprep.subr.mxu1 %v962_v59 }
 0x101   : > { %1562 = vmatmul.mubr.f32.gmra.mxu0 %v4628_v40  ;;  %1787 = vmatmul.mubr.f32.gmra.mxu1 %v4635_v62  ;;  %v4648_v40 = vld [vmem:[#allocation26_spill] sm:$0xff]  ;;  %v4650_v62 = vld [vmem:[#allocation23_spill] sm:$0xff] }
 0x102   : > { %1566 = vmatprep.mubr.f32.mxu0 %v4636_v34  ;;  %1791 = vmatprep.mubr.f32.mxu1 %v4637_v45 }
 0x103   : > { %2517 = vmatpush3.msra.mxu0 %v961_v32  ;;  %2598 = vmatpush3.msra.mxu1 %v962_v59 }
 0x104   : > { %2518 = vmatprep.subr.mxu0 %v960_v16  ;;  %2583 = vmatprep.subr.mxu1 %v961_v32 }
 0x105   : > { %1567 = vmatmul.mubr.f32.gmra.mxu0 %v4631_v14  ;;  %2423 = vmatmul.mubr.msk.f32.gmra.mxu1 %vm2970_vm1, %v4638_v10  ;;  %v4652_v10 = vld [vmem:[#allocation33_spill] sm:$0xff] }
 0x106   : > { %1571 = vmatprep.mubr.f32.mxu0 %v4639_v22  ;;  %1796 = vmatprep.mubr.f32.mxu1 %v4640_v13 }
 0x107   : > { %2519 = vmatpush3.msra.mxu0 %v960_v16  ;;  %2599 = vmatpush3.msra.mxu1 %v961_v32 }
 0x108   : > { %2520 = vmatprep.subr.mxu0 %v959_v47  ;;  %2584 = vmatprep.subr.mxu1 %v960_v16 }
 0x109   : > { %1572 = vmatmul.mubr.f32.gmra.mxu0 %v4634_v57  ;;  %1797 = vmatmul.mubr.f32.gmra.mxu1 %v4641_v37 }
 0x10a   : > { %1576 = vmatprep.mubr.f32.mxu0 %v4642_v56  ;;  %1801 = vmatprep.mubr.f32.mxu1 %v4643_v41 }
 0x10b   : > { %2521 = vmatpush3.msra.mxu0 %v959_v47  ;;  %2600 = vmatpush3.msra.mxu1 %v960_v16 }
 0x10c   : > { %2585 = vmatprep.subr.mxu1 %v959_v47 }
 0x10d   : > { %v1048_v21 = vpop.f32.mrf.mxu0  ;;  %v1273_v39 = vpop.f32.mrf.mxu1  ;;  %1577 = vmatmul.mubr.f32.gmra.mxu0 %v4637_v45  ;;  %2425 = vmatmul.mubr.msk.f32.gmra.mxu1 %vm2970_vm1, %v4644_v0  ;;  %v4651_v45 = vld [vmem:[#allocation28_spill] sm:$0xff]  ;;  %v4653_v0 = vld [vmem:[#allocation25_spill] sm:$0xff] }
 0x10e   : > { %v1049_v38 = vadd.f32 %v3995_v60, %v1048_v21  ;;  %1581 = vmatprep.mubr.f32.mxu0 %v4645_v44  ;;  %1806 = vmatprep.mubr.f32.mxu1 %v4646_v46 }
 0x10f   : > { %v1050_v54 = vpop.f32.mrf.mxu0  ;;  %v1275_v58 = vpop.f32.mrf.mxu1  ;;  %2601 = vmatpush3.msra.mxu1 %v959_v47 }
 0x110   : > { %v4004_v5 = vadd.f32 %v1273_v39, %v1049_v38  ;;  %v4654_v38 = vld [vmem:[#allocation32_spill] sm:$0xff]  ;;  %v4655_v54 = vld [vmem:[#allocation35_spill] sm:$0xff] }
 0x111   : > { %v1053_v6 = vpop.f32.mrf.mxu0  ;;  %v1278_v9 = vpop.f32.mrf.mxu1  ;;  %1582 = vmatmul.mubr.f32.gmra.mxu0 %v4640_v13  ;;  %1807 = vmatmul.mubr.f32.gmra.mxu1 %v4647_v12 }
 0x112   : > { %v1054_v23 = vadd.f32 %v3995_v60, %v1053_v6  ;;  %1586 = vmatprep.mubr.f32.mxu0 %v4648_v40  ;;  %1811 = vmatprep.mubr.f32.mxu1 %v4649_v43 }
 0x113   : > { %v1055_v59 = vpop.f32.mrf.mxu0  ;;  %v1280_v14 = vpop.f32.mrf.mxu1 }
 0x114   : > { %v4011_v17 = vadd.f32 %v1278_v9, %v1054_v23  ;;  %v4656_v59 = vld [vmem:[#allocation29_spill] sm:$0xff]  ;;  %v4657_v14 = vld [vmem:[#allocation34_spill] sm:$0xff] }
 0x115   : > { %v1058_v32 = vpop.f32.mrf.mxu0  ;;  %v1283_v57 = vpop.f32.mrf.mxu1  ;;  %1587 = vmatmul.mubr.f32.gmra.mxu0 %v4643_v41  ;;  %2427 = vmatmul.mubr.msk.f32.gmra.mxu1 %vm2970_vm1, %v4650_v62 }
 0x116   : > { %v1059_v16 = vadd.f32 %v3995_v60, %v1058_v32  ;;  %1591 = vmatprep.mubr.f32.mxu0 %v4651_v45  ;;  %1816 = vmatprep.mubr.f32.mxu1 %v4652_v10  ;;  %v4658_v32 = vld [vmem:[#allocation37_spill] sm:$0xff] }
 0x117   : > { %v1060_v47 = vpop.f32.mrf.mxu0  ;;  %v1285_v13 = vpop.f32.mrf.mxu1 }
 0x118   : > { %v4020_v37 = vadd.f32 %v1283_v57, %v1059_v16 }
 0x119   : > { %v1063_v21 = vpop.f32.mrf.mxu0  ;;  %v1288_v39 = vpop.f32.mrf.mxu1  ;;  %1592 = vmatmul.mubr.f32.gmra.mxu0 %v4646_v46  ;;  %1817 = vmatmul.mubr.f32.gmra.mxu1 %v4653_v0  ;;  %v4661_v0 = vld [vmem:[#allocation39_spill] sm:$0xff] }
 0x11a   : > { %v1064_v41 = vadd.f32 %v3995_v60, %v1063_v21  ;;  %1596 = vmatprep.mubr.f32.mxu0 %v4654_v38  ;;  %1821 = vmatprep.mubr.f32.mxu1 %v4655_v54  ;;  %v4659_v21 = vld [vmem:[#allocation31_spill] sm:$0xff] }
 0x11b   : > { %v1065_v58 = vpop.f32.mrf.mxu0  ;;  %v1290_v6 = vpop.f32.mrf.mxu1 }
 0x11c   : > { %v4027_v9 = vadd.f32 %v1288_v39, %v1064_v41  ;;  %v4660_v39 = vld [vmem:[#allocation36_spill] sm:$0xff] }
 0x11d   : > { %v1068_v12 = vpop.f32.mrf.mxu0  ;;  %v1293_v23 = vpop.f32.mrf.mxu1  ;;  %1597 = vmatmul.mubr.f32.gmra.mxu0 %v4649_v43  ;;  %2429 = vmatmul.mubr.msk.f32.gmra.mxu1 %vm2970_vm1, %v4656_v59 }
 0x11e   : > { %v1069_v46 = vadd.f32 %v3995_v60, %v1068_v12  ;;  %1601 = vmatprep.mubr.f32.mxu0 %v4657_v14  ;;  %1826 = vmatprep.mubr.f32.mxu1 %v4658_v32 }
 0x11f   : > { %v1070_v57 = vpop.f32.mrf.mxu0  ;;  %v1295_v62 = vpop.f32.mrf.mxu1 }
 0x120   : > { %v4036_v16 = vadd.f32 %v1293_v23, %v1069_v46  ;;  %v4662_v23 = vld [vmem:[#allocation38_spill] sm:$0xff] }
 0x121   : > { %v1073_v47 = vpop.f32.mrf.mxu0  ;;  %v1298_v13 = vpop.f32.mrf.mxu1  ;;  %1602 = vmatmul.mubr.f32.gmra.mxu0 %v4652_v10  ;;  %1827 = vmatmul.mubr.f32.gmra.mxu1 %v4659_v21 }
 0x122   : > { %v1074_v43 = vadd.f32 %v3995_v60, %v1073_v47  ;;  %1606 = vmatprep.mubr.f32.mxu0 %v4660_v39  ;;  %1831 = vmatprep.mubr.f32.mxu1 %v4661_v0 }
 0x123   : > { %v1075_v41 = vpop.f32.mrf.mxu0  ;;  %v1300_v58 = vpop.f32.mrf.mxu1 }
 0x124   : > { %v4043_v6 = vadd.f32 %v1298_v13, %v1074_v43 }
 0x125   : > { %v1078_v12 = vpop.f32.mrf.mxu0  ;;  %v1303_v59 = vpop.f32.mrf.mxu1  ;;  %1607 = vmatmul.mubr.f32.gmra.mxu0 %v4655_v54  ;;  %2431 = vmatmul.mubr.msk.f32.gmra.mxu1 %vm2970_vm1, %v3636_v25  ;;  %v4663_v25 = vld [vmem:[#allocation41_spill] sm:$0xff] }
 0x126   : > { %v1079_v10 = vadd.f32 %v3995_v60, %v1078_v12  ;;  %1611 = vmatprep.mubr.f32.mxu0 %v4662_v23  ;;  %1836 = vmatprep.mubr.f32.mxu1 %v3726_v52 }
 0x127   : > { %v1080_v46 = vpop.f32.mrf.mxu0  ;;  %v1305_v57 = vpop.f32.mrf.mxu1 }
 0x128   : > { %v4052_v62 = vadd.f32 %v1303_v59, %v1079_v10  ;;  %v549_v57 = vsel %vm437_vm0, 0.0, %v3800_v33 }
 0x129   : > { %v1083_v47 = vpop.f32.mrf.mxu0  ;;  %v1308_v13 = vpop.f32.mrf.mxu1  ;;  %1612 = vmatmul.mubr.f32.gmra.mxu0 %v4658_v32  ;;  %1837 = vmatmul.mubr.f32.gmra.mxu1 %v3647_v24  ;;  %v4664_v32 = vld [vmem:[#allocation40_spill] sm:$0xff] }
 0x12a   : > { %v1084_v54 = vadd.f32 %v3995_v60, %v1083_v47  ;;  %1616 = vmatprep.mubr.f32.mxu0 %v3721_v19  ;;  %1841 = vmatprep.mubr.f32.mxu1 %v4663_v25 }
 0x12b   : > { %v1085_v21 = vpop.f32.mrf.mxu0  ;;  %v1310_v43 = vpop.f32.mrf.mxu1 }
 0x12c   : > { %v4059_v41 = vadd.f32 %v1308_v13, %v1084_v54  ;;  %v817_v21 = vrot.slane %v549_v57, 1  ;;  %v818_v43 = vrot.slane %v3833_v61, 1 }
 0x12d   : > { %v1088_v58 = vpop.f32.mrf.mxu0  ;;  %v1313_v12 = vpop.f32.mrf.mxu1  ;;  %1617 = vmatmul.mubr.f32.gmra.mxu0 %v4661_v0  ;;  %2433 = vmatmul.mubr.msk.f32.gmra.mxu1 %vm2970_vm1, %v3683_v63 }
 0x12e   : > { %v1089_v24 = vadd.f32 %v3995_v60, %v1088_v58  ;;  %1621 = vmatprep.mubr.f32.mxu0 %v4664_v32  ;;  %1846 = vmatprep.mubr.f32.mxu1 %v3780_v20 }
 0x12f   : > { %v1090_v59 = vpop.f32.mrf.mxu0  ;;  %v1315_v10 = vpop.f32.mrf.mxu1 }
 0x130   : > { %v4068_v46 = vadd.f32 %v1313_v12, %v1089_v24  ;;  %v565_v12 = vsel %vm437_vm0, %v3808_v49, 0.0 }
 0x131   : > { %v1093_v47 = vpop.f32.mrf.mxu0  ;;  %v1318_v13 = vpop.f32.mrf.mxu1  ;;  %1622 = vmatmul.mubr.f32.gmra.mxu0 %v3726_v52  ;;  %1847 = vmatmul.mubr.f32.gmra.mxu1 %v3703_v30 }
 0x132   : > { %v1094_v63 = vadd.f32 %v3995_v60, %v1093_v47  ;;  %1626 = vmatprep.mubr.f32.mxu0 %v3776_v48  ;;  %1851 = vmatprep.mubr.f32.mxu1 %v3806_v7  ;;  %v819_v47 = vsel %vm597_vm2, %v817_v21, %v818_v43  ;;  %v825_v21 = vrot.slane %v3833_v61, 2 }
 0x133   : > { %v1095_v0 = vpop.f32.mrf.mxu0  ;;  %v1320_v54 = vpop.f32.mrf.mxu1 }
 0x134   : > { %v4078_v58 = vadd.f32 %v1318_v13, %v1094_v63  ;;  %v820_v13 = vrot.slane %v565_v12, 1 }
 0x135   : > { %v1098_v24 = vpop.f32.mrf.mxu0  ;;  %v1323_v52 = vpop.f32.mrf.mxu1  ;;  %1627 = vmatmul.mubr.f32.gmra.mxu0 %v4663_v25  ;;  %2435 = vmatmul.mubr.msk.f32.gmra.mxu1 %vm2970_vm1, %v3747_v31 }
 0x136   : > { %v1099_v30 = vadd.f32 %v3995_v60, %v1098_v24  ;;  %1631 = vmatprep.mubr.f32.mxu0 %v3798_v51  ;;  %1856 = vmatprep.mubr.f32.mxu1 %v3828_v55  ;;  %v821_v24 = vsel %vm597_vm2, %v818_v43, %v820_v13  ;;  %v827_v13 = vrot.slane %v565_v12, 2 }
 0x137   : > { %v1100_v59 = vpop.f32.mrf.mxu0  ;;  %v1325_v10 = vpop.f32.mrf.mxu1 }
 0x138   : > { %v4090_v49 = vadd.f32 %v1323_v52, %v1099_v30  ;;  %v824_v59 = vrot.slane %v549_v57, 2 }
 0x139   : > { %v1103_v63 = vpop.f32.mrf.mxu0  ;;  %v1328_v0 = vpop.f32.mrf.mxu1  ;;  %1632 = vmatmul.mubr.f32.gmra.mxu0 %v3780_v20  ;;  %1857 = vmatmul.mubr.f32.gmra.mxu1 %v3758_v2 }
 0x13a   : > { %v1104_v31 = vadd.f32 %v3995_v60, %v1103_v63  ;;  %1636 = vmatprep.mubr.f32.mxu0 %v3823_v4  ;;  %1861 = vmatprep.mubr.f32.mxu1 %v819_v47  ;;  %v4107_v57 = vsel %vm706_vm3, %v824_v59, %v825_v21 }
 0x13b   : > { %v1105_v25 = vpop.f32.mrf.mxu0  ;;  %v1330_v54 = vpop.f32.mrf.mxu1 }
 0x13c   : > { %v4098_v52 = vadd.f32 %v1328_v0, %v1104_v31  ;;  %v4117_v54 = vsel %vm706_vm3, %v825_v21, %v827_v13 }
 0x13d   : > { %v1108_v30 = vpop.f32.mrf.mxu0  ;;  %v1333_v10 = vpop.f32.mrf.mxu1  ;;  %1637 = vmatmul.mubr.f32.gmra.mxu0 %v3806_v7  ;;  %2437 = vmatmul.mubr.msk.f32.gmra.mxu1 %vm2970_vm1, %v3800_v33  ;;  %v4665_v33 = vld [vmem:[#allocation2_spill] sm:$0xff] }
 0x13e   : > { %v1109_v2 = vadd.f32 %v3995_v60, %v1108_v30  ;;  %1641 = vmatprep.mubr.f32.mxu0 %v3845_v28  ;;  %1866 = vmatprep.mubr.f32.mxu1 %v821_v24 }
 0x13f   : > { %v1110_v20 = vpop.f32.mrf.mxu0  ;;  %v1335_v43 = vpop.f32.mrf.mxu1 }
 0x140   : > { %v4109_v63 = vadd.f32 %v1333_v10, %v1109_v2 }
 0x141   : > { %v1113_v0 = vpop.f32.mrf.mxu0  ;;  %v1338_v31 = vpop.f32.mrf.mxu1  ;;  %1642 = vmatmul.mubr.f32.gmra.mxu0 %v3828_v55  ;;  %1867 = vmatmul.mubr.f32.gmra.mxu1 %v3833_v61 }
 0x142   : > { %v1114_v27 = vadd.f32 %v3995_v60, %v1113_v0  ;;  %1646 = vmatprep.mubr.f32.mxu0 %v4107_v57  ;;  %1871 = vmatprep.mubr.f32.mxu1 %v4665_v33 }
 0x143   : > { %v1115_v7 = vpop.f32.mrf.mxu0  ;;  %v1340_v25 = vpop.f32.mrf.mxu1 }
 0x144   : > { %v4119_v12 = vadd.f32 %v1338_v31, %v1114_v27 }
 0x145   : > { %v1118_v59 = vpop.f32.mrf.mxu0  ;;  %v1343_v30 = vpop.f32.mrf.mxu1  ;;  %1647 = vmatmul.mubr.f32.gmra.mxu0 %v819_v47  ;;  %1872 = vmatmul.mubr.f32.gmra.mxu1 %v4599_v15 }
 0x146   : > { %v1119_v55 = vadd.f32 %v3995_v60, %v1118_v59  ;;  %1651 = vmatprep.mubr.f32.mxu0 %v4117_v54  ;;  %1876 = vmatprep.mubr.f32.mxu1 %v4665_v33 }
 0x147   : > { %v1120_v61 = vpop.f32.mrf.mxu0  ;;  %v1345_v10 = vpop.f32.mrf.mxu1 }
 0x148   : > { %v4125_v2 = vadd.f32 %v1343_v30, %v1119_v55 }
 0x149   : > { %v1123_v20 = vpop.f32.mrf.mxu0  ;;  %v1348_v21 = vpop.f32.mrf.mxu1  ;;  %1652 = vmatmul.mubr.f32.gmra.mxu0 %v821_v24  ;;  %1877 = vmatmul.mubr.f32.gmra.mxu1 %v4599_v15 }
 0x14a   : > { %v1124_v43 = vadd.f32 %v3995_v60, %v1123_v20  ;;  %2522 = vmatprep.mubr.f32.mxu0 %v3085_v18  ;;  %2546 = vmatprep.mubr.f32.mxu1 %v4648_v40 }
 0x14b   : > { %v1125_v47 = vpop.f32.mrf.mxu0  ;;  %v1350_v13 = vpop.f32.mrf.mxu1 }
 0x14c   : > { %v4131_v0 = vadd.f32 %v1348_v21, %v1124_v43 }
 0x14d   : > { %v1128_v31 = vpop.f32.mrf.mxu0  ;;  %v1353_v27 = vpop.f32.mrf.mxu1  ;;  %2523 = vmatmul.mubr.f32.vlgmr.msra.gmra.mxu0 %v3110_v35  ;;  %2547 = vmatmul.mubr.f32.vlgmr.msra.gmra.mxu1 %v4651_v45 }
 0x14e   : > { %v1129_v24 = vadd.f32 %v3995_v60, %v1128_v31  ;;  %2525 = vmatprep.mubr.f32.mxu0 %v3142_v53  ;;  %2549 = vmatprep.mubr.f32.mxu1 %v4654_v38 }
 0x14f   : > { %v1130_v15 = vpop.f32.mrf.mxu0  ;;  %v1355_v18 = vpop.f32.mrf.mxu1 }
 0x150   : > { %v4138_v33 = vadd.f32 %v1353_v27, %v1129_v24 }
 0x151   : > { %v1133_v40 = vpop.f32.mrf.mxu0  ;;  %v1358_v7 = vpop.f32.mrf.mxu1  ;;  %2526 = vmatmul.mubr.f32.gmra.mxu0 %v3158_v1  ;;  %2550 = vmatmul.mubr.f32.gmra.mxu1 %v4657_v14 }
 0x152   : > { %v1134_v35 = vadd.f32 %v3995_v60, %v1133_v40  ;;  %2528 = vmatprep.mubr.f32.mxu0 %v3199_v29  ;;  %2552 = vmatprep.mubr.f32.mxu1 %v4660_v39 }
 0x153   : > { %v1135_v45 = vpop.f32.mrf.mxu0  ;;  %v1360_v53 = vpop.f32.mrf.mxu1 }
 0x154   : > { %v4145_v25 = vadd.f32 %v1358_v7, %v1134_v35 }
 0x155   : > { %v1138_v38 = vpop.f32.mrf.mxu0  ;;  %v1363_v59 = vpop.f32.mrf.mxu1  ;;  %2529 = vmatmul.mubr.f32.gmra.mxu0 %v3215_v42  ;;  %2553 = vmatmul.mubr.f32.gmra.mxu1 %v4662_v23 }
 0x156   : > { %v1139_v1 = vadd.f32 %v3995_v60, %v1138_v38  ;;  %2531 = vmatprep.mubr.f32.mxu0 %v3256_v11  ;;  %2555 = vmatprep.mubr.f32.mxu1 %v3721_v19 }
 0x157   : > { %v1140_v14 = vpop.f32.mrf.mxu0  ;;  %v1365_v29 = vpop.f32.mrf.mxu1 }
 0x158   : > { %v4152_v30 = vadd.f32 %v1363_v59, %v1139_v1 }
 0x159   : > { %v1143_v39 = vpop.f32.mrf.mxu0  ;;  %v1368_v55 = vpop.f32.mrf.mxu1  ;;  %2532 = vmatmul.mubr.f32.gmra.mxu0 %v3272_v26  ;;  %2556 = vmatmul.mubr.f32.gmra.mxu1 %v4664_v32 }
 0x15a   : > { %v1144_v42 = vadd.f32 %v3995_v60, %v1143_v39  ;;  %2534 = vmatprep.mubr.f32.mxu0 %v3313_v3  ;;  %2558 = vmatprep.mubr.f32.mxu1 %v3776_v48 }
 0x15b   : > { %v1145_v23 = vpop.f32.mrf.mxu0  ;;  %v1370_v11 = vpop.f32.mrf.mxu1 }
 0x15c   : > { %v4159_v61 = vadd.f32 %v1368_v55, %v1144_v42 }
 0x15d   : > { %v1148_v19 = vpop.f32.mrf.mxu0  ;;  %v1373_v10 = vpop.f32.mrf.mxu1  ;;  %2535 = vmatmul.mubr.f32.gmra.mxu0 %v4627_v36  ;;  %2559 = vmatmul.mubr.f32.gmra.mxu1 %v3798_v51 }
 0x15e   : > { %v1149_v26 = vadd.f32 %v3995_v60, %v1148_v19  ;;  %2537 = vmatprep.mubr.f32.mxu0 %v4630_v8  ;;  %2561 = vmatprep.mubr.f32.mxu1 %v3823_v4 }
 0x15f   : > { %v1150_v32 = vpop.f32.mrf.mxu0  ;;  %v1375_v3 = vpop.f32.mrf.mxu1 }
 0x160   : > { %v4166_v20 = vadd.f32 %v1373_v10, %v1149_v26 }
 0x161   : > { %v1153_v48 = vpop.f32.mrf.mxu0  ;;  %v1378_v21 = vpop.f32.mrf.mxu1  ;;  %2538 = vmatmul.mubr.f32.gmra.mxu0 %v4633_v50  ;;  %2562 = vmatmul.mubr.f32.gmra.mxu1 %v3845_v28  ;;  %v4666_v28 = vld [vmem:[#allocation3_spill] sm:$0xff] }
 0x162   : > { %v1154_v36 = vadd.f32 %v3995_v60, %v1153_v48  ;;  %2540 = vmatprep.mubr.f32.mxu0 %v4636_v34  ;;  %2564 = vmatprep.mubr.f32.mxu1 %v4107_v57 }
 0x163   : > { %v1155_v51 = vpop.f32.mrf.mxu0  ;;  %v1380_v8 = vpop.f32.mrf.mxu1 }
 0x164   : > { %v4173_v43 = vadd.f32 %v1378_v21, %v1154_v36 }
 0x165   : > { %v1158_v4 = vpop.f32.mrf.mxu0  ;;  %v1383_v47 = vpop.f32.mrf.mxu1  ;;  %2541 = vmatmul.mubr.f32.gmra.mxu0 %v4639_v22  ;;  %2565 = vmatmul.mubr.f32.gmra.mxu1 %v4117_v54 }
 0x166   : > { %v1159_v50 = vadd.f32 %v3995_v60, %v1158_v4  ;;  %2543 = vmatprep.mubr.f32.mxu0 %v4642_v56  ;;  %2567 = vmatprep.mubr.f32.mxu1 %v4666_v28 }
 0x167   : > { %v1160_v13 = vpop.f32.mrf.mxu0  ;;  %v1385_v34 = vpop.f32.mrf.mxu1 }
 0x168   : > { %v4180_v31 = vadd.f32 %v1383_v47, %v1159_v50 }
 0x169   : > { %v1163_v57 = vpop.f32.mrf.mxu0  ;;  %v1388_v27 = vpop.f32.mrf.mxu1  ;;  %2544 = vmatmul.mubr.f32.gmra.mxu0 %v4645_v44  ;;  %2568 = vmatmul.mubr.f32.gmra.mxu1 %v4666_v28 }
 0x16a   : > { %v1164_v22 = vadd.f32 %v3995_v60, %v1163_v57 }
 0x16b   : > { %v1165_v24 = vpop.f32.mrf.mxu0  ;;  %v1390_v54 = vpop.f32.mrf.mxu1 }
 0x16c   : > { %v4185_v15 = vadd.f32 %v1388_v27, %v1164_v22 }
 0x16d   : > { %v1168_v18 = vpop.f32.mrf.mxu0  ;;  %v1393_v56 = vpop.f32.mrf.mxu1 }
 0x16e   : > { %v1169_v40 = vadd.f32 %v3995_v60, %v1168_v18 }
 0x16f   : > { %v1170_v7 = vpop.f32.mrf.mxu0  ;;  %v1395_v35 = vpop.f32.mrf.mxu1 }
 0x170   : > { %v4188_v45 = vadd.f32 %v1393_v56, %v1169_v40 }
 0x171   : > { %v1173_v53 = vpop.f32.mrf.mxu0  ;;  %v1398_v38 = vpop.f32.mrf.mxu1 }
 0x172   : > { %v1174_v44 = vadd.f32 %v3995_v60, %v1173_v53 }
 0x173   : > { %v1175_v59 = vpop.f32.mrf.mxu0  ;;  %v1400_v1 = vpop.f32.mrf.mxu1 }
 0x174   : > { %v4191_v14 = vadd.f32 %v1398_v38, %v1174_v44 }
 0x175   : > { %v1178_v29 = vpop.f32.mrf.mxu0  ;;  %v1403_v39 = vpop.f32.mrf.mxu1 }
 0x176   : > { %v1179_v55 = vadd.f32 %v3995_v60, %v1178_v29 }
 0x177   : > { %v1180_v42 = vpop.f32.mrf.mxu0  ;;  %v1405_v23 = vpop.f32.mrf.mxu1 }
 0x178   : > { %v4194_v11 = vadd.f32 %v1403_v39, %v1179_v55 }
 0x179   : > { %v1183_v19 = vpop.f32.mrf.mxu0  ;;  %v1408_v10 = vpop.f32.mrf.mxu1 }
 0x17a   : > { %v1184_v26 = vadd.f32 %v3995_v60, %v1183_v19 }
 0x17b   : > { %v1185_v32 = vpop.f32.mrf.mxu0  ;;  %v1410_v3 = vpop.f32.mrf.mxu1 }
 0x17c   : > { %v4197_v48 = vadd.f32 %v1408_v10, %v1184_v26 }
 0x17d   : > { %v1188_v21 = vpop.f32.mrf.mxu0  ;;  %v1413_v36 = vpop.f32.mrf.mxu1 }
 0x17e   : > { %v1189_v51 = vadd.f32 %v3995_v60, %v1188_v21 }
 0x17f   : > { %v1190_v8 = vpop.f32.mrf.mxu0  ;;  %v1415_v4 = vpop.f32.mrf.mxu1 }
 0x180   : > { %v4200_v47 = vadd.f32 %v1413_v36, %v1189_v51 }
 0x181   : > { %v1193_v50 = vpop.f32.mrf.mxu0  ;;  %v1418_v28 = vpop.f32.mrf.mxu1 }
 0x182   : > { %v1194_v13 = vadd.f32 %v3995_v60, %v1193_v50 }
 0x183   : > { %v1195_v34 = vpop.f32.mrf.mxu0  ;;  %v1420_v57 = vpop.f32.mrf.mxu1 }
 0x184   : > { %v4203_v27 = vadd.f32 %v1418_v28, %v1194_v13 }
 0x185   : > { %v1198_v22 = vpop.f32.mrf.mxu0  ;;  %v1423_v24 = vpop.f32.mrf.mxu1 }
 0x186   : > { %v1199_v54 = vadd.f32 %v3995_v60, %v1198_v22 }
 0x187   : > { %v1200_v18 = vpop.f32.mrf.mxu0  ;;  %v1425_v56 = vpop.f32.mrf.mxu1 }
 0x188   : > { %v4206_v40 = vadd.f32 %v1423_v24, %v1199_v54 }
 0x189   : > { %v1203_v7 = vpop.f32.mrf.mxu0  ;;  %v1428_v35 = vpop.f32.mrf.mxu1 }
 0x18a   : > { %4667 = vst [vmem:[#allocation5_spill] sm:$0xff] %v4206_v40  ;;  %v1204_v53 = vadd.f32 %v3995_v60, %v1203_v7 }
 0x18b   : > { %v1205_v38 = vpop.f32.mrf.mxu0  ;;  %v1430_v44 = vpop.f32.mrf.mxu1 }
 0x18c   : > { %v4209_v59 = vadd.f32 %v1428_v35, %v1204_v53 }
 0x18d   : > { %v1498_v1 = vpop.f32.mrf.mxu0  ;;  %v1723_v29 = vpop.f32.mrf.mxu1 }
 0x18e   : > { %4668 = vst [vmem:[#allocation9_spill] sm:$0xff] %v4209_v59  ;;  %v1499_v39 = vadd.f32 %v1498_v1, %v4004_v5 }
 0x18f   : > { %v1500_v55 = vpop.f32.mrf.mxu0  ;;  %v1725_v42 = vpop.f32.mrf.mxu1 }
 0x190   : > { %v4212_v23 = vadd.f32 %v1723_v29, %v1499_v39 }
 0x191   : > { %v1503_v19 = vpop.f32.mrf.mxu0  ;;  %v1728_v10 = vpop.f32.mrf.mxu1 }
 0x192   : > { %v1504_v26 = vadd.f32 %v1503_v19, %v4011_v17 }
 0x193   : > { %v1505_v32 = vpop.f32.mrf.mxu0  ;;  %v1730_v3 = vpop.f32.mrf.mxu1 }
 0x194   : > { %v4215_v21 = vadd.f32 %v1728_v10, %v1504_v26 }
 0x195   : > { %v1508_v60 = vpop.f32.mrf.mxu0  ;;  %v1733_v36 = vpop.f32.mrf.mxu1 }
 0x196   : > { %v1509_v51 = vadd.f32 %v1508_v60, %v4020_v37 }
 0x197   : > { %v1510_v8 = vpop.f32.mrf.mxu0  ;;  %v1735_v4 = vpop.f32.mrf.mxu1 }
 0x198   : > { %v4218_v50 = vadd.f32 %v1733_v36, %v1509_v51 }
 0x199   : > { %v1513_v5 = vpop.f32.mrf.mxu0  ;;  %v1738_v28 = vpop.f32.mrf.mxu1 }
 0x19a   : > { %v1514_v13 = vadd.f32 %v1513_v5, %v4027_v9 }
 0x19b   : > { %v1515_v34 = vpop.f32.mrf.mxu0  ;;  %v1740_v57 = vpop.f32.mrf.mxu1 }
 0x19c   : > { %v4221_v22 = vadd.f32 %v1738_v28, %v1514_v13 }
 0x19d   : > { %v1518_v17 = vpop.f32.mrf.mxu0  ;;  %v1743_v24 = vpop.f32.mrf.mxu1 }
 0x19e   : > { %v1519_v54 = vadd.f32 %v1518_v17, %v4036_v16 }
 0x19f   : > { %v1520_v18 = vpop.f32.mrf.mxu0  ;;  %v1745_v56 = vpop.f32.mrf.mxu1 }
 0x1a0   : > { %v4224_v7 = vadd.f32 %v1743_v24, %v1519_v54 }
 0x1a1   : > { %v1523_v37 = vpop.f32.mrf.mxu0  ;;  %v1748_v35 = vpop.f32.mrf.mxu1 }
 0x1a2   : > { %v1524_v53 = vadd.f32 %v1523_v37, %v4043_v6 }
 0x1a3   : > { %v1525_v38 = vpop.f32.mrf.mxu0  ;;  %v1750_v44 = vpop.f32.mrf.mxu1 }
 0x1a4   : > { %v4227_v1 = vadd.f32 %v1748_v35, %v1524_v53 }
 0x1a5   : > { %v1528_v9 = vpop.f32.mrf.mxu0  ;;  %v1753_v29 = vpop.f32.mrf.mxu1 }
 0x1a6   : > { %v1529_v39 = vadd.f32 %v1528_v9, %v4052_v62 }
 0x1a7   : > { %v1530_v55 = vpop.f32.mrf.mxu0  ;;  %v1755_v42 = vpop.f32.mrf.mxu1 }
 0x1a8   : > { %v4230_v19 = vadd.f32 %v1753_v29, %v1529_v39 }
 0x1a9   : > { %v1533_v16 = vpop.f32.mrf.mxu0  ;;  %v1758_v10 = vpop.f32.mrf.mxu1 }
 0x1aa   : > { %v1534_v26 = vadd.f32 %v1533_v16, %v4059_v41 }
 0x1ab   : > { %v1535_v32 = vpop.f32.mrf.mxu0  ;;  %v1760_v3 = vpop.f32.mrf.mxu1 }
 0x1ac   : > { %v4233_v60 = vadd.f32 %v1758_v10, %v1534_v26 }
 0x1ad   : > { %v1538_v6 = vpop.f32.mrf.mxu0  ;;  %v1763_v36 = vpop.f32.mrf.mxu1 }
 0x1ae   : > { %v1539_v51 = vadd.f32 %v1538_v6, %v4068_v46 }
 0x1af   : > { %v1540_v8 = vpop.f32.mrf.mxu0  ;;  %v1765_v4 = vpop.f32.mrf.mxu1 }
 0x1b0   : > { %v4236_v5 = vadd.f32 %v1763_v36, %v1539_v51 }
 0x1b1   : > { %v1543_v62 = vpop.f32.mrf.mxu0  ;;  %v1768_v28 = vpop.f32.mrf.mxu1 }
 0x1b2   : > { %v1544_v13 = vadd.f32 %v1543_v62, %v4078_v58 }
 0x1b3   : > { %v1545_v34 = vpop.f32.mrf.mxu0  ;;  %v1770_v57 = vpop.f32.mrf.mxu1 }
 0x1b4   : > { %v4239_v17 = vadd.f32 %v1768_v28, %v1544_v13 }
 0x1b5   : > { %v1548_v41 = vpop.f32.mrf.mxu0  ;;  %v1773_v24 = vpop.f32.mrf.mxu1 }
 0x1b6   : > { %v1549_v54 = vadd.f32 %v1548_v41, %v4090_v49 }
 0x1b7   : > { %v1550_v18 = vpop.f32.mrf.mxu0  ;;  %v1775_v56 = vpop.f32.mrf.mxu1 }
 0x1b8   : > { %v4242_v37 = vadd.f32 %v1773_v24, %v1549_v54 }
 0x1b9   : > { %v1553_v46 = vpop.f32.mrf.mxu0  ;;  %v1778_v35 = vpop.f32.mrf.mxu1 }
 0x1ba   : > { %v1554_v53 = vadd.f32 %v1553_v46, %v4098_v52 }
 0x1bb   : > { %v1555_v38 = vpop.f32.mrf.mxu0  ;;  %v1780_v44 = vpop.f32.mrf.mxu1 }
 0x1bc   : > { %v4245_v9 = vadd.f32 %v1778_v35, %v1554_v53 }
 0x1bd   : > { %v1558_v58 = vpop.f32.mrf.mxu0  ;;  %v1783_v29 = vpop.f32.mrf.mxu1 }
 0x1be   : > { %v1559_v39 = vadd.f32 %v1558_v58, %v4109_v63 }
 0x1bf   : > { %v1560_v55 = vpop.f32.mrf.mxu0  ;;  %v1785_v42 = vpop.f32.mrf.mxu1 }
 0x1c0   : > { %v4248_v16 = vadd.f32 %v1783_v29, %v1559_v39 }
 0x1c1   : > { %v1563_v49 = vpop.f32.mrf.mxu0  ;;  %v1788_v10 = vpop.f32.mrf.mxu1 }
 0x1c2   : > { %4669 = vst [vmem:[#allocation4_spill] sm:$0xff] %v4248_v16  ;;  %v1564_v26 = vadd.f32 %v1563_v49, %v4119_v12 }
 0x1c3   : > { %v1565_v32 = vpop.f32.mrf.mxu0  ;;  %v1790_v3 = vpop.f32.mrf.mxu1 }
 0x1c4   : > { %v4251_v6 = vadd.f32 %v1788_v10, %v1564_v26 }
 0x1c5   : > { %v1568_v52 = vpop.f32.mrf.mxu0  ;;  %v1793_v36 = vpop.f32.mrf.mxu1 }
 0x1c6   : > { %4670 = vst [vmem:[#allocation8_spill] sm:$0xff] %v4251_v6  ;;  %v1569_v51 = vadd.f32 %v1568_v52, %v4125_v2 }
 0x1c7   : > { %v1570_v8 = vpop.f32.mrf.mxu0  ;;  %v1795_v4 = vpop.f32.mrf.mxu1 }
 0x1c8   : > { %v4254_v62 = vadd.f32 %v1793_v36, %v1569_v51 }
 0x1c9   : > { %v1573_v63 = vpop.f32.mrf.mxu0  ;;  %v1798_v28 = vpop.f32.mrf.mxu1 }
 0x1ca   : > { %4671 = vst [vmem:[#allocation12_spill] sm:$0xff] %v4254_v62  ;;  %v1574_v13 = vadd.f32 %v1573_v63, %v4131_v0 }
 0x1cb   : > { %v1575_v34 = vpop.f32.mrf.mxu0  ;;  %v1800_v57 = vpop.f32.mrf.mxu1 }
 0x1cc   : > { %v4257_v41 = vadd.f32 %v1798_v28, %v1574_v13 }
 0x1cd   : > { %v1578_v12 = vpop.f32.mrf.mxu0  ;;  %v1803_v24 = vpop.f32.mrf.mxu1 }
 0x1ce   : > { %4672 = vst [vmem:[#allocation6_spill] sm:$0xff] %v4257_v41  ;;  %v1579_v54 = vadd.f32 %v1578_v12, %v4138_v33 }
 0x1cf   : > { %v1580_v18 = vpop.f32.mrf.mxu0  ;;  %v1805_v56 = vpop.f32.mrf.mxu1 }
 0x1d0   : > { %v4260_v46 = vadd.f32 %v1803_v24, %v1579_v54 }
 0x1d1   : > { %v1583_v2 = vpop.f32.mrf.mxu0  ;;  %v1808_v35 = vpop.f32.mrf.mxu1 }
 0x1d3   : > { %v1585_v53 = vpop.f32.mrf.mxu0  ;;  %v1810_v38 = vpop.f32.mrf.mxu1 }
 0x1d5   : > { %v1588_v44 = vpop.f32.mrf.mxu0  ;;  %v4262_v58 = vpop.f32.mrf.mxu1 }
 0x1d6   : > { %v1589_v59 = vadd.f32 %v1588_v44, %v4152_v30 }
 0x1d7   : > { %v1590_v0 = vpop.f32.mrf.mxu0  ;;  %v1815_v29 = vpop.f32.mrf.mxu1 }
 0x1d9   : > { %v1593_v39 = vpop.f32.mrf.mxu0  ;;  %v4264_v55 = vpop.f32.mrf.mxu1 }
 0x1db   : > { %v1595_v42 = vpop.f32.mrf.mxu0  ;;  %v1820_v49 = vpop.f32.mrf.mxu1 }
 0x1dd   : > { %v4266_v10 = vpop.f32.mrf.mxu0  ;;  %v4268_v33 = vpop.f32.mrf.mxu1 }
 0x1df   : > { %v1600_v26 = vpop.f32.mrf.mxu0  ;;  %v1825_v32 = vpop.f32.mrf.mxu1 }
 0x1e1   : > { %v1603_v3 = vpop.f32.mrf.mxu0  ;;  %v4270_v52 = vpop.f32.mrf.mxu1 }
 0x1e3   : > { %v1605_v36 = vpop.f32.mrf.mxu0  ;;  %v1830_v51 = vpop.f32.mrf.mxu1 }
 0x1e5   : > { %v4272_v8 = vpop.f32.mrf.mxu0  ;;  %v4274_v4 = vpop.f32.mrf.mxu1 }
 0x1e7   : > { %v1610_v63 = vpop.f32.mrf.mxu0  ;;  %v1835_v28 = vpop.f32.mrf.mxu1 }
 0x1e9   : > { %v4276_v13 = vpop.f32.mrf.mxu0  ;;  %v4278_v34 = vpop.f32.mrf.mxu1 }
 0x1eb   : > { %v1615_v57 = vpop.f32.mrf.mxu0  ;;  %v1840_v12 = vpop.f32.mrf.mxu1 }
 0x1ed   : > { %v4280_v24 = vpop.f32.mrf.mxu0  ;;  %v4282_v54 = vpop.f32.mrf.mxu1 }
 0x1ef   : > { %v1620_v18 = vpop.f32.mrf.mxu0  ;;  %v1845_v56 = vpop.f32.mrf.mxu1 }
 0x1f1   : > { %v4284_v53 = vpop.f32.mrf.mxu0  ;;  %v4286_v38 = vpop.f32.mrf.mxu1 }
 0x1f3   : > { %v1625_v0 = vpop.f32.mrf.mxu0  ;;  %v1850_v29 = vpop.f32.mrf.mxu1 }
 0x1f5   : > { %v4288_v42 = vpop.f32.mrf.mxu0  ;;  %v4290_v49 = vpop.f32.mrf.mxu1 }
 0x1f7   : > { %v1630_v26 = vpop.f32.mrf.mxu0  ;;  %v1855_v32 = vpop.f32.mrf.mxu1 }
 0x1f9   : > { %v4292_v36 = vpop.f32.mrf.mxu0  ;;  %v4294_v51 = vpop.f32.mrf.mxu1 }
 0x1fb   : > { %v1635_v63 = vpop.f32.mrf.mxu0  ;;  %v1860_v28 = vpop.f32.mrf.mxu1 }
 0x1fc   : > { %v1584_v28 = vadd.f32 %v1583_v2, %v4145_v25 }
 0x1fd   : > { %v4296_v57 = vpop.f32.mrf.mxu0  ;;  %v4298_v12 = vpop.f32.mrf.mxu1 }
 0x1fe   : > { %4673 = vst [vmem:[#allocation10_spill] sm:$0xff] %v4298_v12  ;;  %v1809_v6 = vadd.f32 %v1808_v35, %v1584_v28 }
 0x1ff   : > { %v1640_v18 = vpop.f32.mrf.mxu0  ;;  %v1865_v56 = vpop.f32.mrf.mxu1 }
 0x201   : > { %v4300_v0 = vpop.f32.mrf.mxu0  ;;  %v4302_v29 = vpop.f32.mrf.mxu1 }
 0x203   : > { %v1645_v62 = vpop.f32.mrf.mxu0  ;;  %v1870_v26 = vpop.f32.mrf.mxu1 }
 0x204   : > { %v1594_v62 = vadd.f32 %v1593_v39, %v4159_v61  ;;  %v1814_v39 = vadd.f32 %v4262_v58, %v1589_v59  ;;  %v1599_v59 = vadd.f32 %v4266_v10, %v4166_v20 }
 0x205   : > { %v4304_v32 = vpop.f32.mrf.mxu0  ;;  %v4306_v41 = vpop.f32.mrf.mxu1 }
 0x207   : > { %v1650_v16 = vpop.f32.mrf.mxu0  ;;  %v1875_v63 = vpop.f32.mrf.mxu1 }
 0x208   : > { %v1819_v63 = vadd.f32 %v4264_v55, %v1594_v62 }
 0x209   : > { %v4309_v40 = vpop.f32.mrf.mxu0  ;;  %v4311_v12 = vpop.f32.mrf.mxu1 }
 0x20b   : > { %v1655_v18 = vpop.f32.mrf.mxu0  ;;  %v1880_v56 = vpop.f32.mrf.mxu1 }
 0x20d   : > { %v2524_v25 = vpop.f32.mrf.mxu0  ;;  %v2548_v16 = vpop.f32.mrf.mxu1 }
 0x20e   : > { %v1954_v2 = vadd.f32 %v2524_v25, %v4215_v21  ;;  %v4323_v26 = vadd.f32 %v2548_v16, %v1809_v6  ;;  %v1604_v21 = vadd.f32 %v1603_v3, %v4173_v43 }
 0x20f   : > { %v1948_v35 = vpop.f32.mrf.mxu0  ;;  %v2028_v30 = vpop.f32.mrf.mxu1 }
 0x210   : > { %2108 = vst [vmem:[%s4320_s12 + $0x8] sm:$0xff] %v1954_v2  ;;  %2124 = vst [vmem:[%s4320_s12 + $0x88] sm:$0xff] %v4323_v26  ;;  %v1949_v61 = vadd.f32 %v1948_v35, %v4212_v23  ;;  %v4330_v44 = vadd.f32 %v2028_v30, %v4260_v46  ;;  %v2177_v18 = vmul.f32 %v1954_v2, %v1954_v2 }
 0x211   : > { %v2527_v6 = vpop.f32.mrf.mxu0  ;;  %v2551_v28 = vpop.f32.mrf.mxu1  ;;  %v1829_v16 = vadd.f32 %v4270_v52, %v1604_v21  ;;  %v1824_v30 = vadd.f32 %v4268_v33, %v1599_v59  ;;  %v1609_v52 = vadd.f32 %v4272_v8, %v4180_v31 }
 0x212   : > { %2107 = vst [vmem:[%s4320_s12] sm:$0xff] %v1949_v61  ;;  %v2139_v56 = vadd.f32 %v1954_v2, %v1949_v61  ;;  %v2176_v25 = vmul.f32 %v1949_v61, %v1949_v61  ;;  %2123 = vst [vmem:[%s4320_s12 + $0x80] sm:$0xff] %v4330_v44  ;;  %v1964_v23 = vadd.f32 %v2527_v6, %v4221_v22 }
 0x213   : > { %v4341_v46 = vadd.f32 %v2551_v28, %v1819_v63  ;;  %v1958_v58 = vpop.f32.mrf.mxu0  ;;  %v2038_v43 = vpop.f32.mrf.mxu1  ;;  %v1614_v2 = vadd.f32 %v4276_v13, %v4185_v15 }
 0x214   : > { %v2208_v55 = vadd.f32 %v2177_v18, %v2176_v25  ;;  %2110 = vst [vmem:[%s4320_s12 + $0x18] sm:$0xff] %v1964_v23  ;;  %v1959_v3 = vadd.f32 %v1958_v58, %v4218_v50  ;;  %v4345_v62 = vadd.f32 %v2038_v43, %v1814_v39  ;;  %v2179_v39 = vmul.f32 %v1964_v23, %v1964_v23 }
 0x215   : > { %2126 = vst [vmem:[%s4320_s12 + $0x98] sm:$0xff] %v4341_v46  ;;  %v2530_v20 = vpop.f32.mrf.mxu0  ;;  %v2554_v22 = vpop.f32.mrf.mxu1  ;;  %v1839_v28 = vadd.f32 %v4278_v34, %v1614_v2  ;;  %v1619_v34 = vadd.f32 %v4280_v24, %v4188_v45 }
 0x216   : > { %2109 = vst [vmem:[%s4320_s12 + $0x10] sm:$0xff] %v1959_v3  ;;  %v2140_v10 = vadd.f32 %v2139_v56, %v1959_v3  ;;  %v2178_v35 = vmul.f32 %v1959_v3, %v1959_v3  ;;  %2125 = vst [vmem:[%s4320_s12 + $0x90] sm:$0xff] %v4345_v62  ;;  %v1974_v50 = vadd.f32 %v2530_v20, %v4227_v1 }
 0x217   : > { %v4359_v15 = vadd.f32 %v2554_v22, %v1829_v16  ;;  %v1968_v13 = vpop.f32.mrf.mxu0  ;;  %v2048_v61 = vpop.f32.mrf.mxu1  ;;  %v1624_v1 = vadd.f32 %v4284_v53, %v4191_v14 }
 0x218   : > { %v2209_v63 = vadd.f32 %v2208_v55, %v2178_v35  ;;  %2112 = vst [vmem:[%s4320_s12 + $0x28] sm:$0xff] %v1974_v50  ;;  %v1969_v21 = vadd.f32 %v1968_v13, %v4224_v7  ;;  %v2141_v6 = vadd.f32 %v2140_v10, %v1964_v23  ;;  %v4368_v33 = vadd.f32 %v2048_v61, %v1824_v30 }
 0x219   : > { %2128 = vst [vmem:[%s4320_s12 + $0xa8] sm:$0xff] %v4359_v15  ;;  %v2533_v31 = vpop.f32.mrf.mxu0  ;;  %v2557_v8 = vpop.f32.mrf.mxu1  ;;  %v1834_v23 = vadd.f32 %v4274_v4, %v1609_v52  ;;  %v2181_v58 = vmul.f32 %v1974_v50, %v1974_v50  ;;  %v1634_v4 = vadd.f32 %v4292_v36, %v4197_v48  ;;  %v1844_v10 = vadd.f32 %v4282_v54, %v1619_v34 }
 0x21a   : > { %2111 = vst [vmem:[%s4320_s12 + $0x20] sm:$0xff] %v1969_v21  ;;  %v2142_v18 = vadd.f32 %v2141_v6, %v1969_v21  ;;  %v2180_v56 = vmul.f32 %v1969_v21, %v1969_v21  ;;  %v2210_v25 = vadd.f32 %v2209_v63, %v2179_v39  ;;  %v1984_v7 = vadd.f32 %v2533_v31, %v4233_v60 }
 0x21b   : > { %2127 = vst [vmem:[%s4320_s12 + $0xa0] sm:$0xff] %v4368_v33  ;;  %v4377_v14 = vadd.f32 %v2557_v8, %v1839_v28  ;;  %v1978_v53 = vpop.f32.mrf.mxu0  ;;  %v2058_v59 = vpop.f32.mrf.mxu1  ;;  %v1849_v60 = vadd.f32 %v4286_v38, %v1624_v1  ;;  %v1629_v38 = vadd.f32 %v4288_v42, %v4194_v11  ;;  %v1644_v54 = vadd.f32 %v4300_v0, %v4203_v27 }
 0x21c   : > { %v2211_v43 = vadd.f32 %v2210_v25, %v2180_v56  ;;  %2114 = vst [vmem:[%s4320_s12 + $0x38] sm:$0xff] %v1984_v7  ;;  %v1979_v55 = vadd.f32 %v1978_v53, %v4230_v19  ;;  %v2143_v3 = vadd.f32 %v2142_v18, %v1974_v50  ;;  %v4386_v45 = vadd.f32 %v2058_v59, %v1834_v23  ;;  %v4675_v53 = vld [vmem:[#allocation8_spill] sm:$0xff]  ;;  %v4676_v59 = vld [vmem:[#allocation10_spill] sm:$0xff] }
 0x21d   : > { %2130 = vst [vmem:[%s4320_s12 + $0xb8] sm:$0xff] %v4377_v14  ;;  %v2536_v24 = vpop.f32.mrf.mxu0  ;;  %v2560_v16 = vpop.f32.mrf.mxu1  ;;  %v2183_v50 = vmul.f32 %v1984_v7, %v1984_v7  ;;  %v1854_v6 = vadd.f32 %v4290_v49, %v1629_v38  ;;  %v4674_v49 = vld [vmem:[#allocation9_spill] sm:$0xff] }
 0x21e   : > { %2113 = vst [vmem:[%s4320_s12 + $0x30] sm:$0xff] %v1979_v55  ;;  %v2144_v2 = vadd.f32 %v2143_v3, %v1979_v55  ;;  %v2182_v20 = vmul.f32 %v1979_v55, %v1979_v55  ;;  %v2212_v22 = vadd.f32 %v2211_v43, %v2181_v58  ;;  %v1994_v19 = vadd.f32 %v2536_v24, %v4239_v17  ;;  %v4678_v24 = vld [vmem:[#allocation4_spill] sm:$0xff] }
 0x21f   : > { %2129 = vst [vmem:[%s4320_s12 + $0xb0] sm:$0xff] %v4386_v45  ;;  %v4395_v48 = vadd.f32 %v2560_v16, %v1849_v60  ;;  %v1988_v36 = vpop.f32.mrf.mxu0  ;;  %v2068_v35 = vpop.f32.mrf.mxu1  ;;  %v1859_v17 = vadd.f32 %v4294_v51, %v1634_v4  ;;  %v1639_v51 = vadd.f32 %v4296_v57, %v4200_v47  ;;  %v1654_v56 = vadd.f32 %v4309_v40, %v4674_v49 }
 0x220   : > { %v2213_v30 = vadd.f32 %v2212_v22, %v2182_v20  ;;  %2116 = vst [vmem:[%s4320_s12 + $0x48] sm:$0xff] %v1994_v19  ;;  %v1989_v52 = vadd.f32 %v1988_v36, %v4236_v5  ;;  %v2145_v13 = vadd.f32 %v2144_v2, %v1984_v7  ;;  %v4404_v11 = vadd.f32 %v2068_v35, %v1844_v10  ;;  %v4679_v35 = vld [vmem:[#allocation6_spill] sm:$0xff] }
 0x221   : > { %2132 = vst [vmem:[%s4320_s12 + $0xc8] sm:$0xff] %v4395_v48  ;;  %v2539_v42 = vpop.f32.mrf.mxu0  ;;  %v2563_v61 = vpop.f32.mrf.mxu1  ;;  %v2185_v1 = vmul.f32 %v1994_v19, %v1994_v19  ;;  %v1864_v58 = vadd.f32 %v4676_v59, %v1639_v51  ;;  %v1879_v20 = vadd.f32 %v4311_v12, %v1654_v56  ;;  %v2194_v49 = vmul.f32 %v4345_v62, %v4345_v62 }
 0x222   : > { %2115 = vst [vmem:[%s4320_s12 + $0x40] sm:$0xff] %v1989_v52  ;;  %v2146_v39 = vadd.f32 %v2145_v13, %v1989_v52  ;;  %v2184_v63 = vmul.f32 %v1989_v52, %v1989_v52  ;;  %v2214_v21 = vadd.f32 %v2213_v30, %v2183_v50  ;;  %v2004_v5 = vadd.f32 %v2539_v42, %v4245_v9  ;;  %v4680_v42 = vld [vmem:[#allocation12_spill] sm:$0xff] }
 0x223   : > { %2131 = vst [vmem:[%s4320_s12 + $0xc0] sm:$0xff] %v4404_v11  ;;  %v4413_v27 = vadd.f32 %v2563_v61, %v1859_v17  ;;  %v1998_v0 = vpop.f32.mrf.mxu0  ;;  %v2078_v28 = vpop.f32.mrf.mxu1  ;;  %v1869_v9 = vadd.f32 %v4302_v29, %v1644_v54  ;;  %v4677_v29 = vld [vmem:[#allocation5_spill] sm:$0xff] }
 0x224   : > { %v2215_v31 = vadd.f32 %v2214_v21, %v2184_v63  ;;  %2118 = vst [vmem:[%s4320_s12 + $0x58] sm:$0xff] %v2004_v5  ;;  %v1999_v8 = vadd.f32 %v1998_v0, %v4242_v37  ;;  %v2147_v18 = vadd.f32 %v2146_v39, %v1994_v19  ;;  %v4422_v47 = vadd.f32 %v2078_v28, %v1854_v6 }
 0x225   : > { %2134 = vst [vmem:[%s4320_s12 + $0xd8] sm:$0xff] %v4413_v27  ;;  %v2542_v57 = vpop.f32.mrf.mxu0  ;;  %v2566_v25 = vpop.f32.mrf.mxu1  ;;  %v1649_v40 = vadd.f32 %v4304_v32, %v4677_v29  ;;  %v2187_v60 = vmul.f32 %v2004_v5, %v2004_v5  ;;  %v2192_v28 = vmul.f32 %v4330_v44, %v4330_v44 }
 0x226   : > { %2117 = vst [vmem:[%s4320_s12 + $0x50] sm:$0xff] %v1999_v8  ;;  %v2148_v7 = vadd.f32 %v2147_v18, %v1999_v8  ;;  %v2186_v23 = vmul.f32 %v1999_v8, %v1999_v8  ;;  %v2216_v34 = vadd.f32 %v2215_v31, %v2185_v1  ;;  %v2014_v37 = vadd.f32 %v2542_v57, %v4675_v53 }
 0x227   : > { %2133 = vst [vmem:[%s4320_s12 + $0xd0] sm:$0xff] %v4422_v47  ;;  %v4431_v43 = vadd.f32 %v2566_v25, %v1869_v9  ;;  %v2008_v55 = vpop.f32.mrf.mxu0  ;;  %v2088_v3 = vpop.f32.mrf.mxu1  ;;  %v1874_v30 = vadd.f32 %v4306_v41, %v1649_v40  ;;  %v2193_v8 = vmul.f32 %v4323_v26, %v4323_v26  ;;  %v2195_v25 = vmul.f32 %v4341_v46, %v4341_v46 }
 0x228   : > { %v2217_v4 = vadd.f32 %v2216_v34, %v2186_v23  ;;  %2120 = vst [vmem:[%s4320_s12 + $0x68] sm:$0xff] %v2014_v37  ;;  %v2009_v16 = vadd.f32 %v2008_v55, %v4678_v24  ;;  %v2149_v2 = vadd.f32 %v2148_v7, %v2004_v5  ;;  %v4438_v22 = vadd.f32 %v2088_v3, %v1864_v58 }
 0x229   : > { %2136 = vst [vmem:[%s4320_s12 + $0xe8] sm:$0xff] %v4431_v43  ;;  %v2545_v32 = vpop.f32.mrf.mxu0  ;;  %v2569_v19 = vpop.f32.mrf.mxu1  ;;  %v2189_v17 = vmul.f32 %v2014_v37, %v2014_v37 }
 0x22a   : > { %2119 = vst [vmem:[%s4320_s12 + $0x60] sm:$0xff] %v2009_v16  ;;  %v2150_v10 = vadd.f32 %v2149_v2, %v2009_v16  ;;  %v2188_v38 = vmul.f32 %v2009_v16, %v2009_v16  ;;  %v2218_v36 = vadd.f32 %v2217_v4, %v2187_v60  ;;  %v2024_v50 = vadd.f32 %v2545_v32, %v4679_v35 }
 0x22b   : > { %2135 = vst [vmem:[%s4320_s12 + $0xe0] sm:$0xff] %v4438_v22  ;;  %v4445_v12 = vadd.f32 %v2569_v19, %v1879_v20  ;;  %v2018_v52 = vpop.f32.mrf.mxu0  ;;  %v2098_v13 = vpop.f32.mrf.mxu1 }
 0x22c   : > { %v2219_v54 = vadd.f32 %v2218_v36, %v2188_v38  ;;  %2122 = vst [vmem:[%s4320_s12 + $0x78] sm:$0xff] %v2024_v50  ;;  %v2019_v61 = vadd.f32 %v2018_v52, %v4680_v42  ;;  %v2151_v39 = vadd.f32 %v2150_v10, %v2014_v37  ;;  %v2099_v63 = vadd.f32 %v2098_v13, %v1874_v30 }
 0x22d   : > { %2138 = vst [vmem:[%s4320_s12 + $0xf8] sm:$0xff] %v4445_v12  ;;  %v2191_v6 = vmul.f32 %v2024_v50, %v2024_v50 }
 0x22e   : > { %2121 = vst [vmem:[%s4320_s12 + $0x70] sm:$0xff] %v2019_v61  ;;  %v2152_v21 = vadd.f32 %v2151_v39, %v2019_v61  ;;  %v2190_v5 = vmul.f32 %v2019_v61, %v2019_v61  ;;  %v2220_v41 = vadd.f32 %v2219_v54, %v2189_v17  ;;  %2137 = vst [vmem:[%s4320_s12 + $0xf0] sm:$0xff] %v2099_v63 }
 0x22f   : > { %v2206_v35 = vmul.f32 %v2099_v63, %v2099_v63 }
 0x230   : > { %v2153_v51 = vadd.f32 %v2152_v21, %v2024_v50  ;;  %v2221_v0 = vadd.f32 %v2220_v41, %v2190_v5 }
 0x232   : > { %v2154_v1 = vadd.f32 %v2153_v51, %v4330_v44  ;;  %v2222_v31 = vadd.f32 %v2221_v0, %v2191_v6  ;;  %v2196_v44 = vmul.f32 %v4368_v33, %v4368_v33 }
 0x234   : > { %v2155_v18 = vadd.f32 %v2154_v1, %v4323_v26  ;;  %v2223_v9 = vadd.f32 %v2222_v31, %v2192_v28  ;;  %v2197_v26 = vmul.f32 %v4359_v15, %v4359_v15 }
 0x236   : > { %v2156_v56 = vadd.f32 %v2155_v18, %v4345_v62  ;;  %v2224_v57 = vadd.f32 %v2223_v9, %v2193_v8  ;;  %v2198_v62 = vmul.f32 %v4386_v45, %v4386_v45 }
 0x238   : > { %v2157_v7 = vadd.f32 %v2156_v56, %v4341_v46  ;;  %v2225_v23 = vadd.f32 %v2224_v57, %v2194_v49  ;;  %v2199_v46 = vmul.f32 %v4377_v14, %v4377_v14 }
 0x23a   : > { %v2158_v34 = vadd.f32 %v2157_v7, %v4368_v33  ;;  %v2226_v53 = vadd.f32 %v2225_v23, %v2195_v25  ;;  %v2200_v33 = vmul.f32 %v4404_v11, %v4404_v11 }
 0x23c   : > { %v2159_v37 = vadd.f32 %v2158_v34, %v4359_v15  ;;  %v2227_v59 = vadd.f32 %v2226_v53, %v2196_v44  ;;  %v2201_v15 = vmul.f32 %v4395_v48, %v4395_v48 }
 0x23e   : > { %v2228_v58 = vadd.f32 %v2227_v59, %v2197_v26  ;;  %v2160_v29 = vadd.f32 %v2159_v37, %v4386_v45  ;;  %v2202_v45 = vmul.f32 %v4422_v47, %v4422_v47 }
 0x240   : > { %v2161_v40 = vadd.f32 %v2160_v29, %v4377_v14  ;;  %v2229_v55 = vadd.f32 %v2228_v58, %v2198_v62  ;;  %v2203_v14 = vmul.f32 %v4413_v27, %v4413_v27 }
 0x242   : > { %v2162_v3 = vadd.f32 %v2161_v40, %v4404_v11  ;;  %v2230_v60 = vadd.f32 %v2229_v55, %v2199_v46  ;;  %v2204_v11 = vmul.f32 %v4438_v22, %v4438_v22 }
 0x244   : > { %v2163_v4 = vadd.f32 %v2162_v3, %v4395_v48  ;;  %v2231_v24 = vadd.f32 %v2230_v60, %v2200_v33  ;;  %v2205_v48 = vmul.f32 %v4431_v43, %v4431_v43 }
 0x246   : > { %v2164_v16 = vadd.f32 %v2163_v4, %v4422_v47  ;;  %v2232_v2 = vadd.f32 %v2231_v24, %v2201_v15 }
 0x248   : > { %v2165_v20 = vadd.f32 %v2164_v16, %v4413_v27  ;;  %v2233_v32 = vadd.f32 %v2232_v2, %v2202_v45  ;;  %v2207_v27 = vmul.f32 %v4445_v12, %v4445_v12 }
 0x24a   : > { %v2166_v19 = vadd.f32 %v2165_v20, %v4438_v22  ;;  %v2234_v10 = vadd.f32 %v2233_v32, %v2203_v14 }
 0x24c   : > { %v2167_v38 = vadd.f32 %v2166_v19, %v4431_v43  ;;  %v2235_v36 = vadd.f32 %v2234_v10, %v2204_v11 }
 0x24e   : > { %v2168_v47 = vadd.f32 %v2167_v38, %v2099_v63  ;;  %v2236_v50 = vadd.f32 %v2235_v36, %v2205_v48 }
 0x250   : > { %v2169_v30 = vadd.f32 %v2168_v47, %v4445_v12  ;;  %v2237_v52 = vadd.f32 %v2236_v50, %v2206_v35 }
 0x252   : > { %v2170_v13 = vrot.slane %v2169_v30, 4  ;;  %v2238_v17 = vadd.f32 %v2237_v52, %v2207_v27 }
 0x254   : > { %v2171_v22 = vadd.f32 %v2170_v13, %v2169_v30  ;;  %v2239_v54 = vrot.slane %v2238_v17, 4 }
 0x256   : > { %v2172_v42 = vrot.slane %v2171_v22, 2  ;;  %v2240_v61 = vadd.f32 %v2239_v54, %v2238_v17 }
 0x258   : > { %v2173_v39 = vadd.f32 %v2172_v42, %v2171_v22  ;;  %v2241_v21 = vrot.slane %v2240_v61, 2 }
 0x25a   : > { %v2174_v43 = vrot.slane %v2173_v39, 1  ;;  %v2242_v5 = vadd.f32 %v2241_v21, %v2240_v61 }
 0x25c   : > { %v2243_v41 = vrot.slane %v2242_v5, 1  ;;  %v2175_v63 = vadd.f32 %v2174_v43, %v2173_v39 }
 0x25e   : > { %v2244_v6 = vadd.f32 %v2243_v41, %v2242_v5 }
 0x260   : > { %v2245_v12 = vsel %vm437_vm0, %v2175_v63, %v2244_v6 }
 0x261   : > { %2246 = vst [vmem:[%s262_s26] sm:$0x3] %v2245_v12 }
 0x262 PF: > { %s17_s21 = sadd.s32 1, %s2619_s21  }
 0x263   : > { %p14_p4 = scmp.ge.s32.totalorder %s17_s21, 4  }
 0x265   :  { %16 = sbr.rel (!%p14_p4) target bundleno = 1 (0x1), region = 82 }

// kernel: double_conv.3
= control target key start
LH: loop header
LB: loop body
LE: loop exit
PB: predicated region body
PF: predicated region fallthrough
CT: control target
= control target key end

     0   :  { %s4435_s15 = smov 0   ;;  %s6135_s0 = inlined_call_operand.vmem [shape: f32[2,16,16,4], index: 0, kind: input, shape index: {}]   ;;  %s6136_s1 = inlined_call_operand.vmem [shape: f32[9,4,128], index: 1, kind: input, shape index: {}]   ;;  %s6137_s2 = inlined_call_operand.vmem [shape: f32[1,128], index: 2, kind: input, shape index: {}]   ;;  %s6138_s3 = inlined_call_operand.vmem [shape: f32[2,16,16,128], index: 3, kind: output, shape index: {0}]   ;;  %s6139_s4 = inlined_call_operand.vmem [shape: f32[2,2,128], index: 4, kind: output, shape index: {1}]  }
   0x1 LB: > { %s3335_s16 = sadd.s32 4294967295, %s4407_s15   ;;  %p3339_p0 = scmp.ge.s32.totalorder %s4407_s15, 1  ;;  %s4407_s15 = sphi %s4435_s15, %s15_s15  }
   0x2   : > { %p165_p1 = scmp.lt.s32.totalorder %s4407_s15, 3 }
   0x4   : > { %p166_p2 = pnand %p3339_p0, %p165_p1 }
   0x6   : > { %169 = sbr.rel (%p166_p2) target bundleno = 536 (0x218), region = 32 }
   0xb   : > { %v387_v0 = vld [vmem:[%s6136_s1 + $0x4] sm:$0xf]  ;;  %vm567_vm0 = vcmask 1043456   ;;  %vm504_vm1 = vcmask 31744   ;;  %p195_p3 = scmp.lt.s32.totalorder %s3335_s16, 1  ;;  %v6140_v1 = vmov 0.0  }
   0xc   : > { %4390 = vmatprep.subr.msk.mxu1 %vm567_vm0, %v387_v0  ;;  %3940 = vmatprep.subr.msk.mxu0 %vm567_vm0, %v387_v0  ;;  %v4449_v2 = vrot.slane %v6140_v1, 1  ;;  %v386_v3 = vld [vmem:[%s6136_s1] sm:$0xf]  ;;  %v388_v4 = vld [vmem:[%s6136_s1 + $0x8] sm:$0xf]  ;;  %vm273_vm2 = vcmask 1040384  }
   0xd   : > { %4391 = vmatpush3.msk.msra.mxu1 %vm567_vm0, %v387_v0  ;;  %3941 = vmatpush3.msk.msra.mxu0 %vm567_vm0, %v387_v0  ;;  %s6447_s16 = smov (!%p195_p3, %s3335_s16), 1  ;;  %v4467_v5 = vld [vmem:[%s6136_s1 + $0x10] sm:$0xf]  ;;  %vm426_vm3 = vcmask 1046528   ;;  %v4490_v18 = vrot.slane %v6140_v1, 2  ;;  %vm1086_vm4 = vcmask 1045504  }
   0xe   : > { %6228 = vst [vmem:[#allocation2_spill] sm:$0xff] %v4449_v2  ;;  %3942 = vmatprep.mubr.msk.f32.mxu0 %vm504_vm1, %v4449_v2  ;;  %3990 = vmatprep.subr.msk.mxu1 %vm567_vm0, %v386_v3  ;;  %s3641_s25 = sshll.u32 %s6447_s16, 8  ;;  %v4545_v44 = vld [vmem:[%s6136_s1 + $0xc] sm:$0xf]  ;;  %s3344_s20 = sshll.u32 %s6447_s16, 1 }
   0xf   : > { %3943 = vmatmul.mubr.msk.f32.vlgmr.msra.gmra.mxu0 %vm504_vm1, %v4449_v2  ;;  %4040 = vmatprep.subr.msk.mxu0 %vm567_vm0, %v388_v4  ;;  %s4478_s28 = scalar_lea.vmem %s6135_s0, %s3641_s25  ;;  %6229 = vst [vmem:[#allocation3_spill] sm:$0xff] %v4490_v18  ;;  %s5980_s19 = scalar_lea.vmem %s6138_s3, %s3641_s25 }
  0x10   : > { %4041 = vmatpush3.msk.msra.mxu0 %vm567_vm0, %v388_v4  ;;  %v223_v6 = vld [vmem:[%s4478_s28 + $0x70] sm:$0xff]  ;;  %v224_v7 = vld [vmem:[%s4478_s28 + $0x78] sm:$0xff]  ;;  %v209_v8 = vld [vmem:[%s4478_s28] sm:$0xff]  ;;  %s208_s23 = scalar_lea.vmem %s6139_s4, %s3344_s20 }
  0x11   : > { %4140 = vmatprep.subr.msk.mxu0 %vm567_vm0, %v4467_v5  ;;  %v295_v9 = vrot.slane %v223_v6, 7  ;;  %v296_v10 = vrot.slane %v224_v7, 7  ;;  %v210_v11 = vld [vmem:[%s4478_s28 + $0x8] sm:$0xff]  ;;  %v274_v12 = vrot.slane %v209_v8, 7  ;;  %v225_v13 = vld [vmem:[%s4478_s28 + $0x80] sm:$0xff]  ;;  %v211_v27 = vld [vmem:[%s4478_s28 + $0x10] sm:$0xff] }
  0x12   : > { %v226_v14 = vld [vmem:[%s4478_s28 + $0x88] sm:$0xff]  ;;  %v275_v15 = vrot.slane %v210_v11, 7  ;;  %v298_v16 = vrot.slane %v225_v13, 7  ;;  %v212_v32 = vld [vmem:[%s4478_s28 + $0x18] sm:$0xff]  ;;  %v227_v37 = vld [vmem:[%s4478_s28 + $0x90] sm:$0xff]  ;;  %v277_v43 = vrot.slane %v211_v27, 7 }
  0x13   : > { %v299_v17 = vrot.slane %v226_v14, 7  ;;  %v4493_v19 = vsel %vm273_vm2, %v295_v9, %v296_v10  ;;  %v4496_v20 = vsel %vm273_vm2, 0.0, %v295_v9  ;;  %v4499_v21 = vsel %vm273_vm2, %v296_v10, 0.0  ;;  %v228_v38 = vld [vmem:[%s4478_s28 + $0x98] sm:$0xff]  ;;  %v213_v39 = vld [vmem:[%s4478_s28 + $0x20] sm:$0xff]  ;;  %v214_v57 = vld [vmem:[%s4478_s28 + $0x28] sm:$0xff] }
  0x14   : > { %v4502_v22 = vsel %vm273_vm2, 0.0, %v274_v12  ;;  %v464_v23 = vrot.slane %v4496_v20, 1  ;;  %v465_v24 = vrot.slane %v4493_v19, 1  ;;  %v467_v25 = vrot.slane %v4499_v21, 1  ;;  %v229_v62 = vld [vmem:[%s4478_s28 + $0xa0] sm:$0xff]  ;;  %v230_v6 = vld [vmem:[%s4478_s28 + $0xa8] sm:$0xff] }
  0x15   : > { %v4508_v26 = vsel %vm273_vm2, %v274_v12, %v275_v15  ;;  %v429_v28 = vrot.slane %v4502_v22, 1  ;;  %v4514_v30 = vsel %vm273_vm2, %v298_v16, %v299_v17  ;;  %v4517_v31 = vsel %vm273_vm2, 0.0, %v298_v16  ;;  %v215_v11 = vld [vmem:[%s4478_s28 + $0x30] sm:$0xff]  ;;  %v216_v16 = vld [vmem:[%s4478_s28 + $0x38] sm:$0xff] }
  0x16   : > { %v430_v29 = vrot.slane %v4508_v26, 1  ;;  %v4521_v33 = vsel %vm426_vm3, %v464_v23, %v465_v24  ;;  %v4524_v34 = vsel %vm426_vm3, %v465_v24, %v467_v25  ;;  %v469_v35 = vrot.slane %v4517_v31, 1 }
  0x17   : > { %6230 = vst [vmem:[#allocation4_spill] sm:$0xff] %v4521_v33  ;;  %6231 = vst [vmem:[#allocation5_spill] sm:$0xff] %v4524_v34  ;;  %v470_v36 = vrot.slane %v4514_v30, 1  ;;  %3966 = vmatprep.mubr.msk.f32.mxu1 %vm504_vm1, %v4521_v33  ;;  %v4537_v41 = vsel %vm273_vm2, %v275_v15, 0.0  ;;  %v4540_v42 = vsel %vm273_vm2, %v299_v17, 0.0  ;;  %v278_v48 = vrot.slane %v212_v32, 7 }
  0x18   : > { %v4534_v40 = vsel %vm426_vm3, %v429_v28, %v430_v29  ;;  %3967 = vmatmul.mubr.msk.f32.vlgmr.msra.gmra.mxu1 %vm504_vm1, %v4524_v34  ;;  %v432_v46 = vrot.slane %v4537_v41, 1  ;;  %v472_v47 = vrot.slane %v4540_v42, 1  ;;  %v4560_v49 = vsel %vm273_vm2, 0.0, %v277_v43 }
  0x19   : > { %3945 = vmatprep.mubr.msk.f32.mxu0 %vm504_vm1, %v4534_v40  ;;  %v4552_v45 = vsel %vm426_vm3, %v469_v35, %v470_v36  ;;  %3991 = vmatpush3.msk.msra.mxu1 %vm567_vm0, %v386_v3  ;;  %v301_v50 = vrot.slane %v227_v37, 7  ;;  %v302_v51 = vrot.slane %v228_v38, 7  ;;  %v280_v52 = vrot.slane %v213_v39, 7  ;;  %v231_v35 = vld [vmem:[%s4478_s28 + $0xb0] sm:$0xff] }
  0x1a   : > { %6232 = vst [vmem:[#allocation6_spill] sm:$0xff] %v4552_v45  ;;  %3969 = vmatprep.mubr.msk.f32.mxu1 %vm504_vm1, %v4552_v45  ;;  %v4563_v53 = vsel %vm426_vm3, %v430_v29, %v432_v46  ;;  %v4566_v54 = vsel %vm426_vm3, %v470_v36, %v472_v47  ;;  %v4569_v55 = vsel %vm273_vm2, %v277_v43, %v278_v48  ;;  %v434_v56 = vrot.slane %v4560_v49, 1  ;;  %v232_v36 = vld [vmem:[%s4478_s28 + $0xb8] sm:$0xff] }
  0x1b   : > { %6233 = vst [vmem:[#allocation7_spill] sm:$0xff] %v4566_v54  ;;  %4090 = vmatprep.subr.msk.mxu1 %vm567_vm0, %v4545_v44  ;;  %3946 = vmatmul.mubr.msk.f32.gmra.mxu0 %vm504_vm1, %v4563_v53  ;;  %v435_v58 = vrot.slane %v4569_v55, 1  ;;  %v4579_v59 = vsel %vm273_vm2, %v301_v50, %v302_v51  ;;  %v4582_v60 = vsel %vm273_vm2, 0.0, %v301_v50  ;;  %v4585_v61 = vsel %vm273_vm2, %v278_v48, 0.0 }
  0x1c   : > { %3970 = vmatmul.mubr.msk.f32.gmra.mxu1 %vm504_vm1, %v4566_v54  ;;  %v474_v63 = vrot.slane %v4582_v60, 1  ;;  %v475_v0 = vrot.slane %v4579_v59, 1  ;;  %v437_v3 = vrot.slane %v4585_v61, 1  ;;  %v4594_v4 = vsel %vm273_vm2, %v302_v51, 0.0  ;;  %v222_v54 = vld [vmem:[%s4478_s28 + $0x68] sm:$0xff] }
  0x1d   : > { %v4598_v7 = vsel %vm426_vm3, %v434_v56, %v435_v58  ;;  %v477_v8 = vrot.slane %v4594_v4, 1  ;;  %v281_v9 = vrot.slane %v214_v57, 7  ;;  %v4602_v10 = vsel %vm273_vm2, 0.0, %v280_v52 }
  0x1e   : > { %3948 = vmatprep.mubr.msk.f32.mxu0 %vm504_vm1, %v4598_v7  ;;  %v4608_v12 = vsel %vm426_vm3, %v474_v63, %v475_v0  ;;  %v4611_v13 = vsel %vm426_vm3, %v435_v58, %v437_v3  ;;  %v439_v14 = vrot.slane %v4602_v10, 1  ;;  %v304_v15 = vrot.slane %v229_v62, 7  ;;  %v217_v3 = vld [vmem:[%s4478_s28 + $0x40] sm:$0xff] }
  0x1f   : > { %6234 = vst [vmem:[#allocation8_spill] sm:$0xff] %v4608_v12  ;;  %3972 = vmatprep.mubr.msk.f32.mxu1 %vm504_vm1, %v4608_v12  ;;  %3949 = vmatmul.mubr.msk.f32.gmra.mxu0 %vm504_vm1, %v4611_v13  ;;  %v4620_v17 = vsel %vm426_vm3, %v475_v0, %v477_v8  ;;  %v4623_v23 = vsel %vm273_vm2, %v280_v52, %v281_v9  ;;  %v305_v24 = vrot.slane %v230_v6, 7  ;;  %v4626_v25 = vsel %vm273_vm2, %v281_v9, 0.0  ;;  %v218_v6 = vld [vmem:[%s4478_s28 + $0x48] sm:$0xff]  ;;  %v233_v8 = vld [vmem:[%s4478_s28 + $0xc0] sm:$0xff] }
  0x20   : > { %6235 = vst [vmem:[#allocation9_spill] sm:$0xff] %v4620_v17  ;;  %3973 = vmatmul.mubr.msk.f32.gmra.mxu1 %vm504_vm1, %v4620_v17  ;;  %v440_v27 = vrot.slane %v4623_v23, 1  ;;  %v4632_v28 = vsel %vm273_vm2, 0.0, %v304_v15  ;;  %v442_v29 = vrot.slane %v4626_v25, 1  ;;  %v283_v32 = vrot.slane %v215_v11, 7  ;;  %v221_v12 = vld [vmem:[%s4478_s28 + $0x60] sm:$0xff] }
  0x21   : > { %v4638_v37 = vsel %vm273_vm2, %v304_v15, %v305_v24  ;;  %v479_v38 = vrot.slane %v4632_v28, 1  ;;  %v4642_v39 = vsel %vm273_vm2, %v305_v24, 0.0  ;;  %v284_v43 = vrot.slane %v216_v16, 7  ;;  %v234_v16 = vld [vmem:[%s4478_s28 + $0xc8] sm:$0xff]  ;;  %v219_v24 = vld [vmem:[%s4478_s28 + $0x50] sm:$0xff] }
  0x22   : > { %v4645_v46 = vsel %vm426_vm3, %v439_v14, %v440_v27  ;;  %v480_v47 = vrot.slane %v4638_v37, 1  ;;  %v4649_v48 = vsel %vm426_vm3, %v440_v27, %v442_v29  ;;  %v482_v50 = vrot.slane %v4642_v39, 1 }
  0x23   : > { %6236 = vst [vmem:[#allocation10_spill] sm:$0xff] %v4645_v46  ;;  %6237 = vst [vmem:[#allocation11_spill] sm:$0xff] %v4649_v48  ;;  %3951 = vmatprep.mubr.msk.f32.mxu0 %vm504_vm1, %v4645_v46  ;;  %v4655_v51 = vsel %vm273_vm2, %v283_v32, %v284_v43  ;;  %v4658_v52 = vsel %vm273_vm2, 0.0, %v283_v32  ;;  %v307_v56 = vrot.slane %v231_v35, 7  ;;  %v308_v57 = vrot.slane %v232_v36, 7 }
  0x24   : > { %v4661_v58 = vsel %vm426_vm3, %v479_v38, %v480_v47  ;;  %3952 = vmatmul.mubr.msk.f32.gmra.mxu0 %vm504_vm1, %v4649_v48  ;;  %v4666_v62 = vsel %vm426_vm3, %v480_v47, %v482_v50  ;;  %v444_v63 = vrot.slane %v4658_v52, 1  ;;  %v445_v0 = vrot.slane %v4655_v51, 1 }
  0x25   : > { %6238 = vst [vmem:[#allocation12_spill] sm:$0xff] %v4661_v58  ;;  %6239 = vst [vmem:[#allocation13_spill] sm:$0xff] %v4666_v62  ;;  %3975 = vmatprep.mubr.msk.f32.mxu1 %vm504_vm1, %v4661_v58  ;;  %v4676_v9 = vsel %vm273_vm2, %v307_v56, %v308_v57  ;;  %v4679_v11 = vsel %vm273_vm2, 0.0, %v307_v56  ;;  %v4682_v14 = vsel %vm273_vm2, %v284_v43, 0.0  ;;  %v4685_v15 = vsel %vm273_vm2, %v308_v57, 0.0 }
  0x26   : > { %3976 = vmatmul.mubr.msk.f32.gmra.mxu1 %vm504_vm1, %v4666_v62  ;;  %v4692_v27 = vsel %vm426_vm3, %v444_v63, %v445_v0  ;;  %v484_v29 = vrot.slane %v4679_v11, 1  ;;  %v485_v32 = vrot.slane %v4676_v9, 1  ;;  %v447_v35 = vrot.slane %v4682_v14, 1  ;;  %v220_v63 = vld [vmem:[%s4478_s28 + $0x58] sm:$0xff] }
  0x27   : > { %6240 = vst [vmem:[#allocation14_spill] sm:$0xff] %v4692_v27  ;;  %3954 = vmatprep.mubr.msk.f32.mxu0 %vm504_vm1, %v4692_v27  ;;  %v487_v36 = vrot.slane %v4685_v15, 1  ;;  %v286_v38 = vrot.slane %v217_v3, 7  ;;  %v287_v43 = vrot.slane %v218_v6, 7  ;;  %v310_v47 = vrot.slane %v233_v8, 7 }
  0x28   : > { %v4701_v50 = vsel %vm426_vm3, %v484_v29, %v485_v32  ;;  %v4704_v56 = vsel %vm426_vm3, %v445_v0, %v447_v35  ;;  %v311_v57 = vrot.slane %v234_v16, 7  ;;  %v289_v1 = vrot.slane %v219_v24, 7  ;;  %v235_v35 = vld [vmem:[%s4478_s28 + $0xd0] sm:$0xff] }
  0x29   : > { %6241 = vst [vmem:[#allocation15_spill] sm:$0xff] %v4701_v50  ;;  %6242 = vst [vmem:[#allocation16_spill] sm:$0xff] %v4704_v56  ;;  %3978 = vmatprep.mubr.msk.f32.mxu1 %vm504_vm1, %v4701_v50  ;;  %3955 = vmatmul.mubr.msk.f32.gmra.mxu0 %vm504_vm1, %v4704_v56  ;;  %v4712_v3 = vsel %vm426_vm3, %v485_v32, %v487_v36  ;;  %v4715_v6 = vsel %vm273_vm2, %v286_v38, %v287_v43  ;;  %v4718_v8 = vsel %vm273_vm2, 0.0, %v286_v38  ;;  %v236_v50 = vld [vmem:[%s4478_s28 + $0xd8] sm:$0xff] }
  0x2a   : > { %6243 = vst [vmem:[#allocation17_spill] sm:$0xff] %v4712_v3  ;;  %v4721_v0 = vsel %vm273_vm2, 0.0, %v310_v47  ;;  %3979 = vmatmul.mubr.msk.f32.gmra.mxu1 %vm504_vm1, %v4712_v3  ;;  %v449_v16 = vrot.slane %v4718_v8, 1  ;;  %v450_v24 = vrot.slane %v4715_v6, 1  ;;  %v4728_v29 = vsel %vm273_vm2, %v310_v47, %v311_v57 }
  0x2b   : > { %v489_v32 = vrot.slane %v4721_v0, 1  ;;  %v490_v36 = vrot.slane %v4728_v29, 1  ;;  %v4734_v38 = vsel %vm273_vm2, %v287_v43, 0.0  ;;  %v4737_v2 = vsel %vm273_vm2, %v311_v57, 0.0 }
  0x2c   : > { %v290_v3 = vrot.slane %v220_v63, 7  ;;  %v4741_v62 = vsel %vm426_vm3, %v449_v16, %v450_v24  ;;  %v452_v58 = vrot.slane %v4734_v38, 1  ;;  %v492_v47 = vrot.slane %v4737_v2, 1 }
  0x2d   : > { %6244 = vst [vmem:[#allocation18_spill] sm:$0xff] %v4741_v62  ;;  %v4746_v17 = vsel %vm273_vm2, 0.0, %v289_v1  ;;  %3957 = vmatprep.mubr.msk.f32.mxu0 %vm504_vm1, %v4741_v62  ;;  %v4753_v43 = vsel %vm426_vm3, %v489_v32, %v490_v36  ;;  %v313_v16 = vrot.slane %v235_v35, 7  ;;  %v314_v33 = vrot.slane %v236_v50, 7 }
  0x2e   : > { %6245 = vst [vmem:[#allocation19_spill] sm:$0xff] %v4753_v43  ;;  %v4756_v57 = vsel %vm273_vm2, %v289_v1, %v290_v3  ;;  %v454_v63 = vrot.slane %v4746_v17, 1  ;;  %3981 = vmatprep.mubr.msk.f32.mxu1 %vm504_vm1, %v4753_v43  ;;  %v4762_v45 = vsel %vm426_vm3, %v450_v24, %v452_v58  ;;  %v4765_v34 = vsel %vm426_vm3, %v490_v36, %v492_v47 }
  0x2f   : > { %6246 = vst [vmem:[#allocation20_spill] sm:$0xff] %v4762_v45  ;;  %6247 = vst [vmem:[#allocation21_spill] sm:$0xff] %v4765_v34  ;;  %v455_v32 = vrot.slane %v4756_v57, 1  ;;  %3958 = vmatmul.mubr.msk.f32.gmra.mxu0 %vm504_vm1, %v4762_v45  ;;  %3982 = vmatmul.mubr.msk.f32.gmra.mxu1 %vm504_vm1, %v4765_v34  ;;  %v4773_v1 = vsel %vm273_vm2, 0.0, %v313_v16  ;;  %v4776_v58 = vsel %vm273_vm2, %v290_v3, 0.0  ;;  %v292_v24 = vrot.slane %v221_v12, 7 }
  0x30   : > { %v293_v35 = vrot.slane %v222_v54, 7  ;;  %v4782_v50 = vsel %vm273_vm2, %v313_v16, %v314_v33  ;;  %v494_v47 = vrot.slane %v4773_v1, 1  ;;  %v457_v43 = vrot.slane %v4776_v58, 1  ;;  %v237_v45 = vld [vmem:[%s4478_s28 + $0xe0] sm:$0xff]  ;;  %v238_v34 = vld [vmem:[%s4478_s28 + $0xe8] sm:$0xff] }
  0x31   : > { %v4779_v36 = vsel %vm426_vm3, %v454_v63, %v455_v32  ;;  %v495_v3 = vrot.slane %v4782_v50, 1  ;;  %v4792_v12 = vsel %vm273_vm2, %v314_v33, 0.0  ;;  %v4798_v63 = vsel %vm273_vm2, 0.0, %v292_v24 }
  0x32   : > { %6248 = vst [vmem:[#allocation22_spill] sm:$0xff] %v4779_v36  ;;  %3960 = vmatprep.mubr.msk.f32.mxu0 %vm504_vm1, %v4779_v36  ;;  %v4795_v54 = vsel %vm273_vm2, %v292_v24, %v293_v35  ;;  %v4801_v16 = vsel %vm426_vm3, %v455_v32, %v457_v43  ;;  %v497_v62 = vrot.slane %v4792_v12, 1  ;;  %v459_v56 = vrot.slane %v4798_v63, 1 }
  0x33   : > { %6249 = vst [vmem:[#allocation23_spill] sm:$0xff] %v4801_v16  ;;  %v460_v36 = vrot.slane %v4795_v54, 1  ;;  %v4807_v27 = vsel %vm426_vm3, %v494_v47, %v495_v3  ;;  %3961 = vmatmul.mubr.msk.f32.gmra.mxu0 %vm504_vm1, %v4801_v16  ;;  %v316_v33 = vrot.slane %v237_v45, 7  ;;  %v317_v48 = vrot.slane %v238_v34, 7 }
  0x34   : > { %6250 = vst [vmem:[#allocation24_spill] sm:$0xff] %v4807_v27  ;;  %v4812_v24 = vsel %vm273_vm2, %v293_v35, 0.0  ;;  %3984 = vmatprep.mubr.msk.f32.mxu1 %vm504_vm1, %v4807_v27  ;;  %v4817_v43 = vsel %vm426_vm3, %v495_v3, %v497_v62  ;;  %v1089_v46 = vrot.slane %v4502_v22, 2 }
  0x35   : > { %6251 = vst [vmem:[#allocation25_spill] sm:$0xff] %v4817_v43  ;;  %v4820_v32 = vsel %vm426_vm3, %v459_v56, %v460_v36  ;;  %v462_v47 = vrot.slane %v4812_v24, 1  ;;  %3985 = vmatmul.mubr.msk.f32.gmra.mxu1 %vm504_vm1, %v4817_v43  ;;  %v4829_v34 = vsel %vm273_vm2, %v316_v33, %v317_v48  ;;  %v4832_v45 = vsel %vm273_vm2, 0.0, %v316_v33 }
  0x36   : > { %6252 = vst [vmem:[#allocation26_spill] sm:$0xff] %v4820_v32  ;;  %3963 = vmatprep.mubr.msk.f32.mxu0 %vm504_vm1, %v4820_v32  ;;  %v4835_v62 = vsel %vm273_vm2, %v317_v48, 0.0  ;;  %v1090_v56 = vrot.slane %v4508_v26, 2  ;;  %v499_v35 = vrot.slane %v4832_v45, 1  ;;  %v500_v3 = vrot.slane %v4829_v34, 1 }
  0x37   : > { %v4841_v43 = vsel %vm426_vm3, %v460_v36, %v462_v47  ;;  %v502_v27 = vrot.slane %v4835_v62, 1  ;;  %v1092_v47 = vrot.slane %v4537_v41, 2 }
  0x38   : > { %6253 = vst [vmem:[#allocation27_spill] sm:$0xff] %v4841_v43  ;;  %3964 = vmatmul.mubr.msk.f32.gmra.mxu0 %vm504_vm1, %v4841_v43  ;;  %v4847_v33 = vsel %vm426_vm3, %v499_v35, %v500_v3  ;;  %v4857_v36 = vsel %vm1086_vm4, %v1089_v46, %v1090_v56  ;;  %v1094_v35 = vrot.slane %v4560_v49, 2  ;;  %v1095_v43 = vrot.slane %v4569_v55, 2 }
  0x39   : > { %6254 = vst [vmem:[#allocation28_spill] sm:$0xff] %v4847_v33  ;;  %v4850_v48 = vsel %vm426_vm3, %v500_v3, %v502_v27  ;;  %4042 = vmatprep.mubr.msk.f32.mxu0 %vm504_vm1, %v4490_v18  ;;  %3987 = vmatprep.mubr.msk.f32.mxu1 %vm504_vm1, %v4847_v33  ;;  %6256 = vst [vmem:[#allocation30_spill] sm:$0xff] %v4857_v36  ;;  %v4867_v27 = vld [vmem:[%s6136_s1 + $0x18] sm:$0xf]  ;;  %v6257_v3 = vmov 0.0   ;;  %v4877_v41 = vsel %vm1086_vm4, %v1090_v56, %v1092_v47  ;;  %v1097_v46 = vrot.slane %v4585_v61, 2 }
  0x3a   : > { %6255 = vst [vmem:[#allocation29_spill] sm:$0xff] %v4850_v48  ;;  %3988 = vmatmul.mubr.msk.f32.gmra.mxu1 %vm504_vm1, %v4850_v48  ;;  %6258 = vst [vmem:[#allocation31_spill] sm:$0xff] %v4877_v41  ;;  %v4883_v48 = vld [vmem:[%s6136_s1 + $0x14] sm:$0xf]  ;;  %v1100_v56 = vrot.slane %v4623_v23, 2  ;;  %v1102_v47 = vrot.slane %v4626_v25, 2 }
  0x3b   : > { %3992 = vmatprep.mubr.f32.mxu1 %v6257_v3  ;;  %v4904_v61 = vsel %vm1086_vm4, %v1095_v43, %v1097_v46 }
  0x3c   : > { %4043 = vmatmul.mubr.msk.f32.vlgmr.msra.gmra.mxu0 %vm504_vm1, %v4490_v18  ;;  %v1099_v18 = vrot.slane %v4602_v10, 2  ;;  %6260 = vst [vmem:[#allocation33_spill] sm:$0xff] %v4904_v61  ;;  %v4921_v25 = vsel %vm1086_vm4, %v1100_v56, %v1102_v47  ;;  %v1112_v47 = vrot.slane %v4734_v38, 2 }
  0x3d   : > { %4141 = vmatpush3.msk.msra.mxu0 %vm567_vm0, %v4467_v5  ;;  %4045 = vmatprep.mubr.msk.f32.mxu0 %vm504_vm1, %v4857_v36  ;;  %v4889_v5 = vsel %vm1086_vm4, %v1094_v35, %v1095_v43  ;;  %v1104_v35 = vrot.slane %v4658_v52, 2  ;;  %6262 = vst [vmem:[#allocation35_spill] sm:$0xff] %v4921_v25  ;;  %v1107_v43 = vrot.slane %v4682_v14, 2  ;;  %v1114_v36 = vrot.slane %v4746_v17, 2 }
  0x3e   : > { %4240 = vmatprep.subr.msk.mxu0 %vm567_vm0, %v4867_v27  ;;  %3993 = vmatmul.mubr.f32.vlgmr.msra.gmra.mxu1 %v6257_v3  ;;  %6259 = vst [vmem:[#allocation32_spill] sm:$0xff] %v4889_v5  ;;  %v1105_v3 = vrot.slane %v4655_v51, 2 }
  0x3f   : > { %4091 = vmatpush3.msk.msra.mxu1 %vm567_vm0, %v4545_v44  ;;  %3995 = vmatprep.mubr.msk.f32.mxu1 %vm504_vm1, %v4502_v22  ;;  %v4910_v44 = vsel %vm1086_vm4, %v1099_v18, %v1100_v56  ;;  %v4925_v18 = vld [vmem:[%s4478_s28 + $0xf0] sm:$0xff] }
  0x40   : > { %4046 = vmatmul.mubr.msk.f32.gmra.mxu0 %vm504_vm1, %v4877_v41  ;;  %4190 = vmatprep.subr.msk.mxu1 %vm567_vm0, %v4883_v48  ;;  %6261 = vst [vmem:[#allocation34_spill] sm:$0xff] %v4910_v44  ;;  %v4930_v46 = vsel %vm1086_vm4, %v1104_v35, %v1105_v3  ;;  %v240_v41 = vld [vmem:[%s4478_s28 + $0xf8] sm:$0xff]  ;;  %v6205_v14 = vrot.slane %v4925_v18, 7  ;;  %v4943_v56 = vsel %vm1086_vm4, %v1105_v3, %v1107_v43 }
  0x41   : > { %4048 = vmatprep.mubr.msk.f32.mxu0 %vm504_vm1, %v4889_v5  ;;  %6263 = vst [vmem:[#allocation36_spill] sm:$0xff] %v4930_v46  ;;  %v1109_v5 = vrot.slane %v4718_v8, 2  ;;  %6264 = vst [vmem:[#allocation37_spill] sm:$0xff] %v4943_v56  ;;  %v320_v35 = vrot.slane %v240_v41, 7  ;;  %v1120_v41 = vrot.slane %v4795_v54, 2 }
  0x42   : > { %3996 = vmatmul.mubr.msk.f32.gmra.mxu1 %vm504_vm1, %v4508_v26 }
  0x43   : > { %3998 = vmatprep.mubr.msk.f32.mxu1 %vm504_vm1, %v4560_v49  ;;  %v4958_v3 = vsel %vm273_vm2, %v6205_v14, %v320_v35  ;;  %v4961_v38 = vsel %vm273_vm2, %v320_v35, 0.0  ;;  %v1119_v14 = vrot.slane %v4798_v63, 2 }
  0x44   : > { %4049 = vmatmul.mubr.msk.f32.gmra.mxu0 %vm504_vm1, %v4904_v61  ;;  %v1110_v61 = vrot.slane %v4715_v6, 2  ;;  %6265 = vst [vmem:[#allocation38_spill] sm:$0xff] %v4961_v38 }
  0x45   : > { %4051 = vmatprep.mubr.msk.f32.mxu0 %vm504_vm1, %v4910_v44 }
  0x46   : > { %3999 = vmatmul.mubr.msk.f32.gmra.mxu1 %vm504_vm1, %v4569_v55  ;;  %v4949_v44 = vsel %vm1086_vm4, %v1109_v5, %v1110_v61  ;;  %v1755_v5 = vrot.slane %v4961_v38, 1  ;;  %v4970_v43 = vsel %vm1086_vm4, %v1110_v61, %v1112_v47  ;;  %v6266_v38 = vrot.slane %v4958_v3, 1 }
  0x47   : > { %4001 = vmatprep.mubr.msk.f32.mxu1 %vm504_vm1, %v4602_v10  ;;  %v4998_v61 = vsel %vm1086_vm4, %v1119_v14, %v1120_v41  ;;  %v1124_v47 = vrot.slane %v4496_v20, 2  ;;  %v1129_v14 = vrot.slane %v4517_v31, 2 }
  0x48   : > { %4052 = vmatmul.mubr.msk.f32.gmra.mxu0 %vm504_vm1, %v4921_v25  ;;  %v1115_v25 = vrot.slane %v4756_v57, 2  ;;  %6268 = vst [vmem:[#allocation40_spill] sm:$0xff] %v4998_v61 }
  0x49   : > { %4054 = vmatprep.mubr.msk.f32.mxu0 %vm504_vm1, %v4930_v46  ;;  %v1117_v46 = vrot.slane %v4776_v58, 2 }
  0x4a   : > { %4002 = vmatmul.mubr.msk.f32.gmra.mxu1 %vm504_vm1, %v4623_v23  ;;  %v4976_v35 = vsel %vm1086_vm4, %v1114_v36, %v1115_v25  ;;  %v1122_v36 = vrot.slane %v4812_v24, 2 }
  0x4b   : > { %4004 = vmatprep.mubr.msk.f32.mxu1 %vm504_vm1, %v4658_v52  ;;  %v4992_v58 = vsel %vm1086_vm4, %v1115_v25, %v1117_v46  ;;  %v1127_v25 = vrot.slane %v4499_v21, 2 }
  0x4c   : > { %4055 = vmatmul.mubr.msk.f32.gmra.mxu0 %vm504_vm1, %v4943_v56  ;;  %v4983_v56 = vsel %vm426_vm3, %v6266_v38, %v1755_v5  ;;  %v1125_v38 = vrot.slane %v4493_v19, 2  ;;  %v5009_v24 = vsel %vm1086_vm4, %v1120_v41, %v1122_v36  ;;  %v1130_v5 = vrot.slane %v4514_v30, 2 }
  0x4d   : > { %4057 = vmatprep.mubr.msk.f32.mxu0 %vm504_vm1, %v4949_v44  ;;  %6267 = vst [vmem:[#allocation39_spill] sm:$0xff] %v4983_v56  ;;  %v1132_v41 = vrot.slane %v4540_v42, 2 }
  0x4e   : > { %4005 = vmatmul.mubr.msk.f32.gmra.mxu1 %vm504_vm1, %v4655_v51  ;;  %v5015_v46 = vsel %vm1086_vm4, %v1124_v47, %v1125_v38  ;;  %v5026_v21 = vsel %vm1086_vm4, %v1125_v38, %v1127_v25  ;;  %v5032_v36 = vsel %vm1086_vm4, %v1129_v14, %v1130_v5  ;;  %v1134_v47 = vrot.slane %v4582_v60, 2 }
  0x4f   : > { %4007 = vmatprep.mubr.msk.f32.mxu1 %vm504_vm1, %v4718_v8  ;;  %6269 = vst [vmem:[#allocation41_spill] sm:$0xff] %v5015_v46  ;;  %6270 = vst [vmem:[#allocation42_spill] sm:$0xff] %v5032_v36  ;;  %v5043_v42 = vsel %vm1086_vm4, %v1130_v5, %v1132_v41  ;;  %v1137_v38 = vrot.slane %v4594_v4, 2  ;;  %v1139_v14 = vrot.slane %v4632_v28, 2  ;;  %v1142_v5 = vrot.slane %v4642_v39, 2 }
  0x50   : > { %4058 = vmatmul.mubr.msk.f32.gmra.mxu0 %vm504_vm1, %v4970_v43 }
  0x51   : > { %4060 = vmatprep.mubr.msk.f32.mxu0 %vm504_vm1, %v4976_v35 }
  0x52   : > { %4008 = vmatmul.mubr.msk.f32.gmra.mxu1 %vm504_vm1, %v4715_v6 }
  0x53   : > { %4010 = vmatprep.mubr.msk.f32.mxu1 %vm504_vm1, %v4746_v17 }
  0x54   : > { %4061 = vmatmul.mubr.msk.f32.gmra.mxu0 %vm504_vm1, %v4992_v58 }
  0x55   : > { %4063 = vmatprep.mubr.msk.f32.mxu0 %vm504_vm1, %v4998_v61  ;;  %v1135_v61 = vrot.slane %v4579_v59, 2 }
  0x56   : > { %4011 = vmatmul.mubr.msk.f32.gmra.mxu1 %vm504_vm1, %v4756_v57 }
  0x57   : > { %4013 = vmatprep.mubr.msk.f32.mxu1 %vm504_vm1, %v4798_v63  ;;  %v5049_v25 = vsel %vm1086_vm4, %v1134_v47, %v1135_v61  ;;  %v5060_v4 = vsel %vm1086_vm4, %v1135_v61, %v1137_v38  ;;  %v1144_v47 = vrot.slane %v4679_v11, 2  ;;  %v1147_v61 = vrot.slane %v4685_v15, 2 }
  0x58   : > { %4064 = vmatmul.mubr.msk.f32.gmra.mxu0 %vm504_vm1, %v5009_v24  ;;  %6271 = vst [vmem:[#allocation43_spill] sm:$0xff] %v5049_v25 }
  0x59   : > { %4066 = vmatprep.mubr.msk.f32.mxu0 %vm504_vm1, %v5015_v46  ;;  %v1140_v46 = vrot.slane %v4638_v37, 2 }
  0x5a   : > { %4014 = vmatmul.mubr.msk.f32.gmra.mxu1 %vm504_vm1, %v4795_v54 }
  0x5b   : > { %4016 = vmatprep.mubr.msk.f32.mxu1 %vm504_vm1, %v4496_v20  ;;  %v5066_v41 = vsel %vm1086_vm4, %v1139_v14, %v1140_v46  ;;  %v5077_v39 = vsel %vm1086_vm4, %v1140_v46, %v1142_v5  ;;  %v1149_v14 = vrot.slane %v4721_v0, 2  ;;  %v1152_v46 = vrot.slane %v4737_v2, 2 }
  0x5c   : > { %4067 = vmatmul.mubr.msk.f32.gmra.mxu0 %vm504_vm1, %v5026_v21  ;;  %6272 = vst [vmem:[#allocation44_spill] sm:$0xff] %v5066_v41 }
  0x5d   : > { %4069 = vmatprep.mubr.msk.f32.mxu0 %vm504_vm1, %v5032_v36  ;;  %v1145_v36 = vrot.slane %v4676_v9, 2 }
  0x5e   : > { %4017 = vmatmul.mubr.msk.f32.gmra.mxu1 %vm504_vm1, %v4493_v19 }
  0x5f   : > { %4019 = vmatprep.mubr.msk.f32.mxu1 %vm504_vm1, %v4517_v31  ;;  %v5083_v38 = vsel %vm1086_vm4, %v1144_v47, %v1145_v36  ;;  %v5094_v15 = vsel %vm1086_vm4, %v1145_v36, %v1147_v61  ;;  %v1154_v47 = vrot.slane %v4773_v1, 2  ;;  %v1157_v36 = vrot.slane %v4792_v12, 2 }
  0x60   : > { %4070 = vmatmul.mubr.msk.f32.gmra.mxu0 %vm504_vm1, %v5043_v42  ;;  %6273 = vst [vmem:[#allocation45_spill] sm:$0xff] %v5083_v38 }
  0x61   : > { %4072 = vmatprep.mubr.msk.f32.mxu0 %vm504_vm1, %v5049_v25  ;;  %v1150_v25 = vrot.slane %v4728_v29, 2 }
  0x62   : > { %4020 = vmatmul.mubr.msk.f32.gmra.mxu1 %vm504_vm1, %v4514_v30 }
  0x63   : > { %4022 = vmatprep.mubr.msk.f32.mxu1 %vm504_vm1, %v4582_v60  ;;  %v5100_v5 = vsel %vm1086_vm4, %v1149_v14, %v1150_v25  ;;  %v5111_v2 = vsel %vm1086_vm4, %v1150_v25, %v1152_v46  ;;  %v1159_v14 = vrot.slane %v4832_v45, 2  ;;  %v1162_v25 = vrot.slane %v4835_v62, 2  ;;  %v5160_v62 = vld [vmem:[%s6136_s1 + $0x20] sm:$0xf] }
  0x64   : > { %4073 = vmatmul.mubr.msk.f32.gmra.mxu0 %vm504_vm1, %v5060_v4 }
  0x65   : > { %4075 = vmatprep.mubr.msk.f32.mxu0 %vm504_vm1, %v5066_v41  ;;  %v1155_v41 = vrot.slane %v4782_v50, 2 }
  0x66   : > { %4023 = vmatmul.mubr.msk.f32.gmra.mxu1 %vm504_vm1, %v4579_v59 }
  0x67   : > { %4025 = vmatprep.mubr.msk.f32.mxu1 %vm504_vm1, %v4632_v28  ;;  %v5117_v61 = vsel %vm1086_vm4, %v1154_v47, %v1155_v41  ;;  %v5128_v12 = vsel %vm1086_vm4, %v1155_v41, %v1157_v36  ;;  %v6281_v47 = vld [vmem:[#allocation22_spill] sm:$0xff]  ;;  %v6282_v36 = vld [vmem:[#allocation27_spill] sm:$0xff] }
  0x68   : > { %4076 = vmatmul.mubr.msk.f32.gmra.mxu0 %vm504_vm1, %v5077_v39 }
  0x69   : > { %4078 = vmatprep.mubr.msk.f32.mxu0 %vm504_vm1, %v5083_v38  ;;  %v1160_v38 = vrot.slane %v4829_v34, 2 }
  0x6a   : > { %4026 = vmatmul.mubr.msk.f32.gmra.mxu1 %vm504_vm1, %v4638_v37 }
  0x6b   : > { %4028 = vmatprep.mubr.msk.f32.mxu1 %vm504_vm1, %v4679_v11  ;;  %v5134_v46 = vsel %vm1086_vm4, %v1159_v14, %v1160_v38  ;;  %v5143_v41 = vsel %vm1086_vm4, %v1160_v38, %v1162_v25  ;;  %v6280_v38 = vld [vmem:[#allocation20_spill] sm:$0xff]  ;;  %v6284_v25 = vld [vmem:[#allocation5_spill] sm:$0xff] }
  0x6c   : > { %4079 = vmatmul.mubr.msk.f32.gmra.mxu0 %vm504_vm1, %v5094_v15  ;;  %6274 = vst [vmem:[#allocation46_spill] sm:$0xff] %v5134_v46  ;;  %v6283_v14 = vld [vmem:[#allocation4_spill] sm:$0xff] }
  0x6d   : > { %4081 = vmatprep.mubr.msk.f32.mxu0 %vm504_vm1, %v5100_v5 }
  0x6e   : > { %4029 = vmatmul.mubr.msk.f32.gmra.mxu1 %vm504_vm1, %v4676_v9 }
  0x6f   : > { %4031 = vmatprep.mubr.msk.f32.mxu1 %vm504_vm1, %v4721_v0 }
  0x70   : > { %4082 = vmatmul.mubr.msk.f32.gmra.mxu0 %vm504_vm1, %v5111_v2 }
  0x71   : > { %4084 = vmatprep.mubr.msk.f32.mxu0 %vm504_vm1, %v5117_v61 }
  0x72   : > { %4032 = vmatmul.mubr.msk.f32.gmra.mxu1 %vm504_vm1, %v4728_v29 }
  0x73   : > { %4034 = vmatprep.mubr.msk.f32.mxu1 %vm504_vm1, %v4773_v1 }
  0x74   : > { %4085 = vmatmul.mubr.msk.f32.gmra.mxu0 %vm504_vm1, %v5128_v12 }
  0x75   : > { %4087 = vmatprep.mubr.msk.f32.mxu0 %vm504_vm1, %v5134_v46 }
  0x76   : > { %4035 = vmatmul.mubr.msk.f32.gmra.mxu1 %vm504_vm1, %v4782_v50 }
  0x77   : > { %4037 = vmatprep.mubr.msk.f32.mxu1 %vm504_vm1, %v4832_v45 }
  0x78   : > { %4088 = vmatmul.mubr.msk.f32.gmra.mxu0 %vm504_vm1, %v5143_v41 }
  0x79   : > { %4142 = vmatprep.mubr.msk.f32.mxu0 %vm504_vm1, %v4534_v40  ;;  %v5171_v40 = vld [vmem:[%s6136_s1 + $0x1c] sm:$0xf] }
  0x7a   : > { %4038 = vmatmul.mubr.msk.f32.gmra.mxu1 %vm504_vm1, %v4829_v34 }
  0x7b   : > { %4092 = vmatprep.mubr.msk.f32.mxu1 %vm504_vm1, %v4502_v22  ;;  %v6275_v22 = vld [vmem:[#allocation10_spill] sm:$0xff] }
  0x7c   : > { %4143 = vmatmul.mubr.msk.f32.vlgmr.msra.gmra.mxu0 %vm504_vm1, %v4563_v53  ;;  %v6277_v53 = vld [vmem:[#allocation14_spill] sm:$0xff] }
  0x7d   : > { %4241 = vmatpush3.msk.msra.mxu0 %vm567_vm0, %v4867_v27  ;;  %4145 = vmatprep.mubr.msk.f32.mxu0 %vm504_vm1, %v4598_v7  ;;  %v6279_v27 = vld [vmem:[#allocation18_spill] sm:$0xff] }
  0x7e   : > { %4093 = vmatmul.mubr.msk.f32.vlgmr.msra.gmra.mxu1 %vm504_vm1, %v4508_v26  ;;  %4340 = vmatprep.subr.msk.mxu0 %vm567_vm0, %v5160_v62  ;;  %v6276_v26 = vld [vmem:[#allocation11_spill] sm:$0xff] }
  0x7f   : > { %4191 = vmatpush3.msk.msra.mxu1 %vm567_vm0, %v4883_v48  ;;  %4095 = vmatprep.mubr.msk.f32.mxu1 %vm504_vm1, %v4560_v49  ;;  %v6278_v48 = vld [vmem:[#allocation16_spill] sm:$0xff] }
  0x80   : > { %4146 = vmatmul.mubr.msk.f32.gmra.mxu0 %vm504_vm1, %v4611_v13  ;;  %4290 = vmatprep.subr.msk.mxu1 %vm567_vm0, %v5171_v40 }
  0x81   : > { %4148 = vmatprep.mubr.msk.f32.mxu0 %vm504_vm1, %v6275_v22 }
  0x82   : > { %4096 = vmatmul.mubr.msk.f32.gmra.mxu1 %vm504_vm1, %v4569_v55 }
  0x83   : > { %4098 = vmatprep.mubr.msk.f32.mxu1 %vm504_vm1, %v4602_v10 }
  0x84   : > { %4149 = vmatmul.mubr.msk.f32.gmra.mxu0 %vm504_vm1, %v6276_v26 }
  0x85   : > { %4151 = vmatprep.mubr.msk.f32.mxu0 %vm504_vm1, %v6277_v53 }
  0x86   : > { %4099 = vmatmul.mubr.msk.f32.gmra.mxu1 %vm504_vm1, %v4623_v23 }
  0x87   : > { %4101 = vmatprep.mubr.msk.f32.mxu1 %vm504_vm1, %v4658_v52 }
  0x88   : > { %4152 = vmatmul.mubr.msk.f32.gmra.mxu0 %vm504_vm1, %v6278_v48 }
  0x89   : > { %4154 = vmatprep.mubr.msk.f32.mxu0 %vm504_vm1, %v6279_v27 }
  0x8a   : > { %4102 = vmatmul.mubr.msk.f32.gmra.mxu1 %vm504_vm1, %v4655_v51 }
  0x8b   : > { %4104 = vmatprep.mubr.msk.f32.mxu1 %vm504_vm1, %v4718_v8 }
  0x8c   : > { %4155 = vmatmul.mubr.msk.f32.gmra.mxu0 %vm504_vm1, %v6280_v38 }
  0x8d   : > { %4157 = vmatprep.mubr.msk.f32.mxu0 %vm504_vm1, %v6281_v47  ;;  %v6296_v47 = vld [vmem:[#allocation24_spill] sm:$0xff] }
  0x8e   : > { %4105 = vmatmul.mubr.msk.f32.gmra.mxu1 %vm504_vm1, %v4715_v6 }
  0x8f   : > { %4107 = vmatprep.mubr.msk.f32.mxu1 %vm504_vm1, %v4746_v17 }
  0x90   : > { %4158 = vmatmul.mubr.msk.f32.gmra.mxu0 %vm504_vm1, %v4801_v16  ;;  %v6295_v16 = vld [vmem:[#allocation21_spill] sm:$0xff] }
  0x91   : > { %4160 = vmatprep.mubr.msk.f32.mxu0 %vm504_vm1, %v4820_v32  ;;  %v6285_v32 = vld [vmem:[#allocation6_spill] sm:$0xff] }
  0x92   : > { %4108 = vmatmul.mubr.msk.f32.gmra.mxu1 %vm504_vm1, %v4756_v57 }
  0x93   : > { %4110 = vmatprep.mubr.msk.f32.mxu1 %vm504_vm1, %v4798_v63 }
  0x94   : > { %4161 = vmatmul.mubr.msk.f32.gmra.mxu0 %vm504_vm1, %v6282_v36  ;;  %v6286_v36 = vld [vmem:[#allocation7_spill] sm:$0xff] }
  0x95   : > { %4163 = vmatprep.mubr.msk.f32.mxu0 %vm504_vm1, %v6283_v14  ;;  %v6287_v14 = vld [vmem:[#allocation8_spill] sm:$0xff] }
  0x96   : > { %4111 = vmatmul.mubr.msk.f32.gmra.mxu1 %vm504_vm1, %v4795_v54 }
  0x97   : > { %4113 = vmatprep.mubr.msk.f32.mxu1 %vm504_vm1, %v4496_v20 }
  0x98   : > { %4164 = vmatmul.mubr.msk.f32.gmra.mxu0 %vm504_vm1, %v6284_v25  ;;  %v6288_v25 = vld [vmem:[#allocation9_spill] sm:$0xff] }
  0x99   : > { %4166 = vmatprep.mubr.msk.f32.mxu0 %vm504_vm1, %v6285_v32  ;;  %v6289_v32 = vld [vmem:[#allocation12_spill] sm:$0xff] }
  0x9a   : > { %4114 = vmatmul.mubr.msk.f32.gmra.mxu1 %vm504_vm1, %v4493_v19 }
  0x9b   : > { %4116 = vmatprep.mubr.msk.f32.mxu1 %vm504_vm1, %v4517_v31 }
  0x9c   : > { %4167 = vmatmul.mubr.msk.f32.gmra.mxu0 %vm504_vm1, %v6286_v36  ;;  %v6290_v36 = vld [vmem:[#allocation13_spill] sm:$0xff] }
  0x9d   : > { %4169 = vmatprep.mubr.msk.f32.mxu0 %vm504_vm1, %v6287_v14  ;;  %v6291_v14 = vld [vmem:[#allocation15_spill] sm:$0xff] }
  0x9e   : > { %4117 = vmatmul.mubr.msk.f32.gmra.mxu1 %vm504_vm1, %v4514_v30 }
  0x9f   : > { %4119 = vmatprep.mubr.msk.f32.mxu1 %vm504_vm1, %v4582_v60 }
  0xa0   : > { %4170 = vmatmul.mubr.msk.f32.gmra.mxu0 %vm504_vm1, %v6288_v25  ;;  %v6292_v25 = vld [vmem:[#allocation17_spill] sm:$0xff] }
  0xa1   : > { %4172 = vmatprep.mubr.msk.f32.mxu0 %vm504_vm1, %v6289_v32  ;;  %v6293_v32 = vld [vmem:[#allocation19_spill] sm:$0xff] }
  0xa2   : > { %4120 = vmatmul.mubr.msk.f32.gmra.mxu1 %vm504_vm1, %v4579_v59 }
  0xa3   : > { %4122 = vmatprep.mubr.msk.f32.mxu1 %vm504_vm1, %v4632_v28 }
  0xa4   : > { %4173 = vmatmul.mubr.msk.f32.gmra.mxu0 %vm504_vm1, %v6290_v36 }
  0xa5   : > { %4175 = vmatprep.mubr.msk.f32.mxu0 %vm504_vm1, %v6291_v14  ;;  %v6294_v14 = vrot.slane %v4925_v18, 7  ;;  %v6298_v18 = vrot.slane %v4958_v3, 1 }
  0xa6   : > { %4123 = vmatmul.mubr.msk.f32.gmra.mxu1 %vm504_vm1, %v4638_v37 }
  0xa7   : > { %4125 = vmatprep.mubr.msk.f32.mxu1 %vm504_vm1, %v4679_v11  ;;  %v5274_v36 = vsel %vm273_vm2, 0.0, %v6294_v14 }
  0xa8   : > { %4176 = vmatmul.mubr.msk.f32.gmra.mxu0 %vm504_vm1, %v6292_v25  ;;  %v6297_v25 = vld [vmem:[#allocation25_spill] sm:$0xff] }
  0xa9   : > { %4178 = vmatprep.mubr.msk.f32.mxu0 %vm504_vm1, %v6293_v32  ;;  %v1752_v32 = vrot.slane %v5274_v36, 1 }
  0xaa   : > { %4126 = vmatmul.mubr.msk.f32.gmra.mxu1 %vm504_vm1, %v4676_v9 }
  0xab   : > { %4128 = vmatprep.mubr.msk.f32.mxu1 %vm504_vm1, %v4721_v0  ;;  %v5294_v14 = vsel %vm426_vm3, %v1752_v32, %v6298_v18  ;;  %v6301_v32 = vld [vmem:[#allocation30_spill] sm:$0xff]  ;;  %v6302_v18 = vld [vmem:[#allocation31_spill] sm:$0xff] }
  0xac   : > { %4179 = vmatmul.mubr.msk.f32.gmra.mxu0 %vm504_vm1, %v6295_v16  ;;  %6299 = vst [vmem:[#allocation10_spill] sm:$0xff] %v5294_v14 }
  0xad   : > { %4181 = vmatprep.mubr.msk.f32.mxu0 %vm504_vm1, %v6296_v47  ;;  %v6300_v47 = vld [vmem:[#allocation29_spill] sm:$0xff] }
  0xae   : > { %4129 = vmatmul.mubr.msk.f32.gmra.mxu1 %vm504_vm1, %v4728_v29 }
  0xaf   : > { %4131 = vmatprep.mubr.msk.f32.mxu1 %vm504_vm1, %v4773_v1 }
  0xb0   : > { %4182 = vmatmul.mubr.msk.f32.gmra.mxu0 %vm504_vm1, %v6297_v25  ;;  %v2021_v25 = vrot.slane %v5274_v36, 2 }
  0xb1   : > { %4184 = vmatprep.mubr.msk.f32.mxu0 %vm504_vm1, %v4847_v33 }
  0xb2   : > { %4132 = vmatmul.mubr.msk.f32.gmra.mxu1 %vm504_vm1, %v4782_v50 }
  0xb3   : > { %4134 = vmatprep.mubr.msk.f32.mxu1 %vm504_vm1, %v4832_v45 }
  0xb4   : > { %4185 = vmatmul.mubr.msk.f32.gmra.mxu0 %vm504_vm1, %v6300_v47 }
  0xb5   : > { %4187 = vmatprep.mubr.msk.f32.mxu0 %vm504_vm1, %v5294_v14  ;;  %v6315_v14 = vld [vmem:[#allocation45_spill] sm:$0xff] }
  0xb6   : > { %4135 = vmatmul.mubr.msk.f32.gmra.mxu1 %vm504_vm1, %v4829_v34 }
  0xb7   : > { %4137 = vmatprep.mubr.msk.f32.mxu1 %vm504_vm1, %v5274_v36 }
  0xb8   : > { %4188 = vmatmul.mubr.msk.f32.gmra.mxu0 %vm504_vm1, %v4983_v56 }
  0xb9   : > { %4242 = vmatprep.mubr.msk.f32.mxu0 %vm504_vm1, %v4560_v49  ;;  %v6303_v49 = vld [vmem:[#allocation32_spill] sm:$0xff] }
  0xba   : > { %4138 = vmatmul.mubr.msk.f32.gmra.mxu1 %vm504_vm1, %v4958_v3 }
  0xbb   : > { %4192 = vmatprep.mubr.msk.f32.mxu1 %vm504_vm1, %v6301_v32 }
  0xbc   : > { %4243 = vmatmul.mubr.msk.f32.vlgmr.msra.gmra.mxu0 %vm504_vm1, %v4569_v55  ;;  %v6304_v55 = vld [vmem:[#allocation33_spill] sm:$0xff] }
  0xbd   : > { %4341 = vmatpush3.msk.msra.mxu0 %vm567_vm0, %v5160_v62  ;;  %4245 = vmatprep.mubr.msk.f32.mxu0 %vm504_vm1, %v4602_v10  ;;  %v6305_v62 = vld [vmem:[#allocation34_spill] sm:$0xff]  ;;  %v6306_v10 = vld [vmem:[#allocation35_spill] sm:$0xff] }
  0xbe   : > { %4193 = vmatmul.mubr.msk.f32.vlgmr.msra.gmra.mxu1 %vm504_vm1, %v6302_v18  ;;  %v6313_v18 = vld [vmem:[#allocation44_spill] sm:$0xff] }
  0xbf   : > { %4291 = vmatpush3.msk.msra.mxu1 %vm567_vm0, %v5171_v40  ;;  %4195 = vmatprep.mubr.msk.f32.mxu1 %vm504_vm1, %v6303_v49  ;;  %v6307_v40 = vld [vmem:[#allocation36_spill] sm:$0xff] }
  0xc0   : > { %4246 = vmatmul.mubr.msk.f32.gmra.mxu0 %vm504_vm1, %v4623_v23  ;;  %v6308_v23 = vld [vmem:[#allocation37_spill] sm:$0xff] }
  0xc1   : > { %4248 = vmatprep.mubr.msk.f32.mxu0 %vm504_vm1, %v4658_v52  ;;  %v6310_v52 = vld [vmem:[#allocation41_spill] sm:$0xff] }
  0xc2   : > { %4196 = vmatmul.mubr.msk.f32.gmra.mxu1 %vm504_vm1, %v6304_v55 }
  0xc3   : > { %4198 = vmatprep.mubr.msk.f32.mxu1 %vm504_vm1, %v6305_v62 }
  0xc4   : > { %4249 = vmatmul.mubr.msk.f32.gmra.mxu0 %vm504_vm1, %v4655_v51 }
  0xc5   : > { %4251 = vmatprep.mubr.msk.f32.mxu0 %vm504_vm1, %v4718_v8 }
  0xc6   : > { %4199 = vmatmul.mubr.msk.f32.gmra.mxu1 %vm504_vm1, %v6306_v10 }
  0xc7   : > { %4201 = vmatprep.mubr.msk.f32.mxu1 %vm504_vm1, %v6307_v40 }
  0xc8   : > { %4252 = vmatmul.mubr.msk.f32.gmra.mxu0 %vm504_vm1, %v4715_v6 }
  0xc9   : > { %4254 = vmatprep.mubr.msk.f32.mxu0 %vm504_vm1, %v4746_v17  ;;  %v6309_v17 = vld [vmem:[#allocation40_spill] sm:$0xff] }
  0xca   : > { %4202 = vmatmul.mubr.msk.f32.gmra.mxu1 %vm504_vm1, %v6308_v23 }
  0xcb   : > { %4204 = vmatprep.mubr.msk.f32.mxu1 %vm504_vm1, %v4949_v44 }
  0xcc   : > { %4255 = vmatmul.mubr.msk.f32.gmra.mxu0 %vm504_vm1, %v4756_v57 }
  0xcd   : > { %4257 = vmatprep.mubr.msk.f32.mxu0 %vm504_vm1, %v4798_v63 }
  0xce   : > { %4205 = vmatmul.mubr.msk.f32.gmra.mxu1 %vm504_vm1, %v4970_v43 }
  0xcf   : > { %4207 = vmatprep.mubr.msk.f32.mxu1 %vm504_vm1, %v4976_v35  ;;  %v5366_v51 = vpop.f32.mrf.mxu0 }
  0xd0   : > { %4258 = vmatmul.mubr.msk.f32.gmra.mxu0 %vm504_vm1, %v4795_v54  ;;  %v6312_v54 = vld [vmem:[#allocation43_spill] sm:$0xff] }
  0xd1   : > { %4260 = vmatprep.mubr.msk.f32.mxu0 %vm504_vm1, %v4496_v20  ;;  %v5376_v20 = vpop.f32.mrf.mxu0 }
  0xd2   : > { %4208 = vmatmul.mubr.msk.f32.gmra.mxu1 %vm504_vm1, %v4992_v58 }
  0xd3   : > { %4210 = vmatprep.mubr.msk.f32.mxu1 %vm504_vm1, %v6309_v17 }
  0xd4   : > { %4261 = vmatmul.mubr.msk.f32.gmra.mxu0 %vm504_vm1, %v4493_v19 }
  0xd5   : > { %4263 = vmatprep.mubr.msk.f32.mxu0 %vm504_vm1, %v4517_v31  ;;  %v6311_v31 = vld [vmem:[#allocation42_spill] sm:$0xff] }
  0xd6   : > { %4211 = vmatmul.mubr.msk.f32.gmra.mxu1 %vm504_vm1, %v5009_v24 }
  0xd7   : > { %4213 = vmatprep.mubr.msk.f32.mxu1 %vm504_vm1, %v6310_v52 }
  0xd8   : > { %4264 = vmatmul.mubr.msk.f32.gmra.mxu0 %vm504_vm1, %v4514_v30  ;;  %v5380_v6 = vpop.f32.mrf.mxu1 }
  0xd9   : > { %4266 = vmatprep.mubr.msk.f32.mxu0 %vm504_vm1, %v4582_v60 }
  0xda   : > { %4214 = vmatmul.mubr.msk.f32.gmra.mxu1 %vm504_vm1, %v5026_v21  ;;  %v5386_v19 = vpop.f32.mrf.mxu1 }
  0xdb   : > { %4216 = vmatprep.mubr.msk.f32.mxu1 %vm504_vm1, %v6311_v31  ;;  %v5390_v8 = vpop.f32.mrf.mxu0 }
  0xdc   : > { %4267 = vmatmul.mubr.msk.f32.gmra.mxu0 %vm504_vm1, %v4579_v59  ;;  %v5394_v57 = vpop.f32.mrf.mxu1 }
  0xdd   : > { %4269 = vmatprep.mubr.msk.f32.mxu0 %vm504_vm1, %v4632_v28  ;;  %v5398_v30 = vpop.f32.mrf.mxu0 }
  0xde   : > { %4217 = vmatmul.mubr.msk.f32.gmra.mxu1 %vm504_vm1, %v5043_v42  ;;  %v5402_v60 = vpop.f32.mrf.mxu1 }
  0xdf   : > { %4219 = vmatprep.mubr.msk.f32.mxu1 %vm504_vm1, %v6312_v54  ;;  %v5406_v63 = vpop.f32.mrf.mxu0 }
  0xe0   : > { %4270 = vmatmul.mubr.msk.f32.gmra.mxu0 %vm504_vm1, %v4638_v37  ;;  %v5410_v59 = vpop.f32.mrf.mxu1 }
  0xe1   : > { %4272 = vmatprep.mubr.msk.f32.mxu0 %vm504_vm1, %v4679_v11  ;;  %v5414_v28 = vpop.f32.mrf.mxu0 }
  0xe2   : > { %4220 = vmatmul.mubr.msk.f32.gmra.mxu1 %vm504_vm1, %v5060_v4  ;;  %v5418_v32 = vpop.f32.mrf.mxu1 }
  0xe3   : > { %4222 = vmatprep.mubr.msk.f32.mxu1 %vm504_vm1, %v6313_v18 }
  0xe4   : > { %4273 = vmatmul.mubr.msk.f32.gmra.mxu0 %vm504_vm1, %v4676_v9  ;;  %v5424_v56 = vpop.f32.mrf.mxu0 }
  0xe5   : > { %4275 = vmatprep.mubr.msk.f32.mxu0 %vm504_vm1, %v4721_v0 }
  0xe6   : > { %4223 = vmatmul.mubr.msk.f32.gmra.mxu1 %vm504_vm1, %v5077_v39  ;;  %v5430_v37 = vpop.f32.mrf.mxu1  ;;  %v5432_v11 = vpop.f32.mrf.mxu0 }
  0xe7   : > { %6314 = vst [vmem:[#allocation11_spill] sm:$0xff] %v5430_v37  ;;  %4225 = vmatprep.mubr.msk.f32.mxu1 %vm504_vm1, %v6315_v14 }
  0xe8   : > { %4276 = vmatmul.mubr.msk.f32.gmra.mxu0 %vm504_vm1, %v4728_v29  ;;  %v5438_v47 = vpop.f32.mrf.mxu1 }
  0xe9   : > { %6316 = vst [vmem:[#allocation14_spill] sm:$0xff] %v5438_v47  ;;  %4278 = vmatprep.mubr.msk.f32.mxu0 %vm504_vm1, %v4773_v1  ;;  %v5442_v9 = vpop.f32.mrf.mxu0  ;;  %v6321_v47 = vld [vmem:[#allocation38_spill] sm:$0xff] }
  0xea   : > { %4226 = vmatmul.mubr.msk.f32.gmra.mxu1 %vm504_vm1, %v5094_v15  ;;  %v5446_v0 = vpop.f32.mrf.mxu1  ;;  %v2024_v37 = vrot.slane %v6321_v47, 2 }
  0xeb   : > { %6317 = vst [vmem:[#allocation16_spill] sm:$0xff] %v5446_v0  ;;  %4228 = vmatprep.mubr.msk.f32.mxu1 %vm504_vm1, %v5100_v5  ;;  %v5450_v33 = vpop.f32.mrf.mxu0 }
  0xec   : > { %4279 = vmatmul.mubr.msk.f32.gmra.mxu0 %vm504_vm1, %v4782_v50  ;;  %v5454_v29 = vpop.f32.mrf.mxu1  ;;  %v2022_v50 = vrot.slane %v4958_v3, 2 }
  0xed   : > { %6318 = vst [vmem:[#allocation18_spill] sm:$0xff] %v5454_v29  ;;  %4281 = vmatprep.mubr.msk.f32.mxu0 %vm504_vm1, %v4832_v45 }
  0xee   : > { %4229 = vmatmul.mubr.msk.f32.gmra.mxu1 %vm504_vm1, %v5111_v2 }
  0xef   : > { %4231 = vmatprep.mubr.msk.f32.mxu1 %vm504_vm1, %v5117_v61  ;;  %v5462_v1 = vpop.f32.mrf.mxu0  ;;  %v5464_v0 = vpop.f32.mrf.mxu1 }
  0xf0   : > { %6319 = vst [vmem:[#allocation20_spill] sm:$0xff] %v5464_v0  ;;  %4282 = vmatmul.mubr.msk.f32.gmra.mxu0 %vm504_vm1, %v4829_v34  ;;  %v5486_v34 = vsel %vm1086_vm4, %v2021_v25, %v2022_v50 }
  0xf1   : > { %v5470_v29 = vpop.f32.mrf.mxu0  ;;  %v5472_v45 = vpop.f32.mrf.mxu1  ;;  %4284 = vmatprep.mubr.msk.f32.mxu0 %vm504_vm1, %v5274_v36  ;;  %6322 = vst [vmem:[#allocation31_spill] sm:$0xff] %v5486_v34  ;;  %v6324_v36 = vmov 0.0  }
  0xf2   : > { %6320 = vst [vmem:[#allocation30_spill] sm:$0xff] %v5472_v45  ;;  %4232 = vmatmul.mubr.msk.f32.gmra.mxu1 %vm504_vm1, %v5128_v12 }
  0xf3   : > { %4234 = vmatprep.mubr.msk.f32.mxu1 %vm504_vm1, %v5134_v46  ;;  %v5480_v0 = vpop.f32.mrf.mxu0 }
  0xf4   : > { %4285 = vmatmul.mubr.msk.f32.gmra.mxu0 %vm504_vm1, %v4958_v3  ;;  %v5502_v3 = vsel %vm1086_vm4, %v2022_v50, %v2024_v37 }
  0xf5   : > { %v5488_v45 = vpop.f32.mrf.mxu1  ;;  %v5490_v16 = vpop.f32.mrf.mxu0  ;;  %4287 = vmatprep.mubr.f32.mxu0 %v6324_v36 }
  0xf6   : > { %6323 = vst [vmem:[#allocation32_spill] sm:$0xff] %v5488_v45  ;;  %4235 = vmatmul.mubr.msk.f32.gmra.mxu1 %vm504_vm1, %v5143_v41 }
  0xf7   : > { %v5495_v46 = vpop.f32.mrf.mxu1  ;;  %4237 = vmatprep.mubr.msk.f32.mxu1 %vm504_vm1, %v5486_v34 }
  0xf8   : > { %6325 = vst [vmem:[#allocation33_spill] sm:$0xff] %v5495_v46  ;;  %v5499_v47 = vpop.f32.mrf.mxu0  ;;  %4288 = vmatmul.mubr.f32.gmra.mxu0 %v6324_v36 }
  0xf9   : > { %4342 = vmatprep.mubr.msk.f32.mxu0 %vm504_vm1, %v6303_v49 }
  0xfa   : > { %v5505_v25 = vpop.f32.mrf.mxu0  ;;  %v5509_v45 = vpop.f32.mrf.mxu1  ;;  %4238 = vmatmul.mubr.msk.f32.gmra.mxu1 %vm504_vm1, %v5502_v3 }
  0xfb   : > { %4292 = vmatprep.mubr.msk.f32.mxu1 %vm504_vm1, %v4598_v7 }
  0xfc   : > { %v4044_v46 = vpop.f32.mrf.mxu0  ;;  %v5515_v34 = vpop.f32.mrf.mxu1  ;;  %4343 = vmatmul.mubr.msk.f32.vlgmr.msra.gmra.mxu0 %vm504_vm1, %v6304_v55 }
  0xfd   : > { %6326 = vst [vmem:[#allocation34_spill] sm:$0xff] %v5515_v34  ;;  %4345 = vmatprep.mubr.msk.f32.mxu0 %vm504_vm1, %v6305_v62 }
  0xfe   : > { %v1295_v37 = vpop.f32.mrf.mxu0  ;;  %v3994_v50 = vpop.f32.mrf.mxu1  ;;  %4293 = vmatmul.mubr.msk.f32.vlgmr.msra.gmra.mxu1 %vm504_vm1, %v4611_v13 }
  0xff   : > { %v933_v49 = vadd.f32 %v3994_v50, %v5366_v51  ;;  %4295 = vmatprep.mubr.msk.f32.mxu1 %vm504_vm1, %v6275_v22 }
 0x100   : > { %v927_v7 = vpop.f32.mrf.mxu1  ;;  %v4047_v36 = vpop.f32.mrf.mxu0  ;;  %4346 = vmatmul.mubr.msk.f32.gmra.mxu0 %vm504_vm1, %v6306_v10 }
 0x101   : > { %v5528_v34 = vadd.f32 %v4044_v46, %v933_v49  ;;  %v928_v55 = vadd.f32 %v927_v7, %v5376_v20  ;;  %4348 = vmatprep.mubr.msk.f32.mxu0 %vm504_vm1, %v6307_v40  ;;  %v6327_v7 = vld [vmem:[#allocation22_spill] sm:$0xff] }
 0x102   : > { %v3997_v62 = vpop.f32.mrf.mxu1  ;;  %4296 = vmatmul.mubr.msk.f32.gmra.mxu1 %vm504_vm1, %v6276_v26  ;;  %v1305_v13 = vpop.f32.mrf.mxu0 }
 0x103   : > { %v5535_v51 = vadd.f32 %v1295_v37, %v928_v55  ;;  %v943_v22 = vadd.f32 %v3997_v62, %v5390_v8  ;;  %4298 = vmatprep.mubr.msk.f32.mxu1 %vm504_vm1, %v6277_v53  ;;  %v6328_v55 = vld [vmem:[#allocation23_spill] sm:$0xff] }
 0x104   : > { %v937_v10 = vpop.f32.mrf.mxu1  ;;  %v4050_v46 = vpop.f32.mrf.mxu0  ;;  %4349 = vmatmul.mubr.msk.f32.gmra.mxu0 %vm504_vm1, %v6308_v23 }
 0x105   : > { %v5542_v20 = vadd.f32 %v4047_v36, %v943_v22  ;;  %v938_v40 = vadd.f32 %v937_v10, %v5398_v30  ;;  %4351 = vmatprep.mubr.msk.f32.mxu0 %vm504_vm1, %v4949_v44  ;;  %v6329_v22 = vld [vmem:[#allocation26_spill] sm:$0xff] }
 0x106   : > { %v4000_v26 = vpop.f32.mrf.mxu1  ;;  %4299 = vmatmul.mubr.msk.f32.gmra.mxu1 %vm504_vm1, %v6278_v48  ;;  %v1315_v8 = vpop.f32.mrf.mxu0 }
 0x107   : > { %v5549_v37 = vadd.f32 %v1305_v13, %v938_v40  ;;  %v953_v53 = vadd.f32 %v4000_v26, %v5406_v63  ;;  %4301 = vmatprep.mubr.msk.f32.mxu1 %vm504_vm1, %v6279_v27  ;;  %v6330_v40 = vld [vmem:[#allocation27_spill] sm:$0xff] }
 0x108   : > { %v947_v23 = vpop.f32.mrf.mxu1  ;;  %v4053_v50 = vpop.f32.mrf.mxu0  ;;  %4352 = vmatmul.mubr.msk.f32.gmra.mxu0 %vm504_vm1, %v4970_v43 }
 0x109   : > { %v5556_v30 = vadd.f32 %v4050_v46, %v953_v53  ;;  %v948_v44 = vadd.f32 %v947_v23, %v5414_v28  ;;  %4354 = vmatprep.mubr.msk.f32.mxu0 %vm504_vm1, %v4976_v35  ;;  %v6331_v53 = vld [vmem:[#allocation4_spill] sm:$0xff] }
 0x10a   : > { %v4003_v48 = vpop.f32.mrf.mxu1  ;;  %4302 = vmatmul.mubr.msk.f32.gmra.mxu1 %vm504_vm1, %v6280_v38  ;;  %v1325_v63 = vpop.f32.mrf.mxu0 }
 0x10b   : > { %v5563_v49 = vadd.f32 %v1315_v8, %v948_v44  ;;  %v963_v27 = vadd.f32 %v4003_v48, %v5424_v56  ;;  %4304 = vmatprep.mubr.msk.f32.mxu1 %vm504_vm1, %v6327_v7  ;;  %v6332_v44 = vld [vmem:[#allocation5_spill] sm:$0xff] }
 0x10c   : > { %v957_v43 = vpop.f32.mrf.mxu1  ;;  %v4056_v36 = vpop.f32.mrf.mxu0  ;;  %4355 = vmatmul.mubr.msk.f32.gmra.mxu0 %vm504_vm1, %v4992_v58 }
 0x10d   : > { %v5570_v28 = vadd.f32 %v4053_v50, %v963_v27  ;;  %v958_v35 = vadd.f32 %v957_v43, %v5432_v11  ;;  %4357 = vmatprep.mubr.msk.f32.mxu0 %vm504_vm1, %v6309_v17  ;;  %v6333_v27 = vld [vmem:[#allocation6_spill] sm:$0xff] }
 0x10e   : > { %v4006_v38 = vpop.f32.mrf.mxu1  ;;  %4305 = vmatmul.mubr.msk.f32.gmra.mxu1 %vm504_vm1, %v6328_v55  ;;  %v1335_v56 = vpop.f32.mrf.mxu0  ;;  %v6335_v55 = vld [vmem:[#allocation8_spill] sm:$0xff] }
 0x10f   : > { %v5577_v62 = vadd.f32 %v1325_v63, %v958_v35  ;;  %v973_v13 = vadd.f32 %v4006_v38, %v5442_v9  ;;  %4307 = vmatprep.mubr.msk.f32.mxu1 %vm504_vm1, %v6329_v22  ;;  %v6336_v22 = vld [vmem:[#allocation9_spill] sm:$0xff] }
 0x110   : > { %v967_v58 = vpop.f32.mrf.mxu1  ;;  %v4059_v10 = vpop.f32.mrf.mxu0  ;;  %4358 = vmatmul.mubr.msk.f32.gmra.mxu0 %vm504_vm1, %v5009_v24 }
 0x111   : > { %v5584_v11 = vadd.f32 %v4056_v36, %v973_v13  ;;  %v968_v17 = vadd.f32 %v967_v58, %v5450_v33  ;;  %4360 = vmatprep.mubr.msk.f32.mxu0 %vm504_vm1, %v6310_v52  ;;  %v6334_v36 = vld [vmem:[#allocation7_spill] sm:$0xff] }
 0x112   : > { %v4009_v46 = vpop.f32.mrf.mxu1  ;;  %4308 = vmatmul.mubr.msk.f32.gmra.mxu1 %vm504_vm1, %v6330_v40  ;;  %v1345_v9 = vpop.f32.mrf.mxu0 }
 0x113   : > { %v5591_v26 = vadd.f32 %v1335_v56, %v968_v17  ;;  %v983_v8 = vadd.f32 %v4009_v46, %v5462_v1  ;;  %4310 = vmatprep.mubr.msk.f32.mxu1 %vm504_vm1, %v6331_v53  ;;  %v6337_v17 = vld [vmem:[#allocation12_spill] sm:$0xff] }
 0x114   : > { %v977_v24 = vpop.f32.mrf.mxu1  ;;  %v4062_v23 = vpop.f32.mrf.mxu0  ;;  %4361 = vmatmul.mubr.msk.f32.gmra.mxu0 %vm504_vm1, %v5026_v21 }
 0x115   : > { %v5598_v33 = vadd.f32 %v4059_v10, %v983_v8  ;;  %v978_v52 = vadd.f32 %v977_v24, %v5470_v29  ;;  %4363 = vmatprep.mubr.msk.f32.mxu0 %vm504_vm1, %v6311_v31  ;;  %v6339_v24 = vld [vmem:[#allocation15_spill] sm:$0xff] }
 0x116   : > { %v4012_v50 = vpop.f32.mrf.mxu1  ;;  %4311 = vmatmul.mubr.msk.f32.gmra.mxu1 %vm504_vm1, %v6332_v44  ;;  %v1355_v1 = vpop.f32.mrf.mxu0 }
 0x117   : > { %v5605_v48 = vadd.f32 %v1345_v9, %v978_v52  ;;  %v993_v63 = vadd.f32 %v4012_v50, %v5480_v0  ;;  %4313 = vmatprep.mubr.msk.f32.mxu1 %vm504_vm1, %v6333_v27  ;;  %v6338_v9 = vld [vmem:[#allocation13_spill] sm:$0xff] }
 0x118   : > { %v987_v21 = vpop.f32.mrf.mxu1  ;;  %v4065_v7 = vpop.f32.mrf.mxu0  ;;  %4364 = vmatmul.mubr.msk.f32.gmra.mxu0 %vm504_vm1, %v5043_v42  ;;  %v6340_v50 = vld [vmem:[#allocation17_spill] sm:$0xff] }
 0x119   : > { %v5612_v29 = vadd.f32 %v4062_v23, %v993_v63  ;;  %v988_v31 = vadd.f32 %v987_v21, %v5490_v16  ;;  %4366 = vmatprep.mubr.msk.f32.mxu0 %vm504_vm1, %v6312_v54  ;;  %v6341_v63 = vld [vmem:[#allocation19_spill] sm:$0xff] }
 0x11a   : > { %v4015_v43 = vpop.f32.mrf.mxu1  ;;  %4314 = vmatmul.mubr.msk.f32.gmra.mxu1 %vm504_vm1, %v6334_v36  ;;  %v1365_v0 = vpop.f32.mrf.mxu0 }
 0x11b   : > { %v5619_v35 = vadd.f32 %v1355_v1, %v988_v31  ;;  %v1003_v38 = vadd.f32 %v4015_v43, %v5499_v47  ;;  %4316 = vmatprep.mubr.msk.f32.mxu1 %vm504_vm1, %v6335_v55  ;;  %v6343_v43 = vld [vmem:[#allocation11_spill] sm:$0xff] }
 0x11c   : > { %v997_v42 = vpop.f32.mrf.mxu1  ;;  %v4068_v56 = vpop.f32.mrf.mxu0  ;;  %4367 = vmatmul.mubr.msk.f32.gmra.mxu0 %vm504_vm1, %v5060_v4 }
 0x11d   : > { %v5626_v16 = vadd.f32 %v4065_v7, %v1003_v38  ;;  %v998_v54 = vadd.f32 %v997_v42, %v5505_v25  ;;  %4369 = vmatprep.mubr.msk.f32.mxu0 %vm504_vm1, %v6313_v18  ;;  %v6342_v7 = vld [vmem:[#allocation21_spill] sm:$0xff]  ;;  %v6346_v42 = vld [vmem:[#allocation46_spill] sm:$0xff] }
 0x11e   : > { %v4018_v13 = vpop.f32.mrf.mxu1  ;;  %4317 = vmatmul.mubr.msk.f32.gmra.mxu1 %vm504_vm1, %v6336_v22  ;;  %v1375_v47 = vpop.f32.mrf.mxu0 }
 0x11f   : > { %v5633_v58 = vadd.f32 %v1365_v0, %v998_v54  ;;  %v1013_v10 = vadd.f32 %v4018_v13, %v5380_v6  ;;  %4319 = vmatprep.mubr.msk.f32.mxu1 %vm504_vm1, %v6337_v17  ;;  %v6344_v0 = vld [vmem:[#allocation24_spill] sm:$0xff]  ;;  %v6347_v54 = vld [vmem:[#allocation25_spill] sm:$0xff] }
 0x120   : > { %v1007_v4 = vpop.f32.mrf.mxu1  ;;  %v4071_v46 = vpop.f32.mrf.mxu0  ;;  %4370 = vmatmul.mubr.msk.f32.gmra.mxu0 %vm504_vm1, %v5077_v39  ;;  %v6349_v17 = vld [vmem:[#allocation28_spill] sm:$0xff] }
 0x121   : > { %v5640_v25 = vadd.f32 %v4068_v56, %v1013_v10  ;;  %v1008_v18 = vadd.f32 %v1007_v4, %v5386_v19  ;;  %4372 = vmatprep.mubr.msk.f32.mxu0 %vm504_vm1, %v6315_v14 }
 0x122   : > { %v4021_v40 = vpop.f32.mrf.mxu1  ;;  %4320 = vmatmul.mubr.msk.f32.gmra.mxu1 %vm504_vm1, %v6338_v9  ;;  %v1385_v6 = vpop.f32.mrf.mxu0  ;;  %v6351_v9 = vld [vmem:[#allocation31_spill] sm:$0xff] }
 0x123   : > { %v5647_v8 = vadd.f32 %v1375_v47, %v1008_v18  ;;  %v1023_v53 = vadd.f32 %v4021_v40, %v5394_v57  ;;  %4322 = vmatprep.mubr.msk.f32.mxu1 %vm504_vm1, %v6339_v24  ;;  %v6348_v47 = vld [vmem:[#allocation16_spill] sm:$0xff]  ;;  %v6350_v18 = vld [vmem:[#allocation18_spill] sm:$0xff] }
 0x124   : > { %v1017_v39 = vpop.f32.mrf.mxu1  ;;  %v4074_v23 = vpop.f32.mrf.mxu0  ;;  %4373 = vmatmul.mubr.msk.f32.gmra.mxu0 %vm504_vm1, %v5094_v15 }
 0x125   : > { %v5654_v19 = vadd.f32 %v4071_v46, %v1023_v53  ;;  %v1018_v14 = vadd.f32 %v1017_v39, %v5402_v60  ;;  %4375 = vmatprep.mubr.msk.f32.mxu0 %vm504_vm1, %v5100_v5  ;;  %v6352_v53 = vld [vmem:[#allocation29_spill] sm:$0xff] }
 0x126   : > { %v4024_v52 = vpop.f32.mrf.mxu1  ;;  %4323 = vmatmul.mubr.msk.f32.gmra.mxu1 %vm504_vm1, %v6340_v50  ;;  %v1395_v57 = vpop.f32.mrf.mxu0 }
 0x127   : > { %v5661_v44 = vadd.f32 %v1385_v6, %v1018_v14  ;;  %v1033_v1 = vadd.f32 %v4024_v52, %v5410_v59  ;;  %4325 = vmatprep.mubr.msk.f32.mxu1 %vm504_vm1, %v6341_v63  ;;  %v6354_v52 = vld [vmem:[#allocation10_spill] sm:$0xff] }
 0x128   : > { %v1027_v15 = vpop.f32.mrf.mxu1  ;;  %v4077_v27 = vpop.f32.mrf.mxu0  ;;  %4376 = vmatmul.mubr.msk.f32.gmra.mxu0 %vm504_vm1, %v5111_v2 }
 0x129   : > { %v5668_v60 = vadd.f32 %v4074_v23, %v1033_v1  ;;  %v1028_v5 = vadd.f32 %v1027_v15, %v5418_v32  ;;  %4378 = vmatprep.mubr.msk.f32.mxu0 %vm504_vm1, %v5117_v61  ;;  %v6345_v61 = vld [vmem:[#allocation14_spill] sm:$0xff]  ;;  %v6353_v23 = vld [vmem:[#allocation20_spill] sm:$0xff]  ;;  %v6356_v15 = vld [vmem:[#allocation3_spill] sm:$0xff] }
 0x12a   : > { %v4027_v21 = vpop.f32.mrf.mxu1  ;;  %4326 = vmatmul.mubr.msk.f32.gmra.mxu1 %vm504_vm1, %v6342_v7  ;;  %v1405_v59 = vpop.f32.mrf.mxu0  ;;  %v6355_v1 = vld [vmem:[#allocation30_spill] sm:$0xff] }
 0x12b   : > { %v5675_v31 = vadd.f32 %v1395_v57, %v1028_v5  ;;  %v1043_v36 = vadd.f32 %v4027_v21, %v6343_v43  ;;  %4328 = vmatprep.mubr.msk.f32.mxu1 %vm504_vm1, %v6344_v0  ;;  %v6357_v5 = vld [vmem:[#allocation39_spill] sm:$0xff] }
 0x12c   : > { %v1037_v2 = vpop.f32.mrf.mxu1  ;;  %v4080_v38 = vpop.f32.mrf.mxu0  ;;  %4379 = vmatmul.mubr.msk.f32.gmra.mxu0 %vm504_vm1, %v5128_v12 }
 0x12d   : > { %v5682_v32 = vadd.f32 %v4077_v27, %v1043_v36  ;;  %v1038_v55 = vadd.f32 %v1037_v2, %v6345_v61  ;;  %4381 = vmatprep.mubr.msk.f32.mxu0 %vm504_vm1, %v6346_v42  ;;  %v6359_v36 = vld [vmem:[#allocation2_spill] sm:$0xff] }
 0x12e   : > { %v4030_v56 = vpop.f32.mrf.mxu1  ;;  %4329 = vmatmul.mubr.msk.f32.gmra.mxu1 %vm504_vm1, %v6347_v54  ;;  %v1415_v13 = vpop.f32.mrf.mxu0 }
 0x12f   : > { %v5689_v22 = vadd.f32 %v1405_v59, %v1038_v55  ;;  %v1053_v10 = vadd.f32 %v4030_v56, %v6348_v47  ;;  %4331 = vmatprep.mubr.msk.f32.mxu1 %vm504_vm1, %v6349_v17  ;;  %v6358_v59 = vld [vmem:[#allocation32_spill] sm:$0xff]  ;;  %v6361_v17 = vld [vmem:[#allocation34_spill] sm:$0xff] }
 0x130   : > { %v1047_v12 = vpop.f32.mrf.mxu1  ;;  %v4083_v4 = vpop.f32.mrf.mxu0  ;;  %4382 = vmatmul.mubr.msk.f32.gmra.mxu0 %vm504_vm1, %v5143_v41 }
 0x131   : > { %v5696_v46 = vadd.f32 %v4080_v38, %v1053_v10  ;;  %v1048_v40 = vadd.f32 %v1047_v12, %v6350_v18  ;;  %4384 = vmatprep.mubr.msk.f32.mxu0 %vm504_vm1, %v6351_v9  ;;  %v6360_v38 = vld [vmem:[#allocation33_spill] sm:$0xff] }
 0x132   : > { %v4033_v6 = vpop.f32.mrf.mxu1  ;;  %4332 = vmatmul.mubr.msk.f32.gmra.mxu1 %vm504_vm1, %v6352_v53  ;;  %v1425_v24 = vpop.f32.mrf.mxu0 }
 0x133   : > { %v5703_v39 = vadd.f32 %v1415_v13, %v1048_v40  ;;  %v1063_v14 = vadd.f32 %v4033_v6, %v6353_v23  ;;  %4334 = vmatprep.mubr.msk.f32.mxu1 %vm504_vm1, %v6354_v52 }
 0x134   : > { %v1057_v41 = vpop.f32.mrf.mxu1  ;;  %v4086_v50 = vpop.f32.mrf.mxu0  ;;  %4385 = vmatmul.mubr.msk.f32.gmra.mxu0 %vm504_vm1, %v5502_v3 }
 0x135   : > { %v5710_v57 = vadd.f32 %v4083_v4, %v1063_v14  ;;  %v1058_v63 = vadd.f32 %v1057_v41, %v6355_v1  ;;  %4387 = vmatprep.mubr.msk.f32.mxu0 %vm504_vm1, %v6356_v15 }
 0x136   : > { %v4036_v27 = vpop.f32.mrf.mxu1  ;;  %4335 = vmatmul.mubr.msk.f32.gmra.mxu1 %vm504_vm1, %v6357_v5  ;;  %v1435_v21 = vpop.f32.mrf.mxu0 }
 0x137   : > { %v5717_v7 = vadd.f32 %v1425_v24, %v1058_v63  ;;  %v1073_v43 = vadd.f32 %v4036_v27, %v6358_v59  ;;  %4337 = vmatprep.mubr.msk.f32.mxu1 %vm504_vm1, %v6359_v36 }
 0x138   : > { %v1067_v3 = vpop.f32.mrf.mxu1  ;;  %v4089_v0 = vpop.f32.mrf.mxu0  ;;  %4388 = vmatmul.mubr.msk.f32.gmra.mxu0 %vm504_vm1, %v6356_v15 }
 0x139   : > { %v5724_v2 = vadd.f32 %v4086_v50, %v1073_v43  ;;  %v1068_v61 = vadd.f32 %v1067_v3, %v6360_v38 }
 0x13a   : > { %v4039_v55 = vpop.f32.mrf.mxu1  ;;  %4338 = vmatmul.mubr.msk.f32.gmra.mxu1 %vm504_vm1, %v6359_v36  ;;  %v1445_v42 = vpop.f32.mrf.mxu0 }
 0x13b   : > { %v5729_v56 = vadd.f32 %v1435_v21, %v1068_v61  ;;  %v1083_v54 = vadd.f32 %v4039_v55, %v5509_v45 }
 0x13c   : > { %v1077_v13 = vpop.f32.mrf.mxu1  ;;  %v4144_v47 = vpop.f32.mrf.mxu0 }
 0x13d   : > { %v5732_v10 = vadd.f32 %v4089_v0, %v1083_v54  ;;  %v1078_v12 = vadd.f32 %v1077_v13, %v6361_v17 }
 0x13e   : > { %v4094_v4 = vpop.f32.mrf.mxu1  ;;  %v1830_v18 = vpop.f32.mrf.mxu0 }
 0x13f   : > { %v5735_v40 = vadd.f32 %v1445_v42, %v1078_v12  ;;  %v1720_v9 = vadd.f32 %v4094_v4, %v5528_v34 }
 0x140   : > { %v1560_v6 = vpop.f32.mrf.mxu1  ;;  %v4147_v53 = vpop.f32.mrf.mxu0 }
 0x141   : > { %v5738_v24 = vadd.f32 %v4144_v47, %v1720_v9  ;;  %v1719_v23 = vadd.f32 %v1560_v6, %v5535_v51 }
 0x142   : > { %v4097_v14 = vpop.f32.mrf.mxu1  ;;  %v1840_v45 = vpop.f32.mrf.mxu0 }
 0x143   : > { %v5741_v52 = vadd.f32 %v1830_v18, %v1719_v23  ;;  %v1722_v41 = vadd.f32 %v4097_v14, %v5542_v20 }
 0x144   : > { %v1570_v50 = vpop.f32.mrf.mxu1  ;;  %v4150_v1 = vpop.f32.mrf.mxu0 }
 0x145   : > { %v5744_v63 = vadd.f32 %v4147_v53, %v1722_v41  ;;  %v1721_v15 = vadd.f32 %v1570_v50, %v5549_v37 }
 0x146   : > { %v4100_v27 = vpop.f32.mrf.mxu1  ;;  %v1850_v34 = vpop.f32.mrf.mxu0 }
 0x147   : > { %v5747_v5 = vadd.f32 %v1840_v45, %v1721_v15  ;;  %v1724_v21 = vadd.f32 %v4100_v27, %v5556_v30 }
 0x148   : > { %v1580_v59 = vpop.f32.mrf.mxu1  ;;  %v4153_v51 = vpop.f32.mrf.mxu0 }
 0x149   : > { %v5750_v43 = vadd.f32 %v4150_v1, %v1724_v21  ;;  %v1723_v36 = vadd.f32 %v1580_v59, %v5563_v49 }
 0x14a   : > { %v4103_v3 = vpop.f32.mrf.mxu1  ;;  %v1860_v20 = vpop.f32.mrf.mxu0 }
 0x14b   : > { %v5753_v0 = vadd.f32 %v1850_v34, %v1723_v36  ;;  %v1726_v38 = vadd.f32 %v4103_v3, %v5570_v28 }
 0x14c   : > { %v1590_v61 = vpop.f32.mrf.mxu1  ;;  %v4156_v37 = vpop.f32.mrf.mxu0 }
 0x14d   : > { %v5756_v55 = vadd.f32 %v4153_v51, %v1726_v38  ;;  %v1725_v42 = vadd.f32 %v1590_v61, %v5577_v62 }
 0x14e   : > { %v4106_v54 = vpop.f32.mrf.mxu1  ;;  %v1870_v30 = vpop.f32.mrf.mxu0 }
 0x14f   : > { %v5759_v13 = vadd.f32 %v1860_v20, %v1725_v42  ;;  %v1728_v47 = vadd.f32 %v4106_v54, %v5584_v11 }
 0x150   : > { %v1600_v17 = vpop.f32.mrf.mxu1  ;;  %v4159_v49 = vpop.f32.mrf.mxu0 }
 0x151   : > { %v5762_v12 = vadd.f32 %v4156_v37, %v1728_v47  ;;  %v1727_v4 = vadd.f32 %v1600_v17, %v5591_v26 }
 0x152   : > { %v4109_v18 = vpop.f32.mrf.mxu1  ;;  %v1880_v28 = vpop.f32.mrf.mxu0 }
 0x153   : > { %v5765_v9 = vadd.f32 %v1870_v30, %v1727_v4  ;;  %v1730_v6 = vadd.f32 %v4109_v18, %v5598_v33 }
 0x154   : > { %v1610_v53 = vpop.f32.mrf.mxu1  ;;  %v4162_v62 = vpop.f32.mrf.mxu0 }
 0x155   : > { %v5768_v23 = vadd.f32 %v4159_v49, %v1730_v6  ;;  %v1729_v14 = vadd.f32 %v1610_v53, %v5605_v48 }
 0x156   : > { %v4112_v45 = vpop.f32.mrf.mxu1  ;;  %v1890_v11 = vpop.f32.mrf.mxu0 }
 0x157   : > { %v5771_v41 = vadd.f32 %v1880_v28, %v1729_v14  ;;  %v1732_v50 = vadd.f32 %v4112_v45, %v5612_v29 }
 0x158   : > { %v1620_v1 = vpop.f32.mrf.mxu1  ;;  %v4165_v26 = vpop.f32.mrf.mxu0 }
 0x159   : > { %v5774_v15 = vadd.f32 %v4162_v62, %v1732_v50  ;;  %v1731_v27 = vadd.f32 %v1620_v1, %v5619_v35 }
 0x15a   : > { %v4115_v34 = vpop.f32.mrf.mxu1  ;;  %v1900_v33 = vpop.f32.mrf.mxu0 }
 0x15b   : > { %v5777_v21 = vadd.f32 %v1890_v11, %v1731_v27  ;;  %v1734_v59 = vadd.f32 %v4115_v34, %v5626_v16 }
 0x15c   : > { %v1630_v51 = vpop.f32.mrf.mxu1  ;;  %v4168_v48 = vpop.f32.mrf.mxu0 }
 0x15d   : > { %v5780_v36 = vadd.f32 %v4165_v26, %v1734_v59  ;;  %v1733_v3 = vadd.f32 %v1630_v51, %v5633_v58 }
 0x15e   : > { %v4118_v20 = vpop.f32.mrf.mxu1  ;;  %v1910_v29 = vpop.f32.mrf.mxu0 }
 0x15f   : > { %v5783_v38 = vadd.f32 %v1900_v33, %v1733_v3  ;;  %v1736_v61 = vadd.f32 %v4118_v20, %v5640_v25 }
 0x160   : > { %v1640_v37 = vpop.f32.mrf.mxu1  ;;  %v4171_v35 = vpop.f32.mrf.mxu0 }
 0x161   : > { %v5786_v42 = vadd.f32 %v4168_v48, %v1736_v61  ;;  %v1735_v54 = vadd.f32 %v1640_v37, %v5647_v8 }
 0x162   : > { %v4121_v30 = vpop.f32.mrf.mxu1  ;;  %v1920_v16 = vpop.f32.mrf.mxu0 }
 0x163   : > { %v5789_v47 = vadd.f32 %v1910_v29, %v1735_v54  ;;  %v1738_v17 = vadd.f32 %v4121_v30, %v5654_v19 }
 0x164   : > { %v1650_v49 = vpop.f32.mrf.mxu1  ;;  %v4174_v58 = vpop.f32.mrf.mxu0 }
 0x165   : > { %v5792_v4 = vadd.f32 %v4171_v35, %v1738_v17  ;;  %v1737_v18 = vadd.f32 %v1650_v49, %v5661_v44 }
 0x166   : > { %v4124_v28 = vpop.f32.mrf.mxu1  ;;  %v1930_v25 = vpop.f32.mrf.mxu0 }
 0x167   : > { %6362 = vst [vmem:[#allocation35_spill] sm:$0xff] %v5792_v4  ;;  %v5795_v6 = vadd.f32 %v1920_v16, %v1737_v18  ;;  %v1740_v53 = vadd.f32 %v4124_v28, %v5668_v60 }
 0x168   : > { %v1660_v62 = vpop.f32.mrf.mxu1  ;;  %v4177_v8 = vpop.f32.mrf.mxu0 }
 0x169   : > { %6363 = vst [vmem:[#allocation36_spill] sm:$0xff] %v5795_v6  ;;  %v5798_v14 = vadd.f32 %v4174_v58, %v1740_v53  ;;  %v1739_v45 = vadd.f32 %v1660_v62, %v5675_v31 }
 0x16a   : > { %v4127_v11 = vpop.f32.mrf.mxu1  ;;  %v1940_v19 = vpop.f32.mrf.mxu0 }
 0x16b   : > { %6364 = vst [vmem:[#allocation37_spill] sm:$0xff] %v5798_v14  ;;  %v5801_v50 = vadd.f32 %v1930_v25, %v1739_v45  ;;  %v1742_v1 = vadd.f32 %v4127_v11, %v5682_v32 }
 0x16c   : > { %v1670_v26 = vpop.f32.mrf.mxu1  ;;  %v4180_v44 = vpop.f32.mrf.mxu0 }
 0x16d   : > { %6365 = vst [vmem:[#allocation40_spill] sm:$0xff] %v5801_v50  ;;  %v5804_v27 = vadd.f32 %v4177_v8, %v1742_v1  ;;  %v1741_v34 = vadd.f32 %v1670_v26, %v5689_v22 }
 0x16e   : > { %v4130_v33 = vpop.f32.mrf.mxu1  ;;  %v1950_v60 = vpop.f32.mrf.mxu0 }
 0x16f   : > { %6366 = vst [vmem:[#allocation41_spill] sm:$0xff] %v5804_v27  ;;  %v5807_v59 = vadd.f32 %v1940_v19, %v1741_v34  ;;  %v1744_v51 = vadd.f32 %v4130_v33, %v5696_v46 }
 0x170   : > { %v1680_v48 = vpop.f32.mrf.mxu1  ;;  %v4183_v31 = vpop.f32.mrf.mxu0 }
 0x171   : > { %6367 = vst [vmem:[#allocation42_spill] sm:$0xff] %v5807_v59  ;;  %v5810_v3 = vadd.f32 %v4180_v44, %v1744_v51  ;;  %v1743_v20 = vadd.f32 %v1680_v48, %v5703_v39 }
 0x172   : > { %v4133_v29 = vpop.f32.mrf.mxu1  ;;  %v1960_v32 = vpop.f32.mrf.mxu0 }
 0x173   : > { %6368 = vst [vmem:[#allocation43_spill] sm:$0xff] %v5810_v3  ;;  %v5813_v61 = vadd.f32 %v1950_v60, %v1743_v20  ;;  %v1746_v37 = vadd.f32 %v4133_v29, %v5710_v57 }
 0x174   : > { %v1690_v35 = vpop.f32.mrf.mxu1  ;;  %v4186_v22 = vpop.f32.mrf.mxu0 }
 0x175   : > { %6369 = vst [vmem:[#allocation44_spill] sm:$0xff] %v5813_v61  ;;  %v5816_v54 = vadd.f32 %v4183_v31, %v1746_v37  ;;  %v1745_v30 = vadd.f32 %v1690_v35, %v5717_v7 }
 0x176   : > { %v4136_v16 = vpop.f32.mrf.mxu1  ;;  %v1970_v46 = vpop.f32.mrf.mxu0 }
 0x177   : > { %6370 = vst [vmem:[#allocation45_spill] sm:$0xff] %v5816_v54  ;;  %v5819_v17 = vadd.f32 %v1960_v32, %v1745_v30  ;;  %v1748_v49 = vadd.f32 %v4136_v16, %v5724_v2 }
 0x178   : > { %v1700_v58 = vpop.f32.mrf.mxu1  ;;  %v4189_v39 = vpop.f32.mrf.mxu0 }
 0x179   : > { %6371 = vst [vmem:[#allocation38_spill] sm:$0xff] %v5819_v17  ;;  %v5822_v18 = vadd.f32 %v4186_v22, %v1748_v49  ;;  %v1747_v28 = vadd.f32 %v1700_v58, %v5729_v56 }
 0x17a   : > { %v4139_v25 = vpop.f32.mrf.mxu1  ;;  %v1980_v57 = vpop.f32.mrf.mxu0 }
 0x17b   : > { %6372 = vst [vmem:[#allocation22_spill] sm:$0xff] %v5822_v18  ;;  %v5825_v53 = vadd.f32 %v1970_v46, %v1747_v28  ;;  %v1750_v62 = vadd.f32 %v4139_v25, %v5732_v10 }
 0x17c   : > { %v1710_v8 = vpop.f32.mrf.mxu1  ;;  %v5828_v7 = vpop.f32.mrf.mxu0 }
 0x17d   : > { %6373 = vst [vmem:[#allocation23_spill] sm:$0xff] %v5825_v53  ;;  %v5830_v45 = vadd.f32 %v4189_v39, %v1750_v62  ;;  %v1749_v11 = vadd.f32 %v1710_v8, %v5735_v40 }
 0x17e   : > { %v4194_v2 = vpop.f32.mrf.mxu1  ;;  %v5833_v19 = vpop.f32.mrf.mxu0 }
 0x17f   : > { %6374 = vst [vmem:[#allocation26_spill] sm:$0xff] %v5830_v45  ;;  %v5835_v1 = vadd.f32 %v1980_v57, %v1749_v11 }
 0x180   : > { %v2099_v26 = vpop.f32.mrf.mxu1  ;;  %v5837_v56 = vpop.f32.mrf.mxu0 }
 0x181   : > { %6375 = vst [vmem:[#allocation27_spill] sm:$0xff] %v5835_v1 }
 0x182   : > { %v5839_v44 = vpop.f32.mrf.mxu1  ;;  %v5841_v34 = vpop.f32.mrf.mxu0 }
 0x184   : > { %v5843_v10 = vpop.f32.mrf.mxu1  ;;  %v5845_v33 = vpop.f32.mrf.mxu0 }
 0x186   : > { %v5847_v60 = vpop.f32.mrf.mxu1  ;;  %v5849_v51 = vpop.f32.mrf.mxu0 }
 0x188   : > { %v5851_v40 = vpop.f32.mrf.mxu1  ;;  %v5853_v48 = vpop.f32.mrf.mxu0 }
 0x18a   : > { %v5855_v31 = vpop.f32.mrf.mxu1  ;;  %v5857_v20 = vpop.f32.mrf.mxu0 }
 0x18c   : > { %v5859_v29 = vpop.f32.mrf.mxu1  ;;  %v5861_v32 = vpop.f32.mrf.mxu0 }
 0x18e   : > { %v5863_v37 = vpop.f32.mrf.mxu1  ;;  %v5865_v35 = vpop.f32.mrf.mxu0 }
 0x190   : > { %v5867_v22 = vpop.f32.mrf.mxu1  ;;  %v5869_v30 = vpop.f32.mrf.mxu0 }
 0x192   : > { %v5871_v16 = vpop.f32.mrf.mxu1  ;;  %v5873_v46 = vpop.f32.mrf.mxu0 }
 0x194   : > { %v5875_v49 = vpop.f32.mrf.mxu1  ;;  %v5877_v58 = vpop.f32.mrf.mxu0 }
 0x196   : > { %v5879_v39 = vpop.f32.mrf.mxu1  ;;  %v5881_v28 = vpop.f32.mrf.mxu0 }
 0x198   : > { %v5883_v25 = vpop.f32.mrf.mxu1  ;;  %v5885_v57 = vpop.f32.mrf.mxu0 }
 0x19a   : > { %v5887_v62 = vpop.f32.mrf.mxu1  ;;  %v5889_v8 = vpop.f32.mrf.mxu0 }
 0x19c   : > { %v5891_v11 = vpop.f32.mrf.mxu1  ;;  %v5893_v1 = vpop.f32.mrf.mxu0 }
 0x19e   : > { %v5895_v45 = vpop.f32.mrf.mxu1  ;;  %v5897_v53 = vpop.f32.mrf.mxu0 }
 0x19f   : > { %6376 = vst [vmem:[#allocation4_spill] sm:$0xff] %v5897_v53 }
 0x1a0   : > { %v5899_v18 = vpop.f32.mrf.mxu1  ;;  %v5901_v17 = vpop.f32.mrf.mxu0 }
 0x1a1   : > { %6377 = vst [vmem:[#allocation5_spill] sm:$0xff] %v5901_v17 }
 0x1a2   : > { %v5903_v54 = vpop.f32.mrf.mxu1  ;;  %v5905_v61 = vpop.f32.mrf.mxu0 }
 0x1a3   : > { %6378 = vst [vmem:[#allocation6_spill] sm:$0xff] %v5903_v54  ;;  %6379 = vst [vmem:[#allocation7_spill] sm:$0xff] %v5905_v61 }
 0x1a4   : > { %v5907_v3 = vpop.f32.mrf.mxu1  ;;  %v5909_v59 = vpop.f32.mrf.mxu0 }
 0x1a5   : > { %6380 = vst [vmem:[#allocation8_spill] sm:$0xff] %v5907_v3  ;;  %6381 = vst [vmem:[#allocation9_spill] sm:$0xff] %v5909_v59 }
 0x1a6   : > { %v5911_v27 = vpop.f32.mrf.mxu1  ;;  %v5913_v50 = vpop.f32.mrf.mxu0 }
 0x1a7   : > { %6382 = vst [vmem:[#allocation12_spill] sm:$0xff] %v5911_v27  ;;  %6383 = vst [vmem:[#allocation13_spill] sm:$0xff] %v5913_v50 }
 0x1a8   : > { %v5915_v14 = vpop.f32.mrf.mxu1  ;;  %v5917_v6 = vpop.f32.mrf.mxu0 }
 0x1a9   : > { %6384 = vst [vmem:[#allocation15_spill] sm:$0xff] %v5915_v14  ;;  %6385 = vst [vmem:[#allocation17_spill] sm:$0xff] %v5917_v6 }
 0x1aa   : > { %v5919_v4 = vpop.f32.mrf.mxu1  ;;  %v5921_v53 = vpop.f32.mrf.mxu0 }
 0x1ab   : > { %6386 = vst [vmem:[#allocation19_spill] sm:$0xff] %v5919_v4  ;;  %6387 = vst [vmem:[#allocation21_spill] sm:$0xff] %v5921_v53 }
 0x1ac   : > { %v5923_v17 = vpop.f32.mrf.mxu1  ;;  %v5925_v54 = vpop.f32.mrf.mxu0 }
 0x1ad   : > { %6388 = vst [vmem:[#allocation11_spill] sm:$0xff] %v5923_v17  ;;  %6389 = vst [vmem:[#allocation24_spill] sm:$0xff] %v5925_v54 }
 0x1ae   : > { %v5927_v61 = vpop.f32.mrf.mxu1  ;;  %v5929_v3 = vpop.f32.mrf.mxu0 }
 0x1af   : > { %6390 = vst [vmem:[#allocation14_spill] sm:$0xff] %v5927_v61  ;;  %6391 = vst [vmem:[#allocation46_spill] sm:$0xff] %v5929_v3  ;;  %v2259_v3 = vadd.f32 %v4194_v2, %v5738_v24  ;;  %v2260_v24 = vadd.f32 %v5843_v10, %v5747_v5 }
 0x1b0   : > { %v5931_v59 = vpop.f32.mrf.mxu1  ;;  %v5933_v27 = vpop.f32.mrf.mxu0 }
 0x1b1   : > { %6392 = vst [vmem:[#allocation25_spill] sm:$0xff] %v5931_v59  ;;  %6393 = vst [vmem:[#allocation16_spill] sm:$0xff] %v5933_v27 }
 0x1b2   : > { %v5935_v50 = vpop.f32.mrf.mxu1  ;;  %v5937_v14 = vpop.f32.mrf.mxu0 }
 0x1b3   : > { %6394 = vst [vmem:[#allocation28_spill] sm:$0xff] %v5935_v50  ;;  %6395 = vst [vmem:[#allocation18_spill] sm:$0xff] %v5937_v14  ;;  %v2258_v14 = vadd.f32 %v2099_v26, %v5741_v52  ;;  %v5968_v52 = vld [vmem:[%s6137_s2] ss:$0 sm:$0xff] }
 0x1b4   : > { %v5939_v6 = vpop.f32.mrf.mxu1  ;;  %v5941_v4 = vpop.f32.mrf.mxu0 }
 0x1b5   : > { %6396 = vst [vmem:[#allocation31_spill] sm:$0xff] %v5939_v6  ;;  %6397 = vst [vmem:[#allocation29_spill] sm:$0xff] %v5941_v4  ;;  %v2519_v4 = vadd.f32 %v5828_v7, %v2259_v3 }
 0x1b6   : > { %v5943_v53 = vpop.f32.mrf.mxu1  ;;  %v5945_v17 = vpop.f32.mrf.mxu0 }
 0x1b7   : > { %6398 = vst [vmem:[#allocation20_spill] sm:$0xff] %v5943_v53  ;;  %6399 = vst [vmem:[#allocation10_spill] sm:$0xff] %v5945_v17  ;;  %v2261_v17 = vadd.f32 %v5839_v44, %v5744_v63  ;;  %v2263_v63 = vadd.f32 %v5847_v60, %v5750_v43 }
 0x1b8   : > { %v5947_v54 = vpop.f32.mrf.mxu1  ;;  %v5949_v61 = vpop.f32.mrf.mxu0 }
 0x1b9   : > { %6400 = vst [vmem:[#allocation30_spill] sm:$0xff] %v5947_v54  ;;  %6401 = vst [vmem:[#allocation3_spill] sm:$0xff] %v5949_v61  ;;  %v2518_v61 = vadd.f32 %v5833_v19, %v2258_v14  ;;  %v2521_v3 = vadd.f32 %v5837_v56, %v2261_v17  ;;  %v2262_v14 = vadd.f32 %v5851_v40, %v5753_v0 }
 0x1ba   : > { %v5952_v59 = vpop.f32.mrf.mxu1  ;;  %v5954_v27 = vpop.f32.mrf.mxu0  ;;  %v2265_v0 = vadd.f32 %v5855_v31, %v5756_v55  ;;  %v2523_v60 = vadd.f32 %v5845_v33, %v2263_v63 }
 0x1bb   : > { %6402 = vst [vmem:[#allocation39_spill] sm:$0xff] %v5954_v27  ;;  %v2522_v40 = vadd.f32 %v5849_v51, %v2262_v14 }
 0x1bc   : > { %v5957_v50 = vpop.f32.mrf.mxu1  ;;  %v4344_v6 = vpop.f32.mrf.mxu0 }
 0x1bd   : > { %6403 = vst [vmem:[#allocation32_spill] sm:$0xff] %v5957_v50 }
 0x1be   : > { %v4294_v54 = vpop.f32.mrf.mxu1  ;;  %v2879_v53 = vpop.f32.mrf.mxu0 }
 0x1bf   : > { %v2779_v2 = vadd.f32 %v4294_v54, %v2519_v4  ;;  %v2520_v54 = vadd.f32 %v5841_v34, %v2260_v24  ;;  %v2264_v34 = vadd.f32 %v5859_v29, %v5759_v13 }
 0x1c0   : > { %v2619_v26 = vpop.f32.mrf.mxu1  ;;  %v4347_v27 = vpop.f32.mrf.mxu0 }
 0x1c1   : > { %v3039_v7 = vadd.f32 %v4344_v6, %v2779_v2  ;;  %v2778_v50 = vadd.f32 %v2619_v26, %v2518_v61  ;;  %v2524_v14 = vadd.f32 %v5857_v20, %v2264_v34 }
 0x1c2   : > { %v4297_v5 = vpop.f32.mrf.mxu1  ;;  %v2889_v4 = vpop.f32.mrf.mxu0 }
 0x1c3   : > { %v3078_v6 = vadd.f32 %v5968_v52, %v3039_v7  ;;  %v3038_v61 = vadd.f32 %v2879_v53, %v2778_v50  ;;  %v2781_v17 = vadd.f32 %v4297_v5, %v2521_v3  ;;  %v2525_v7 = vadd.f32 %v5853_v48, %v2265_v0 }
 0x1c4   : > { %v2629_v43 = vpop.f32.mrf.mxu1  ;;  %v4350_v19 = vpop.f32.mrf.mxu0  ;;  %v2266_v5 = vadd.f32 %v5867_v22, %v5765_v9 }
 0x1c5   : > { %3110 = vst [vmem:[%s5980_s19 + $0x8] sm:$0xff] %v3078_v6  ;;  %v3077_v56 = vadd.f32 %v5968_v52, %v3038_v61  ;;  %v3041_v44 = vadd.f32 %v4347_v27, %v2781_v17  ;;  %v2780_v10 = vadd.f32 %v2629_v43, %v2520_v54  ;;  %v3179_v50 = vmul.f32 %v3078_v6, %v3078_v6 }
 0x1c6   : > { %v4300_v53 = vpop.f32.mrf.mxu1  ;;  %v2899_v24 = vpop.f32.mrf.mxu0  ;;  %v2267_v27 = vadd.f32 %v5863_v37, %v5762_v12  ;;  %v2269_v43 = vadd.f32 %v5871_v16, %v5768_v23 }
 0x1c7   : > { %3109 = vst [vmem:[%s5980_s19] sm:$0xff] %v3077_v56  ;;  %v3141_v2 = vadd.f32 %v3078_v6, %v3077_v56  ;;  %v3178_v26 = vmul.f32 %v3077_v56, %v3077_v56  ;;  %v3080_v55 = vadd.f32 %v5968_v52, %v3041_v44  ;;  %v3040_v31 = vadd.f32 %v2889_v4, %v2780_v10 }
 0x1c8   : > { %v2783_v33 = vadd.f32 %v4300_v53, %v2523_v60  ;;  %v2639_v3 = vpop.f32.mrf.mxu1  ;;  %v4353_v51 = vpop.f32.mrf.mxu0  ;;  %v2527_v48 = vadd.f32 %v5861_v32, %v2267_v27  ;;  %v2526_v60 = vadd.f32 %v5865_v35, %v2266_v5  ;;  %v2271_v32 = vadd.f32 %v5879_v39, %v5774_v15 }
 0x1c9   : > { %v3210_v63 = vadd.f32 %v3179_v50, %v3178_v26  ;;  %3112 = vst [vmem:[%s5980_s19 + $0x18] sm:$0xff] %v3080_v55  ;;  %v3079_v13 = vadd.f32 %v5968_v52, %v3040_v31  ;;  %v2782_v29 = vadd.f32 %v2639_v3, %v2522_v40  ;;  %v3181_v0 = vmul.f32 %v3080_v55, %v3080_v55 }
 0x1ca   : > { %v3043_v54 = vadd.f32 %v4350_v19, %v2783_v33  ;;  %v4303_v4 = vpop.f32.mrf.mxu1  ;;  %v2909_v6 = vpop.f32.mrf.mxu0  ;;  %v2268_v40 = vadd.f32 %v5875_v49, %v5771_v41  ;;  %v2529_v26 = vadd.f32 %v5869_v30, %v2269_v43  ;;  %v2270_v35 = vadd.f32 %v5883_v25, %v5777_v21 }
 0x1cb   : > { %3111 = vst [vmem:[%s5980_s19 + $0x10] sm:$0xff] %v3079_v13  ;;  %v3142_v12 = vadd.f32 %v3141_v2, %v3079_v13  ;;  %v3180_v37 = vmul.f32 %v3079_v13, %v3079_v13  ;;  %v3042_v61 = vadd.f32 %v2899_v24, %v2782_v29  ;;  %v2785_v17 = vadd.f32 %v4303_v4, %v2525_v7 }
 0x1cc   : > { %v3082_v20 = vadd.f32 %v5968_v52, %v3043_v54  ;;  %v2649_v56 = vpop.f32.mrf.mxu1  ;;  %v4356_v9 = vpop.f32.mrf.mxu0  ;;  %v2528_v3 = vadd.f32 %v5873_v46, %v2268_v40  ;;  %v2531_v13 = vadd.f32 %v5877_v58, %v2271_v32 }
 0x1cd   : > { %v3211_v22 = vadd.f32 %v3210_v63, %v3180_v37  ;;  %v3081_v19 = vadd.f32 %v5968_v52, %v3042_v61  ;;  %v3143_v44 = vadd.f32 %v3142_v12, %v3080_v55  ;;  %v3045_v10 = vadd.f32 %v4353_v51, %v2785_v17 }
 0x1ce   : > { %3114 = vst [vmem:[%s5980_s19 + $0x28] sm:$0xff] %v3082_v20  ;;  %v2784_v23 = vadd.f32 %v2649_v56, %v2524_v14  ;;  %v4306_v16 = vpop.f32.mrf.mxu1  ;;  %v2919_v34 = vpop.f32.mrf.mxu0  ;;  %v3183_v39 = vmul.f32 %v3082_v20, %v3082_v20  ;;  %v2530_v14 = vadd.f32 %v5881_v28, %v2270_v35  ;;  %v2273_v12 = vadd.f32 %v5887_v62, %v5780_v36 }
 0x1cf   : > { %3113 = vst [vmem:[%s5980_s19 + $0x20] sm:$0xff] %v3081_v19  ;;  %v3144_v50 = vadd.f32 %v3143_v44, %v3081_v19  ;;  %v3182_v53 = vmul.f32 %v3081_v19, %v3081_v19  ;;  %v3212_v24 = vadd.f32 %v3211_v22, %v3181_v0  ;;  %v3084_v2 = vadd.f32 %v5968_v52, %v3045_v10 }
 0x1d0   : > { %v3044_v41 = vadd.f32 %v2909_v6, %v2784_v23  ;;  %v2787_v49 = vadd.f32 %v4306_v16, %v2527_v48  ;;  %v2659_v55 = vpop.f32.mrf.mxu1  ;;  %v4359_v15 = vpop.f32.mrf.mxu0  ;;  %v2272_v17 = vadd.f32 %v5891_v11, %v5783_v38  ;;  %v2275_v62 = vadd.f32 %v5895_v45, %v5786_v42 }
 0x1d1   : > { %v3213_v31 = vadd.f32 %v3212_v24, %v3182_v53  ;;  %3116 = vst [vmem:[%s5980_s19 + $0x38] sm:$0xff] %v3084_v2  ;;  %v3145_v27 = vadd.f32 %v3144_v50, %v3082_v20  ;;  %v2786_v33 = vadd.f32 %v2659_v55, %v2526_v60  ;;  %v3185_v48 = vmul.f32 %v3084_v2, %v3084_v2 }
 0x1d2   : > { %v3083_v51 = vadd.f32 %v5968_v52, %v3044_v41  ;;  %v3047_v7 = vadd.f32 %v4356_v9, %v2787_v49  ;;  %v4309_v63 = vpop.f32.mrf.mxu1  ;;  %v2929_v30 = vpop.f32.mrf.mxu0  ;;  %v2274_v19 = vadd.f32 %v5899_v18, %v5789_v47  ;;  %v2533_v60 = vadd.f32 %v5885_v57, %v2273_v12  ;;  %v6411_v12 = vld [vmem:[#allocation40_spill] sm:$0xff] }
 0x1d3   : > { %v3214_v21 = vadd.f32 %v3213_v31, %v3183_v39  ;;  %v3046_v25 = vadd.f32 %v2919_v34, %v2786_v33  ;;  %v2789_v29 = vadd.f32 %v4309_v63, %v2529_v26  ;;  %v2532_v16 = vadd.f32 %v5889_v8, %v2272_v17  ;;  %v6404_v26 = vld [vmem:[#allocation4_spill] sm:$0xff]  ;;  %v6406_v39 = vld [vmem:[#allocation6_spill] sm:$0xff] }
 0x1d4   : > { %3115 = vst [vmem:[%s5980_s19 + $0x30] sm:$0xff] %v3083_v51  ;;  %v3146_v5 = vadd.f32 %v3145_v27, %v3083_v51  ;;  %v3184_v54 = vmul.f32 %v3083_v51, %v3083_v51  ;;  %v3086_v4 = vadd.f32 %v5968_v52, %v3047_v7  ;;  %v2669_v46 = vpop.f32.mrf.mxu1  ;;  %v4362_v6 = vpop.f32.mrf.mxu0  ;;  %v2535_v57 = vadd.f32 %v5893_v1, %v2275_v62  ;;  %v6407_v51 = vld [vmem:[#allocation36_spill] sm:$0xff] }
 0x1d5   : > { %v3085_v37 = vadd.f32 %v5968_v52, %v3046_v25  ;;  %v3049_v58 = vadd.f32 %v4359_v15, %v2789_v29  ;;  %v2788_v61 = vadd.f32 %v2669_v46, %v2528_v3  ;;  %v2534_v35 = vadd.f32 %v6404_v26, %v2274_v19  ;;  %v6405_v15 = vld [vmem:[#allocation35_spill] sm:$0xff]  ;;  %v6408_v7 = vld [vmem:[#allocation8_spill] sm:$0xff] }
 0x1d6   : > { %v3215_v28 = vadd.f32 %v3214_v21, %v3184_v54  ;;  %3118 = vst [vmem:[%s5980_s19 + $0x48] sm:$0xff] %v3086_v4  ;;  %v3147_v43 = vadd.f32 %v3146_v5, %v3084_v2  ;;  %v4312_v0 = vpop.f32.mrf.mxu1  ;;  %v2939_v20 = vpop.f32.mrf.mxu0  ;;  %v3187_v34 = vmul.f32 %v3086_v4, %v3086_v4  ;;  %v2277_v31 = vadd.f32 %v6406_v39, %v6405_v15  ;;  %v6410_v46 = vld [vmem:[#allocation12_spill] sm:$0xff] }
 0x1d7   : > { %3117 = vst [vmem:[%s5980_s19 + $0x40] sm:$0xff] %v3085_v37  ;;  %v3186_v56 = vmul.f32 %v3085_v37, %v3085_v37  ;;  %v3088_v9 = vadd.f32 %v5968_v52, %v3049_v58  ;;  %v3048_v22 = vadd.f32 %v2929_v30, %v2788_v61  ;;  %v2791_v36 = vadd.f32 %v4312_v0, %v2531_v13 }
 0x1d8   : > { %v3148_v38 = vadd.f32 %v3147_v43, %v3085_v37  ;;  %v3216_v11 = vadd.f32 %v3215_v28, %v3185_v48  ;;  %v2679_v44 = vpop.f32.mrf.mxu1  ;;  %v4365_v10 = vpop.f32.mrf.mxu0  ;;  %v2276_v63 = vadd.f32 %v6408_v7, %v6407_v51  ;;  %v6412_v37 = vld [vmem:[#allocation15_spill] sm:$0xff]  ;;  %v6413_v43 = vld [vmem:[#allocation5_spill] sm:$0xff] }
 0x1d9   : > { %3120 = vst [vmem:[%s5980_s19 + $0x58] sm:$0xff] %v3088_v9  ;;  %v3087_v40 = vadd.f32 %v5968_v52, %v3048_v22  ;;  %v3051_v32 = vadd.f32 %v4362_v6, %v2791_v36  ;;  %v2790_v23 = vadd.f32 %v2679_v44, %v2530_v14  ;;  %v3189_v30 = vmul.f32 %v3088_v9, %v3088_v9  ;;  %v6414_v22 = vld [vmem:[#allocation7_spill] sm:$0xff] }
 0x1da   : > { %v3217_v50 = vadd.f32 %v3216_v11, %v3186_v56  ;;  %v3149_v42 = vadd.f32 %v3148_v38, %v3086_v4  ;;  %v4315_v45 = vpop.f32.mrf.mxu1  ;;  %v2949_v47 = vpop.f32.mrf.mxu0  ;;  %v6409_v4 = vld [vmem:[#allocation37_spill] sm:$0xff]  ;;  %v2278_v58 = vadd.f32 %v6412_v37, %v6411_v12  ;;  %v2537_v0 = vadd.f32 %v6413_v43, %v2277_v31 }
 0x1db   : > { %3119 = vst [vmem:[%s5980_s19 + $0x50] sm:$0xff] %v3087_v40  ;;  %v3188_v18 = vmul.f32 %v3087_v40, %v3087_v40  ;;  %v3090_v53 = vadd.f32 %v5968_v52, %v3051_v32  ;;  %v3050_v24 = vadd.f32 %v2939_v20, %v2790_v23  ;;  %v2793_v2 = vadd.f32 %v4315_v45, %v2533_v60  ;;  %v6415_v23 = vld [vmem:[#allocation9_spill] sm:$0xff] }
 0x1dc   : > { %v3150_v41 = vadd.f32 %v3149_v42, %v3087_v40  ;;  %v3218_v49 = vadd.f32 %v3217_v50, %v3187_v34  ;;  %v2689_v8 = vpop.f32.mrf.mxu1  ;;  %v4368_v55 = vpop.f32.mrf.mxu0  ;;  %v2279_v6 = vadd.f32 %v6410_v46, %v6409_v4  ;;  %v2536_v36 = vadd.f32 %v6414_v22, %v2276_v63  ;;  %v6416_v34 = vld [vmem:[#allocation13_spill] sm:$0xff]  ;;  %v6421_v63 = vld [vmem:[#allocation43_spill] sm:$0xff] }
 0x1dd   : > { %3122 = vst [vmem:[%s5980_s19 + $0x68] sm:$0xff] %v3090_v53  ;;  %v3089_v27 = vadd.f32 %v5968_v52, %v3050_v24  ;;  %v3053_v33 = vadd.f32 %v4365_v10, %v2793_v2  ;;  %v2792_v3 = vadd.f32 %v2689_v8, %v2532_v16  ;;  %v3191_v62 = vmul.f32 %v3090_v53, %v3090_v53  ;;  %v6417_v24 = vld [vmem:[#allocation41_spill] sm:$0xff]  ;;  %v6418_v2 = vld [vmem:[#allocation19_spill] sm:$0xff] }
 0x1de   : > { %v3219_v1 = vadd.f32 %v3218_v49, %v3188_v18  ;;  %v3151_v13 = vadd.f32 %v3150_v41, %v3088_v9  ;;  %v4318_v21 = vpop.f32.mrf.mxu1  ;;  %v2959_v25 = vpop.f32.mrf.mxu0  ;;  %v2539_v16 = vadd.f32 %v6415_v23, %v2279_v6  ;;  %v2538_v50 = vadd.f32 %v6416_v34, %v2278_v58  ;;  %v6419_v41 = vld [vmem:[#allocation42_spill] sm:$0xff]  ;;  %v6420_v49 = vld [vmem:[#allocation11_spill] sm:$0xff]  ;;  %v6426_v58 = vld [vmem:[#allocation21_spill] sm:$0xff] }
 0x1df   : > { %3121 = vst [vmem:[%s5980_s19 + $0x60] sm:$0xff] %v3089_v27  ;;  %v3190_v29 = vmul.f32 %v3089_v27, %v3089_v27  ;;  %v3092_v14 = vadd.f32 %v5968_v52, %v3053_v33  ;;  %v3052_v5 = vadd.f32 %v2949_v47, %v2792_v3  ;;  %v2795_v54 = vadd.f32 %v4318_v21, %v2535_v57  ;;  %v6424_v21 = vld [vmem:[#allocation25_spill] sm:$0xff]  ;;  %v6430_v23 = vld [vmem:[#allocation28_spill] sm:$0xff] }
 0x1e0   : > { %v3152_v61 = vadd.f32 %v3151_v13, %v3089_v27  ;;  %v3220_v17 = vadd.f32 %v3219_v1, %v3189_v30  ;;  %v2699_v48 = vpop.f32.mrf.mxu1  ;;  %v4371_v28 = vpop.f32.mrf.mxu0  ;;  %v2280_v8 = vadd.f32 %v6420_v49, %v6419_v41  ;;  %v6422_v30 = vld [vmem:[#allocation14_spill] sm:$0xff]  ;;  %v6423_v13 = vld [vmem:[#allocation44_spill] sm:$0xff] }
 0x1e1   : > { %3124 = vst [vmem:[%s5980_s19 + $0x78] sm:$0xff] %v3092_v14  ;;  %v3091_v20 = vadd.f32 %v5968_v52, %v3052_v5  ;;  %v3055_v56 = vadd.f32 %v4368_v55, %v2795_v54  ;;  %v2794_v9 = vadd.f32 %v2699_v48, %v2534_v35  ;;  %v3193_v55 = vmul.f32 %v3092_v14, %v3092_v14 }
 0x1e2   : > { %v3221_v19 = vadd.f32 %v3220_v17, %v3190_v29  ;;  %v3153_v38 = vadd.f32 %v3152_v61, %v3090_v53  ;;  %v4321_v11 = vpop.f32.mrf.mxu1  ;;  %v2969_v44 = vpop.f32.mrf.mxu0  ;;  %v2281_v53 = vadd.f32 %v6418_v2, %v6417_v24  ;;  %v2283_v1 = vadd.f32 %v6422_v30, %v6421_v63 }
 0x1e3   : > { %3123 = vst [vmem:[%s5980_s19 + $0x70] sm:$0xff] %v3091_v20  ;;  %v3192_v10 = vmul.f32 %v3091_v20, %v3091_v20  ;;  %v3094_v60 = vadd.f32 %v5968_v52, %v3055_v56  ;;  %v3054_v40 = vadd.f32 %v2959_v25, %v2794_v9  ;;  %v2797_v32 = vadd.f32 %v4321_v11, %v2537_v0 }
 0x1e4   : > { %v3154_v42 = vadd.f32 %v3153_v38, %v3091_v20  ;;  %v3222_v45 = vadd.f32 %v3221_v19, %v3191_v62  ;;  %v2709_v47 = vpop.f32.mrf.mxu1  ;;  %v4374_v18 = vpop.f32.mrf.mxu0  ;;  %v2282_v25 = vadd.f32 %v6424_v21, %v6423_v13  ;;  %v2540_v61 = vadd.f32 %v6426_v58, %v2280_v8  ;;  %v6428_v19 = vld [vmem:[#allocation46_spill] sm:$0xff] }
 0x1e5   : > { %3126 = vst [vmem:[%s5980_s19 + $0x88] sm:$0xff] %v3094_v60  ;;  %v3093_v57 = vadd.f32 %v5968_v52, %v3054_v40  ;;  %v3057_v26 = vadd.f32 %v4371_v28, %v2797_v32  ;;  %v2796_v35 = vadd.f32 %v2709_v47, %v2536_v36  ;;  %v3195_v17 = vmul.f32 %v3094_v60, %v3094_v60  ;;  %v6427_v36 = vld [vmem:[#allocation24_spill] sm:$0xff]  ;;  %v6429_v32 = vld [vmem:[#allocation45_spill] sm:$0xff]  ;;  %v6433_v8 = vld [vmem:[#allocation22_spill] sm:$0xff] }
 0x1e6   : > { %v3223_v15 = vadd.f32 %v3222_v45, %v3192_v10  ;;  %v3155_v39 = vadd.f32 %v3154_v42, %v3092_v14  ;;  %v4324_v31 = vpop.f32.mrf.mxu1  ;;  %v2979_v27 = vpop.f32.mrf.mxu0  ;;  %v6425_v14 = vld [vmem:[#allocation17_spill] sm:$0xff]  ;;  %v2543_v62 = vadd.f32 %v6427_v36, %v2283_v1  ;;  %v2542_v38 = vadd.f32 %v6428_v19, %v2282_v25  ;;  %v6431_v42 = vld [vmem:[#allocation38_spill] sm:$0xff]  ;;  %v6432_v45 = vld [vmem:[#allocation31_spill] sm:$0xff] }
 0x1e7   : > { %3125 = vst [vmem:[%s5980_s19 + $0x80] sm:$0xff] %v3093_v57  ;;  %v3194_v33 = vmul.f32 %v3093_v57, %v3093_v57  ;;  %v3096_v3 = vadd.f32 %v5968_v52, %v3057_v26  ;;  %v3056_v51 = vadd.f32 %v2969_v44, %v2796_v35  ;;  %v2799_v7 = vadd.f32 %v4324_v31, %v2539_v16  ;;  %v6436_v31 = vld [vmem:[#allocation30_spill] sm:$0xff] }
 0x1e8   : > { %v3156_v29 = vadd.f32 %v3155_v39, %v3093_v57  ;;  %v3224_v5 = vadd.f32 %v3223_v15, %v3193_v55  ;;  %v2719_v54 = vpop.f32.mrf.mxu1  ;;  %v4377_v4 = vpop.f32.mrf.mxu0  ;;  %v2541_v46 = vadd.f32 %v6425_v14, %v2281_v53  ;;  %v2284_v47 = vadd.f32 %v6432_v45, %v6431_v42  ;;  %v6434_v55 = vld [vmem:[#allocation20_spill] sm:$0xff]  ;;  %v6435_v39 = vld [vmem:[#allocation23_spill] sm:$0xff]  ;;  %v6438_v25 = vld [vmem:[#allocation18_spill] sm:$0xff] }
 0x1e9   : > { %3128 = vst [vmem:[%s5980_s19 + $0x98] sm:$0xff] %v3096_v3  ;;  %v3095_v6 = vadd.f32 %v5968_v52, %v3056_v51  ;;  %v3059_v12 = vadd.f32 %v4374_v18, %v2799_v7  ;;  %v2798_v37 = vadd.f32 %v2719_v54, %v2538_v50  ;;  %v3197_v18 = vmul.f32 %v3096_v3, %v3096_v3 }
 0x1ea   : > { %v3225_v48 = vadd.f32 %v3224_v5, %v3194_v33  ;;  %v3157_v28 = vadd.f32 %v3156_v29, %v3094_v60  ;;  %v4327_v43 = vpop.f32.mrf.mxu1  ;;  %v2989_v0 = vpop.f32.mrf.mxu0  ;;  %v2285_v60 = vadd.f32 %v6430_v23, %v6429_v32  ;;  %v2287_v15 = vadd.f32 %v6434_v55, %v6433_v8 }
 0x1eb   : > { %3127 = vst [vmem:[%s5980_s19 + $0x90] sm:$0xff] %v3095_v6  ;;  %v3196_v20 = vmul.f32 %v3095_v6, %v3095_v6  ;;  %v3098_v56 = vadd.f32 %v5968_v52, %v3059_v12  ;;  %v3058_v9 = vadd.f32 %v2979_v27, %v2798_v37  ;;  %v2801_v22 = vadd.f32 %v4327_v43, %v2541_v46 }
 0x1ec   : > { %v3158_v11 = vadd.f32 %v3157_v28, %v3095_v6  ;;  %v3226_v44 = vadd.f32 %v3225_v48, %v3195_v17  ;;  %v2729_v10 = vpop.f32.mrf.mxu1  ;;  %v4380_v40 = vpop.f32.mrf.mxu0  ;;  %v2286_v27 = vadd.f32 %v6436_v31, %v6435_v39  ;;  %v2544_v29 = vadd.f32 %v6438_v25, %v2284_v47  ;;  %v6440_v48 = vld [vmem:[#allocation10_spill] sm:$0xff] }
 0x1ed   : > { %3130 = vst [vmem:[%s5980_s19 + $0xa8] sm:$0xff] %v3098_v56  ;;  %v3097_v16 = vadd.f32 %v5968_v52, %v3058_v9  ;;  %v3061_v34 = vadd.f32 %v4377_v4, %v2801_v22  ;;  %v2800_v50 = vadd.f32 %v2729_v10, %v2540_v61  ;;  %v3199_v5 = vmul.f32 %v3098_v56, %v3098_v56  ;;  %v6439_v61 = vld [vmem:[#allocation29_spill] sm:$0xff]  ;;  %v6441_v22 = vld [vmem:[#allocation26_spill] sm:$0xff] }
 0x1ee   : > { %v3227_v24 = vadd.f32 %v3226_v44, %v3196_v20  ;;  %v3159_v2 = vadd.f32 %v3158_v11, %v3096_v3  ;;  %v4330_v53 = vpop.f32.mrf.mxu1  ;;  %v2999_v57 = vpop.f32.mrf.mxu0  ;;  %v6437_v3 = vld [vmem:[#allocation16_spill] sm:$0xff]  ;;  %v2547_v17 = vadd.f32 %v6439_v61, %v2287_v15  ;;  %v2546_v28 = vadd.f32 %v6440_v48, %v2286_v27 }
 0x1ef   : > { %3129 = vst [vmem:[%s5980_s19 + $0xa0] sm:$0xff] %v3097_v16  ;;  %v3198_v26 = vmul.f32 %v3097_v16, %v3097_v16  ;;  %v3100_v35 = vadd.f32 %v5968_v52, %v3061_v34  ;;  %v3060_v41 = vadd.f32 %v2989_v0, %v2800_v50  ;;  %v2803_v49 = vadd.f32 %v4330_v53, %v2543_v62  ;;  %v6443_v11 = vld [vmem:[#allocation32_spill] sm:$0xff] }
 0x1f0   : > { %v3160_v33 = vadd.f32 %v3159_v2, %v3097_v16  ;;  %v3228_v51 = vadd.f32 %v3227_v24, %v3197_v18  ;;  %v2739_v7 = vpop.f32.mrf.mxu1  ;;  %v4383_v63 = vpop.f32.mrf.mxu0  ;;  %v2545_v30 = vadd.f32 %v6437_v3, %v2285_v60  ;;  %v6444_v18 = vld [vmem:[#allocation3_spill] sm:$0xff] }
 0x1f1   : > { %3132 = vst [vmem:[%s5980_s19 + $0xb8] sm:$0xff] %v3100_v35  ;;  %v3099_v1 = vadd.f32 %v5968_v52, %v3060_v41  ;;  %v3063_v13 = vadd.f32 %v4380_v40, %v2803_v49  ;;  %v2802_v21 = vadd.f32 %v2739_v7, %v2542_v38  ;;  %v6442_v38 = vld [vmem:[#allocation27_spill] sm:$0xff]  ;;  %v3201_v10 = vmul.f32 %v3100_v35, %v3100_v35 }
 0x1f2   : > { %v3229_v54 = vadd.f32 %v3228_v51, %v3198_v26  ;;  %v3161_v4 = vadd.f32 %v3160_v33, %v3098_v56  ;;  %v4333_v14 = vpop.f32.mrf.mxu1  ;;  %v3009_v46 = vpop.f32.mrf.mxu0  ;;  %v2289_v56 = vadd.f32 %v5952_v59, %v6441_v22  ;;  %v2288_v44 = vadd.f32 %v6443_v11, %v6442_v38  ;;  %v6445_v26 = vld [vmem:[#allocation39_spill] sm:$0xff] }
 0x1f3   : > { %3131 = vst [vmem:[%s5980_s19 + $0xb0] sm:$0xff] %v3099_v1  ;;  %v3200_v6 = vmul.f32 %v3099_v1, %v3099_v1  ;;  %v3102_v12 = vadd.f32 %v5968_v52, %v3063_v13  ;;  %v3062_v37 = vadd.f32 %v2999_v57, %v2802_v21  ;;  %v2805_v58 = vadd.f32 %v4333_v14, %v2545_v30 }
 0x1f4   : > { %v3162_v43 = vadd.f32 %v3161_v4, %v3099_v1  ;;  %v3230_v0 = vadd.f32 %v3229_v54, %v3199_v5  ;;  %v2749_v20 = vpop.f32.mrf.mxu1  ;;  %v4386_v9 = vpop.f32.mrf.mxu0  ;;  %v2549_v24 = vadd.f32 %v6444_v18, %v2289_v56 }
 0x1f5   : > { %3134 = vst [vmem:[%s5980_s19 + $0xc8] sm:$0xff] %v3102_v12  ;;  %v3101_v36 = vadd.f32 %v5968_v52, %v3062_v37  ;;  %v3065_v62 = vadd.f32 %v4383_v63, %v2805_v58  ;;  %v2804_v19 = vadd.f32 %v2749_v20, %v2544_v29  ;;  %v3203_v41 = vmul.f32 %v3102_v12, %v3102_v12 }
 0x1f6   : > { %v3231_v40 = vadd.f32 %v3230_v0, %v3200_v6  ;;  %v3163_v32 = vadd.f32 %v3162_v43, %v3100_v35  ;;  %v4336_v23 = vpop.f32.mrf.mxu1  ;;  %v3019_v60 = vpop.f32.mrf.mxu0  ;;  %v2548_v35 = vadd.f32 %v6445_v26, %v2288_v44 }
 0x1f7   : > { %3133 = vst [vmem:[%s5980_s19 + $0xc0] sm:$0xff] %v3101_v36  ;;  %v3202_v16 = vmul.f32 %v3101_v36, %v3101_v36  ;;  %v3104_v34 = vadd.f32 %v5968_v52, %v3065_v62  ;;  %v3064_v50 = vadd.f32 %v3009_v46, %v2804_v19  ;;  %v2807_v59 = vadd.f32 %v4336_v23, %v2547_v17 }
 0x1f8   : > { %v3164_v42 = vadd.f32 %v3163_v32, %v3101_v36  ;;  %v3232_v45 = vadd.f32 %v3231_v40, %v3201_v10  ;;  %v2759_v47 = vpop.f32.mrf.mxu1  ;;  %v4389_v15 = vpop.f32.mrf.mxu0 }
 0x1f9   : > { %3136 = vst [vmem:[%s5980_s19 + $0xd8] sm:$0xff] %v3104_v34  ;;  %v3103_v2 = vadd.f32 %v5968_v52, %v3064_v50  ;;  %v3067_v53 = vadd.f32 %v4386_v9, %v2807_v59  ;;  %v2806_v57 = vadd.f32 %v2759_v47, %v2546_v28  ;;  %v3205_v13 = vmul.f32 %v3104_v34, %v3104_v34 }
 0x1fa   : > { %v3233_v49 = vadd.f32 %v3232_v45, %v3202_v16  ;;  %v3165_v8 = vadd.f32 %v3164_v42, %v3102_v12  ;;  %v4339_v55 = vpop.f32.mrf.mxu1  ;;  %v3029_v29 = vpop.f32.mrf.mxu0 }
 0x1fb   : > { %3135 = vst [vmem:[%s5980_s19 + $0xd0] sm:$0xff] %v3103_v2  ;;  %v3204_v39 = vmul.f32 %v3103_v2, %v3103_v2  ;;  %v3106_v31 = vadd.f32 %v5968_v52, %v3067_v53  ;;  %v3066_v27 = vadd.f32 %v3019_v60, %v2806_v57  ;;  %v2809_v33 = vadd.f32 %v4339_v55, %v2549_v24 }
 0x1fc   : > { %v3166_v51 = vadd.f32 %v3165_v8, %v3103_v2  ;;  %v3234_v7 = vadd.f32 %v3233_v49, %v3203_v41  ;;  %v2769_v63 = vpop.f32.mrf.mxu1 }
 0x1fd   : > { %3138 = vst [vmem:[%s5980_s19 + $0xe8] sm:$0xff] %v3106_v31  ;;  %v3105_v3 = vadd.f32 %v5968_v52, %v3066_v27  ;;  %v3069_v30 = vadd.f32 %v4389_v15, %v2809_v33  ;;  %v2808_v1 = vadd.f32 %v2769_v63, %v2548_v35  ;;  %v3207_v12 = vmul.f32 %v3106_v31, %v3106_v31 }
 0x1fe   : > { %v3235_v21 = vadd.f32 %v3234_v7, %v3204_v39  ;;  %v3167_v25 = vadd.f32 %v3166_v51, %v3104_v34 }
 0x1ff   : > { %3137 = vst [vmem:[%s5980_s19 + $0xe0] sm:$0xff] %v3105_v3  ;;  %v3206_v5 = vmul.f32 %v3105_v3, %v3105_v3  ;;  %v3108_v54 = vadd.f32 %v5968_v52, %v3069_v30  ;;  %v3068_v4 = vadd.f32 %v3029_v29, %v2808_v1 }
 0x200   : > { %v3168_v14 = vadd.f32 %v3167_v25, %v3105_v3  ;;  %v3236_v46 = vadd.f32 %v3235_v21, %v3205_v13 }
 0x201   : > { %3140 = vst [vmem:[%s5980_s19 + $0xf8] sm:$0xff] %v3108_v54  ;;  %v3107_v6 = vadd.f32 %v5968_v52, %v3068_v4  ;;  %v3209_v28 = vmul.f32 %v3108_v54, %v3108_v54 }
 0x202   : > { %v3237_v37 = vadd.f32 %v3236_v46, %v3206_v5  ;;  %v3169_v58 = vadd.f32 %v3168_v14, %v3106_v31 }
 0x203   : > { %3139 = vst [vmem:[%s5980_s19 + $0xf0] sm:$0xff] %v3107_v6  ;;  %v3208_v61 = vmul.f32 %v3107_v6, %v3107_v6 }
 0x204   : > { %v3170_v17 = vadd.f32 %v3169_v58, %v3107_v6  ;;  %v3238_v48 = vadd.f32 %v3237_v37, %v3207_v12 }
 0x206   : > { %v3171_v43 = vadd.f32 %v3170_v17, %v3108_v54  ;;  %v3239_v0 = vadd.f32 %v3238_v48, %v3208_v61 }
 0x208   : > { %v3172_v20 = vrot.slane %v3171_v43, 4  ;;  %v3240_v9 = vadd.f32 %v3239_v0, %v3209_v28 }
 0x20a   : > { %v3173_v22 = vadd.f32 %v3172_v20, %v3171_v43  ;;  %v3241_v56 = vrot.slane %v3240_v9, 4 }
 0x20c   : > { %v3174_v36 = vrot.slane %v3173_v22, 2  ;;  %v3242_v62 = vadd.f32 %v3241_v56, %v3240_v9 }
 0x20e   : > { %v3175_v19 = vadd.f32 %v3174_v36, %v3173_v22  ;;  %v3243_v38 = vrot.slane %v3242_v62, 2 }
 0x210   : > { %v3176_v52 = vrot.slane %v3175_v19, 1  ;;  %v3244_v11 = vadd.f32 %v3243_v38, %v3242_v62 }
 0x212   : > { %v3245_v44 = vrot.slane %v3244_v11, 1  ;;  %v3177_v10 = vadd.f32 %v3176_v52, %v3175_v19 }
 0x214   : > { %v3246_v40 = vadd.f32 %v3245_v44, %v3244_v11 }
 0x216   : > { %v3247_v32 = vsel %vm273_vm2, %v3177_v10, %v3246_v40 }
 0x217   : > { %3248 = vst [vmem:[%s208_s23] sm:$0x3] %v3247_v32 }
 0x218 PF: > { %s15_s15 = sadd.s32 1, %s4407_s15  }
 0x219   : > { %p12_p4 = scmp.ge.s32.totalorder %s15_s15, 4  }
 0x21b   :  { %14 = sbr.rel (!%p12_p4) target bundleno = 1 (0x1), region = 74 }

</bundles_post_ra>
